<compile_context>
chip_gen: v7x
topology: tpu7x:2x2x1
jax: 0.10.0
libtpu: 0.0.40
codegen_flags: <defaults>
</compile_context>

<pallas_src>
import math

import jax
import jax.numpy as jnp
from jax.experimental import pallas as pl
from jax.experimental.pallas import tpu as pltpu

_GELU_C = math.sqrt(2.0 / math.pi)


def _gelu_tanh(h):
    # torch.nn.GELU(approximate='tanh'), computed in f32.
    return 0.5 * h * (1.0 + jnp.tanh(_GELU_C * (h + 0.044715 * (h * h * h))))


def mlp_kernel(x_ref, w_fc_ref, b_fc_ref, w_proj_ref, b_proj_ref, o_ref):
    # First matmul: (tm, C) @ (C, H) on the MXU, bf16 operands / f32 accumulate.
    x = x_ref[...].astype(jnp.bfloat16)
    h = jnp.dot(x, w_fc_ref[...], preferred_element_type=jnp.float32)

    # Bias + tanh-GELU in f32 (EUP handles the tanh).
    h = _gelu_tanh(h + b_fc_ref[...])

    # Second matmul: (tm, H) @ (H, C), full contraction, no VMEM accumulator.
    h = h.astype(jnp.bfloat16)
    out = jnp.dot(h, w_proj_ref[...], preferred_element_type=jnp.float32)

    o_ref[...] = (out + b_proj_ref[...]).astype(o_ref.dtype)


def mlp_forward(x, w_fc, b_fc, w_proj, b_proj, *, tm=256):
    B, T, C = x.shape
    H = w_fc.shape[1]
    assert w_fc.shape == (C, H)
    assert b_fc.shape == (1, H)
    assert w_proj.shape == (H, C)
    assert b_proj.shape == (1, C)

    M = B * T
    tm = min(tm, M)
    assert M % tm == 0, "B*T must be divisible by the row tile"

    x2 = x.reshape(M, C)

    # Weights in bf16 at the call boundary (f32 accumulation inside the kernel);
    # biases stay f32.
    w_fc_bf = w_fc.astype(jnp.bfloat16)
    w_proj_bf = w_proj.astype(jnp.bfloat16)
    b_fc_f32 = b_fc.astype(jnp.float32)
    b_proj_f32 = b_proj.astype(jnp.float32)

    grid = (M // tm,)

    # Accurate byte accounting: weights are read from HBM exactly once (resident).
    cost = pl.CostEstimate(
        flops=4 * M * C * H,                 # two matmuls
        transcendentals=M * H,               # tanh in GELU
        bytes_accessed=(4 * M * C            # x read (f32)
                        + 2 * (C * H + H * C)  # bf16 weights, read once
                        + 4 * (H + C)        # biases (f32)
                        + 4 * M * C),        # output write (f32)
    )

    out2 = pl.pallas_call(
        mlp_kernel,
        out_shape=jax.ShapeDtypeStruct((M, C), x.dtype),
        grid=grid,
        in_specs=[
            pl.BlockSpec((tm, C), lambda i: (i, 0)),   # x row-tile (streamed)
            pl.BlockSpec((C, H), lambda i: (0, 0)),    # W_fc  -> fully VMEM-resident
            pl.BlockSpec((1, H), lambda i: (0, 0)),    # b_fc  -> resident
            pl.BlockSpec((H, C), lambda i: (0, 0)),    # W_proj -> fully VMEM-resident
            pl.BlockSpec((1, C), lambda i: (0, 0)),    # b_proj -> resident
        ],
        out_specs=pl.BlockSpec((tm, C), lambda i: (i, 0)),
        compiler_params=pltpu.CompilerParams(
            dimension_semantics=("parallel",),
            vmem_limit_bytes=56 * 1024 * 1024,  # leaves headroom on v7x (64 MiB VMEM)
        ),
        cost_estimate=cost,
    )(x2, w_fc_bf, b_fc_f32, w_proj_bf, b_proj_f32)

    return out2.reshape(B, T, C)


def reference_mlp(x, w_fc, b_fc, w_proj, b_proj):
    """Plain-JAX f32 reference mirroring the PyTorch forward exactly."""
    h = x @ w_fc + b_fc[0]
    h = _gelu_tanh(h)
    return h @ w_proj + b_proj[0]


if __name__ == "__main__":
    # Small shapes consistent with the module (n_embed=C, hidden=4*C).
    B, T, C = 2, 256, 128
    H = 4 * C

    key = jax.random.PRNGKey(0)
    kx, kw1, kb1, kw2, kb2 = jax.random.split(key, 5)

    x = jax.random.normal(kx, (B, T, C), dtype=jnp.float32)
    # Deterministic synthetic parameters (shapes from nn.Linear(C, 4C) / nn.Linear(4C, C)).
    w_fc = 0.02 * jax.random.normal(kw1, (C, H), dtype=jnp.float32)
    b_fc = 0.02 * jax.random.normal(kb1, (1, H), dtype=jnp.float32)
    w_proj = 0.02 * jax.random.normal(kw2, (H, C), dtype=jnp.float32)
    b_proj = 0.02 * jax.random.normal(kb2, (1, C), dtype=jnp.float32)

    out = mlp_forward(x, w_fc, b_fc, w_proj, b_proj)
    out = jax.block_until_ready(out)

    ref = reference_mlp(x, w_fc, b_fc, w_proj, b_proj)
    assert out.shape == (B, T, C)
    # bf16 matmul operands (f32 accumulation) -> loosened tolerance vs f32 reference.
    assert jnp.allclose(out, ref, atol=2e-2, rtol=2e-2), "mismatch vs JAX reference"

    print("KERNEL_OK")
</pallas_src>

<mosaic_0001>
module attributes {stable_mosaic.version = 11 : i64} {
  func.func @mlp_kernel(%arg0: i32, %arg1: memref<256x128xf32, #tpu.memory_space<vmem>>, %arg2: memref<128x512xbf16, #tpu.memory_space<vmem>>, %arg3: memref<1x512xf32, #tpu.memory_space<vmem>>, %arg4: memref<512x128xbf16, #tpu.memory_space<vmem>>, %arg5: memref<1x128xf32, #tpu.memory_space<vmem>>, %arg6: memref<256x128xf32, #tpu.memory_space<vmem>>) attributes {dimension_semantics = [#tpu.dimension_semantics<parallel>], iteration_bounds = array<i64: 2>, scalar_prefetch = 0 : i64, scratch_operands = 0 : i64, tpu.core_type = #tpu.core_type<tc>, window_params = [{transform_indices = @transform_0, window_bounds = array<i64: 256, 128>}, {pipeline_mode = #tpu.pipeline_mode<synchronous>, transform_indices = @transform_1, window_bounds = array<i64: 128, 512>}, {pipeline_mode = #tpu.pipeline_mode<synchronous>, transform_indices = @transform_2, window_bounds = array<i64: 1, 512>}, {pipeline_mode = #tpu.pipeline_mode<synchronous>, transform_indices = @transform_3, window_bounds = array<i64: 512, 128>}, {pipeline_mode = #tpu.pipeline_mode<synchronous>, transform_indices = @transform_4, window_bounds = array<i64: 1, 128>}, {transform_indices = @transform_5, window_bounds = array<i64: 256, 128>}]} {
    %c0 = arith.constant 0 : index
    %c0_0 = arith.constant 0 : index
    %0 = vector.load %arg1[%c0, %c0_0] : memref<256x128xf32, #tpu.memory_space<vmem>>, vector<256x128xf32>
    %1 = arith.truncf %0 : vector<256x128xf32> to vector<256x128xbf16>
    %c0_1 = arith.constant 0 : index
    %c0_2 = arith.constant 0 : index
    %2 = vector.load %arg2[%c0_1, %c0_2] : memref<128x512xbf16, #tpu.memory_space<vmem>>, vector<128x512xbf16>
    %cst = arith.constant dense<0.000000e+00> : vector<256x512xf32>
    %3 = tpu.matmul %1, %2, %cst {dimension_numbers = #tpu.dot_dimension_numbers<[1], [0], [0], [1], [0, 0, 1, 1], [], []>} : vector<256x128xbf16>, vector<128x512xbf16>, vector<256x512xf32> -> vector<256x512xf32>
    %c0_3 = arith.constant 0 : index
    %c0_4 = arith.constant 0 : index
    %4 = vector.load %arg3[%c0_3, %c0_4] : memref<1x512xf32, #tpu.memory_space<vmem>>, vector<1x512xf32>
    %5 = vector.broadcast %4 : vector<1x512xf32> to vector<256x512xf32>
    %6 = arith.addf %3, %5 : vector<256x512xf32>
    %cst_5 = arith.constant 5.000000e-01 : f32
    %7 = vector.broadcast %cst_5 : f32 to vector<256x512xf32>
    %8 = arith.mulf %7, %6 : vector<256x512xf32>
    %9 = arith.mulf %6, %6 : vector<256x512xf32>
    %10 = arith.mulf %9, %6 : vector<256x512xf32>
    %cst_6 = arith.constant 4.471500e-02 : f32
    %11 = vector.broadcast %cst_6 : f32 to vector<256x512xf32>
    %12 = arith.mulf %11, %10 : vector<256x512xf32>
    %13 = arith.addf %6, %12 : vector<256x512xf32>
    %cst_7 = arith.constant 0.797884583 : f32
    %14 = vector.broadcast %cst_7 : f32 to vector<256x512xf32>
    %15 = arith.mulf %14, %13 : vector<256x512xf32>
    %16 = math.tanh %15 : vector<256x512xf32>
    %cst_8 = arith.constant 1.000000e+00 : f32
    %17 = vector.broadcast %cst_8 : f32 to vector<256x512xf32>
    %18 = arith.addf %17, %16 : vector<256x512xf32>
    %19 = arith.mulf %8, %18 : vector<256x512xf32>
    %20 = arith.truncf %19 : vector<256x512xf32> to vector<256x512xbf16>
    %c0_9 = arith.constant 0 : index
    %c0_10 = arith.constant 0 : index
    %21 = vector.load %arg4[%c0_9, %c0_10] : memref<512x128xbf16, #tpu.memory_space<vmem>>, vector<512x128xbf16>
    %cst_11 = arith.constant dense<0.000000e+00> : vector<256x128xf32>
    %22 = tpu.matmul %20, %21, %cst_11 {dimension_numbers = #tpu.dot_dimension_numbers<[1], [0], [0], [1], [0, 0, 1, 1], [], []>} : vector<256x512xbf16>, vector<512x128xbf16>, vector<256x128xf32> -> vector<256x128xf32>
    %c0_12 = arith.constant 0 : index
    %c0_13 = arith.constant 0 : index
    %23 = vector.load %arg5[%c0_12, %c0_13] : memref<1x128xf32, #tpu.memory_space<vmem>>, vector<1x128xf32>
    %24 = vector.broadcast %23 : vector<1x128xf32> to vector<256x128xf32>
    %25 = arith.addf %22, %24 : vector<256x128xf32>
    %c0_14 = arith.constant 0 : index
    %c0_15 = arith.constant 0 : index
    %26 = vector.load %arg6[%c0_14, %c0_15] : memref<256x128xf32, #tpu.memory_space<vmem>>, vector<256x128xf32>
    tpu.vector_store %arg6[%c0_14, %c0_15], %25 {strides = array<i32>} : memref<256x128xf32, #tpu.memory_space<vmem>>, vector<256x128xf32>,
    return
  }
  func.func @transform_0(%arg0: i32) -> (i32, i32) {
    %c0_i32 = arith.constant 0 : i32
    %c0_i32_0 = arith.constant 0 : i32
    return %arg0, %c0_i32 : i32, i32
  }
  func.func @transform_1(%arg0: i32) -> (i32, i32) {
    %c0_i32 = arith.constant 0 : i32
    %c0_i32_0 = arith.constant 0 : i32
    %c0_i32_1 = arith.constant 0 : i32
    return %c0_i32, %c0_i32_0 : i32, i32
  }
  func.func @transform_2(%arg0: i32) -> (i32, i32) {
    %c0_i32 = arith.constant 0 : i32
    %c0_i32_0 = arith.constant 0 : i32
    %c0_i32_1 = arith.constant 0 : i32
    return %c0_i32, %c0_i32_0 : i32, i32
  }
  func.func @transform_3(%arg0: i32) -> (i32, i32) {
    %c0_i32 = arith.constant 0 : i32
    %c0_i32_0 = arith.constant 0 : i32
    %c0_i32_1 = arith.constant 0 : i32
    return %c0_i32, %c0_i32_0 : i32, i32
  }
  func.func @transform_4(%arg0: i32) -> (i32, i32) {
    %c0_i32 = arith.constant 0 : i32
    %c0_i32_0 = arith.constant 0 : i32
    %c0_i32_1 = arith.constant 0 : i32
    return %c0_i32, %c0_i32_0 : i32, i32
  }
  func.func @transform_5(%arg0: i32) -> (i32, i32) {
    %c0_i32 = arith.constant 0 : i32
    %c0_i32_0 = arith.constant 0 : i32
    return %arg0, %c0_i32 : i32, i32
  }
}

</mosaic_0001>

<bundles_post_ra>
// kernel: tpu_custom_call.1
= control target key start
LH: loop header
LB: loop body
LE: loop exit
PB: predicated region body
PF: predicated region fallthrough
CT: control target
= control target key end

     0   :  { %10 = vsyncpa [#allocation3], 0  ;;  %s5941_s0 = inlined_call_operand.hbm [shape: f32[512,128], index: 0, kind: input, shape index: {}]   ;;  %s5942_s1 = inlined_call_operand.hbm [shape: bf16[128,512], index: 1, kind: input, shape index: {}]   ;;  %s5943_s2 = inlined_call_operand.vmem [shape: f32[1,512], index: 2, kind: input, shape index: {}]   ;;  %s5944_s3 = inlined_call_operand.hbm [shape: bf16[512,128], index: 3, kind: input, shape index: {}]   ;;  %s5945_s4 = inlined_call_operand.vmem [shape: f32[1,128], index: 4, kind: input, shape index: {}]   ;;  %s5946_s5 = inlined_call_operand.hbm [shape: f32[512,128], index: 5, kind: output, shape index: {}]  }
   0x1   :  { %12 = vsyncpa [#allocation3 + $0x1], 0 }
   0x2   :  { %13 = vsyncpa [#allocation6], 0 }
   0x3   :  { %14 = vsyncpa [#allocation4], 0 }
   0x4   :  { %16 = vsyncpa [#allocation4 + $0x1], 0  ;;  %s3784_s18 = smov 0   ;;  %s3786_s19 = smov 0  }
   0x5   :  { %s3788_s20 = smov 0   ;;  %s3790_s21 = smov 0  }
   0x6 LB: > { %s3805_s22 = sadd.s32 4294967295, %s3739_s21   ;;  %s2862_s23 = sadd.s32 4294967294, %s3739_s21   ;;  %s3739_s21 = sphi %s3790_s21, %s6374_s21   ;;  %s3735_s20 = sphi %s3788_s20, %s6373_s20   ;;  %s3731_s19 = sphi %s3786_s19, %s6372_s19   ;;  %s3727_s18 = sphi %s3784_s18, %s6371_s18  }
   0x7   : > { %p42_p0 = scmp.ne.s32.totalorder %s3731_s19, %s3727_s18  ;;  %p5947_p1 = scmp.eq.s32.totalorder %s3805_s22, 0 }
   0x8   : > { %p156_p3 = scmp.eq.s32.totalorder %s2862_s23, 1  ;;  %p2863_p5 = scmp.ge.s32.totalorder %s3739_s21, 1 }
   0x9   : > { %p3814_p4 = por %p5947_p1, %p42_p0  ;;  %p163_p7 = scmp.lt.s32.totalorder %s3739_s21, 3 }
   0xa   : > { %p3819_p6 = por %p156_p3, %p42_p0  ;;  %s3741_s27 = smov [#allocation5]  }
   0xb   : > { %s6010_s24 = scalar_select %p3814_p4, 1, 0 }
   0xc   : > { %s6011_s25 = scalar_select %p3819_p6, 1, 0 }
   0xd   : > { %p3824_p8 = pnand %p2863_p5, %p163_p7  ;;  %s175_s28 = sshll.u32 %s3741_s27, 4  ;;  %s3828_s28 = int_to_ptr.vmem [resolvable:$true] %s175_s28 }
   0xe   : > { %s3742_s30 = smov [#allocation7]   ;;  %s3583_s9 = scalar_lea.hbm %s5942_s1, 4096 }
   0xf   : > { %p3183_p9 = pneg %p3824_p8  ;;  %s191_s6 = sshll.u32 %s3742_s30, 4  ;;  %s3839_s6 = int_to_ptr.vmem [resolvable:$true] %s191_s6 }
  0x10   : > { %p3584_p12 = scmp.ne.s32.totalorder %s5942_s1, %s3583_s9  ;;  %p3590_p5 = scmp.lt.u32.totalorder %s3583_s9, %s5942_s1 }
  0x11   : > { %p3835_p11 = pnand %p3183_p9, %p5947_p1 }
  0x13   : > { %p3585_p13 = pneg %p3835_p11 }
  0x15   : > { %p3586_p0 = pnand %p3585_p13, %p3584_p12 }
  0x17   : > { %p3587_p3 = pneg %p3586_p0 }
  0x19   : > { %p3592_p7 = pnand %p3590_p5, %p3587_p3 }
  0x1b   : > { %3595 = shalt.err (!%p3592_p7)
}
  0x1c   : > { %s3596_s14 = scalar_lea.vmem %s3828_s28, 4096  ;;  %p3604_p2 = scmp.lt.s32.totalorder %s3828_s28, %s3828_s28 }
  0x1d   : > { %p3597_p9 = scmp.ne.s32.totalorder %s3828_s28, %s3596_s14  ;;  %p3605_p12 = scmp.lt.s32.totalorder %s3596_s14, %s3596_s14 }
  0x1f   : > { %p3599_p10 = pnand %p3597_p9, %p3585_p13  ;;  %p3606_p0 = por %p3605_p12, %p3604_p2 }
  0x21   : > { %p3600_p1 = pneg %p3599_p10 }
  0x23   : > { %p3607_p6 = pnand %p3606_p0, %p3600_p1 }
  0x25   : > { %3610 = shalt.err (!%p3607_p6)
}
  0x26   : > { %s3743_s15 = smov 256   ;;  %s3744_s16 = smov 16  }
  0x27   : > { %3186 = dma.hbm_to_vmem [thread:$0]  (!%p3835_p11), %s5942_s1, 4096, %s3828_s28, [#allocation6], %s3743_s15, %s3743_s15, %s3744_s16  }
  0x28   : > { %s3611_s7 = scalar_lea.hbm %s5944_s3, 4096 }
  0x29   : > { %p3612_p2 = scmp.ne.s32.totalorder %s5944_s3, %s3611_s7  ;;  %p3618_p10 = scmp.lt.u32.totalorder %s3611_s7, %s5944_s3 }
  0x2b   : > { %p3614_p1 = pnand %p3612_p2, %p3585_p13 }
  0x2d   : > { %p3615_p6 = pneg %p3614_p1 }
  0x2f   : > { %p3620_p3 = pnand %p3618_p10, %p3615_p6 }
  0x31   : > { %3623 = shalt.err (!%p3620_p3)
}
  0x32   : > { %s3624_s28 = scalar_lea.vmem %s3839_s6, 4096  ;;  %p3632_p12 = scmp.lt.s32.totalorder %s3839_s6, %s3839_s6 }
  0x33   : > { %p3625_p5 = scmp.ne.s32.totalorder %s3839_s6, %s3624_s28  ;;  %p3633_p0 = scmp.lt.s32.totalorder %s3624_s28, %s3624_s28 }
  0x35   : > { %p3627_p7 = pnand %p3625_p5, %p3585_p13  ;;  %p3634_p2 = por %p3633_p0, %p3632_p12 }
  0x37   : > { %p3628_p9 = pneg %p3627_p7 }
  0x39   : > { %p3635_p1 = pnand %p3634_p2, %p3628_p9 }
  0x3b   : > { %3638 = shalt.err (!%p3635_p1)
}
  0x3c   : > { %s3745_s12 = smov 64   ;;  %s3746_s13 = smov 4  }
  0x3d   : > { %3189 = dma.hbm_to_vmem [thread:$0]  (!%p3835_p11), %s5944_s3, 4096, %s3839_s6, [#allocation6], %s3745_s12, %s3745_s12, %s3746_s13  }
  0x3e   : > { %s3894_s16 = sadd.s32 1, %s3739_s21   ;;  %s29_s23 = sadd.s32 1, %s3735_s20 }
  0x3f   : > { %s26_s17 = ssub.s32 %s3739_s21, %s3894_s16  ;;  %p36_p6 = scmp.ne.s32.totalorder %s3735_s20, %s3731_s19 }
  0x40   : > { %p27_p13 = scmp.eq.s32.totalorder %s26_s17, 0  ;;  %p37_p10 = scmp.eq.s32.totalorder %s3739_s21, 0 }
  0x41   : > { %p6014_p5 = scmp.eq.s32.totalorder %s3805_s22, 1  ;;  %p3200_p9 = scmp.lt.s32.totalorder %s3739_s21, 2 }
  0x42   : > { %s3903_s27 = scalar_select %p27_p13, %s3735_s20, %s29_s23  }
  0x43   : > { %p38_p3 = por %p37_p10, %p36_p6  ;;  %p3907_p7 = por %p6014_p5, %p36_p6 }
  0x44   : > { %s208_s29 = sand.u32 1, %s3735_s20   ;;  %s2945_s6 = sshll.u32 %s3739_s21, 12 }
  0x45   : > { %s6015_s30 = scalar_select %p3907_p7, 1, 0 }
  0x46   : > { %s2867_s7 = sshll.u32 %s208_s29, 8  ;;  %s3917_s10 = scalar_lea.hbm %s5941_s0, %s2945_s6 }
  0x47   : > { %s212_s11 = scalar_lea.vmem [#allocation2], %s2867_s7  ;;  %p3921_p11 = pnand %p3200_p9, %p38_p3 }
  0x48   : > { %s219_s28 = sshll.u32 %s212_s11, 4  ;;  %s3925_s13 = scalar_lea.sflag [#allocation3], %s208_s29  ;;  %s3919_s28 = int_to_ptr.vmem [resolvable:$true] %s219_s28 }
  0x49   : > { %s3639_s14 = scalar_lea.hbm %s3917_s10, 4096  ;;  %p3641_p0 = pneg %p3921_p11 }
  0x4a   : > { %p3640_p12 = scmp.ne.s32.totalorder %s3917_s10, %s3639_s14  ;;  %s3644_s23 = scalar_lea.hbm %s5941_s0, 8192 }
  0x4b   : > { %p3645_p13 = scmp.lt.u32.totalorder %s3917_s10, %s5941_s0  ;;  %p3646_p6 = scmp.lt.u32.totalorder %s3644_s23, %s3639_s14 }
  0x4c   : > { %p3642_p2 = pnand %p3641_p0, %p3640_p12  ;;  %p3648_p3 = scmp.lt.u32.totalorder %s3639_s14, %s3917_s10 }
  0x4d   : > { %p3647_p10 = por %p3646_p6, %p3645_p13 }
  0x4e   : > { %p3643_p1 = pneg %p3642_p2 }
  0x4f   : > { %p3649_p5 = por %p3648_p3, %p3647_p10 }
  0x51   : > { %p3650_p9 = pnand %p3649_p5, %p3643_p1 }
  0x53   : > { %3653 = shalt.err (!%p3650_p9)
}
  0x54   : > { %s3654_s29 = scalar_lea.vmem %s3919_s28, 4096  ;;  %s3747_s8 = smov [#allocation2]  }
  0x55   : > { %p3655_p12 = scmp.ne.s32.totalorder %s3919_s28, %s3654_s29  ;;  %s3659_s9 = sshll.u32 %s3747_s8, 4  ;;  %s3660_s9 = int_to_ptr.vmem [resolvable:$false] %s3659_s9 }
  0x56   : > { %s3661_s11 = scalar_lea.vmem %s3660_s9, 8192  ;;  %p3662_p4 = scmp.lt.s32.totalorder %s3919_s28, %s3660_s9 }
  0x57   : > { %p3657_p2 = pnand %p3655_p12, %p3641_p0  ;;  %p3663_p13 = scmp.lt.s32.totalorder %s3661_s11, %s3654_s29 }
  0x59   : > { %p3658_p7 = pneg %p3657_p2  ;;  %p3664_p6 = por %p3663_p13, %p3662_p4 }
  0x5b   : > { %p3665_p10 = pnand %p3664_p6, %p3658_p7 }
  0x5d   : > { %3668 = shalt.err (!%p3665_p10)
}
  0x5e   : > { %s3748_s14 = smov 128   ;;  %s3749_s15 = smov 8  }
  0x5f   : > { %3193 = dma.hbm_to_vmem [thread:$0]  (!%p3921_p11), %s3917_s10, 4096, %s3919_s28, %s3925_s13, %s3748_s14, %s3748_s14, %s3749_s15  }
  0x60   : > { %231 = sbr.rel (%p3824_p8) target bundleno = 938 (0x3aa), region = 40 }
  0x67   : > { %s3956_s17 = sand.u32 1, %s3731_s19   ;;  %p6017_p4 = scmp.ne.s32.totalorder %s6010_s24, 0 }
  0x68   : > { %s2871_s23 = sshll.u32 %s3956_s17, 8  ;;  %s234_s7 = scalar_lea.sflag [#allocation3], %s3956_s17 }
  0x69   : > { %s3962_s6 = scalar_lea.vmem [#allocation2], %s2871_s23 }
  0x6a   : > { %3714 = dma.done.wait (%p6017_p4), %s234_s7, 4096  }
  0x6b   : > { %3716 = vsyncadd (%p6017_p4), %s234_s7, 4294963200  ;;  %p6018_p7 = scmp.eq.s32.totalorder %s3805_s22, 0 }
  0x6d   : > { %3718 = dma.done.wait (%p6018_p7), [#allocation6], 8192   ;;  %p6019_p8 = pmov %p6018_p7 }
  0x6e   : > { %v3750_v0 = vmov 0   ;;  %v3247_v1 = vld [vmem:[#allocation5 + $0x4] ss:$16 sps:$4 sm:$0xff]   ;;  %v3249_v2 = vld [vmem:[#allocation5 + $0xc] ss:$16 sps:$4 sm:$0xff]   ;;  %s5829_s12 = scalar_lea.vmem [#allocation8], %s2871_s23 }
  0x6f   : > { %3720 = vsyncadd (%p6019_p8), [#allocation6], 4294959104  ;;  %569 = vmatprep.mubr.bf16.mxu0 %v3750_v0  ;;  %762 = vmatprep.mubr.bf16.mxu1 %v3750_v0  ;;  %v3251_v3 = vld [vmem:[#allocation5] ss:$16 sps:$4 sm:$0xff]   ;;  %v3252_v4 = vld [vmem:[#allocation5 + $0x8] ss:$16 sps:$4 sm:$0xff]  }
  0x70   : > { %537 = vmatprep.subr.bf16.mxu0 %v3247_v1  ;;  %730 = vmatprep.subr.bf16.mxu1 %v3249_v2  ;;  %v3253_v5 = vld [vmem:[#allocation5 + $0x24] ss:$16 sps:$4 sm:$0xff]   ;;  %v3255_v6 = vld [vmem:[#allocation5 + $0x2c] ss:$16 sps:$4 sm:$0xff]   ;;  %v3257_v7 = vld [vmem:[#allocation5 + $0x20] ss:$16 sps:$4 sm:$0xff]  }
  0x71   : > { %538 = vmatpush1.bf16.msra.mxu0 %v3251_v3  ;;  %731 = vmatpush1.bf16.msra.mxu1 %v3252_v4  ;;  %v3258_v8 = vld [vmem:[#allocation5 + $0x28] ss:$16 sps:$4 sm:$0xff]   ;;  %v3259_v9 = vld [vmem:[#allocation5 + $0x44] ss:$16 sps:$4 sm:$0xff]   ;;  %v3261_v10 = vld [vmem:[#allocation5 + $0x4c] ss:$16 sps:$4 sm:$0xff]  }
  0x72   : > { %539 = vmatprep.subr.bf16.mxu0 %v3253_v5  ;;  %732 = vmatprep.subr.bf16.mxu1 %v3255_v6  ;;  %v3263_v11 = vld [vmem:[#allocation5 + $0x40] ss:$16 sps:$4 sm:$0xff]   ;;  %v3264_v12 = vld [vmem:[#allocation5 + $0x48] ss:$16 sps:$4 sm:$0xff]   ;;  %v3265_v13 = vld [vmem:[#allocation5 + $0x64] ss:$16 sps:$4 sm:$0xff]  }
  0x73   : > { %v3267_v14 = vld [vmem:[#allocation5 + $0x6c] ss:$16 sps:$4 sm:$0xff]   ;;  %v3269_v15 = vld [vmem:[#allocation5 + $0x60] ss:$16 sps:$4 sm:$0xff]   ;;  %v3270_v16 = vld [vmem:[#allocation5 + $0x68] ss:$16 sps:$4 sm:$0xff]  }
  0x74   : > { %v3271_v17 = vld [vmem:[#allocation5 + $0x84] ss:$16 sps:$4 sm:$0xff]   ;;  %v3273_v18 = vld [vmem:[#allocation5 + $0x8c] ss:$16 sps:$4 sm:$0xff]   ;;  %v3275_v19 = vld [vmem:[#allocation5 + $0x80] ss:$16 sps:$4 sm:$0xff]  }
  0x75   : > { %540 = vmatpush1.bf16.msra.mxu0 %v3257_v7  ;;  %733 = vmatpush1.bf16.msra.mxu1 %v3258_v8  ;;  %v3276_v20 = vld [vmem:[#allocation5 + $0x88] ss:$16 sps:$4 sm:$0xff]   ;;  %v3277_v21 = vld [vmem:[#allocation5 + $0xa4] ss:$16 sps:$4 sm:$0xff]   ;;  %v3279_v22 = vld [vmem:[#allocation5 + $0xac] ss:$16 sps:$4 sm:$0xff]  }
  0x76   : > { %541 = vmatprep.subr.bf16.mxu0 %v3259_v9  ;;  %734 = vmatprep.subr.bf16.mxu1 %v3261_v10  ;;  %v3281_v23 = vld [vmem:[#allocation5 + $0xa0] ss:$16 sps:$4 sm:$0xff]   ;;  %v3282_v24 = vld [vmem:[#allocation5 + $0xa8] ss:$16 sps:$4 sm:$0xff]   ;;  %v3283_v25 = vld [vmem:[#allocation5 + $0xc4] ss:$16 sps:$4 sm:$0xff]  }
  0x77   : > { %v3285_v26 = vld [vmem:[#allocation5 + $0xcc] ss:$16 sps:$4 sm:$0xff]   ;;  %v3287_v27 = vld [vmem:[#allocation5 + $0xc0] ss:$16 sps:$4 sm:$0xff]   ;;  %v3288_v28 = vld [vmem:[#allocation5 + $0xc8] ss:$16 sps:$4 sm:$0xff]  }
  0x78   : > { %v3289_v29 = vld [vmem:[#allocation5 + $0xe4] ss:$16 sps:$4 sm:$0xff]   ;;  %v3291_v30 = vld [vmem:[#allocation5 + $0xec] ss:$16 sps:$4 sm:$0xff]   ;;  %v3293_v31 = vld [vmem:[#allocation5 + $0xe0] ss:$16 sps:$4 sm:$0xff]  }
  0x79   : > { %542 = vmatpush1.bf16.msra.mxu0 %v3263_v11  ;;  %735 = vmatpush1.bf16.msra.mxu1 %v3264_v12  ;;  %v3294_v32 = vld [vmem:[#allocation5 + $0xe8] ss:$16 sps:$4 sm:$0xff]   ;;  %v275_v33 = vld [vmem:[%s3962_s6] sm:$0xff]  ;;  %v277_v39 = vld [vmem:[%s3962_s6 + $0x10] sm:$0xff]  ;;  %s2946_s13 = sshll.u32 %s3805_s22, 12  ;;  %s2770_s29 = sshll.u32 %s5829_s12, 4  ;;  %s5895_s29 = int_to_ptr.vmem [resolvable:$true] %s2770_s29 }
  0x7a   : > { %543 = vmatprep.subr.bf16.mxu0 %v3265_v13  ;;  %736 = vmatprep.subr.bf16.mxu1 %v3267_v14  ;;  %v276_v34 = vld [vmem:[%s3962_s6 + $0x8] sm:$0xff]  ;;  %v3295_v36 = vld [vmem:[#allocation7 + $0x40] sm:$0xff]   ;;  %v278_v40 = vld [vmem:[%s3962_s6 + $0x18] sm:$0xff]  ;;  %s5893_s11 = scalar_lea.hbm %s5946_s5, %s2946_s13  ;;  %s2757_s22 = scalar_lea.sflag [#allocation4], %s3956_s17 }
  0x7b   : > { %v307_v35 = vpack.c.bf16 %v276_v34, %v275_v33  ;;  %v3296_v37 = vld [vmem:[#allocation7] sm:$0xff]   ;;  %v3299_v42 = vld [vmem:[#allocation7 + $0x48] sm:$0xff]   ;;  %v308_v45 = vpack.c.bf16 %v278_v40, %v277_v39  ;;  %v3303_v47 = vld [vmem:[#allocation7 + $0x50] sm:$0xff]   ;;  %s3669_s14 = scalar_lea.vmem %s5895_s29, 4096  ;;  %p6368_p0 = scmp.ne.s32.totalorder %s6015_s30, 0 }
  0x7c   : > { %v3297_v38 = vld [vmem:[#allocation7 + $0xc0] sm:$0xff]   ;;  %v3300_v43 = vld [vmem:[#allocation7 + $0x8] sm:$0xff]   ;;  %v3304_v48 = vld [vmem:[#allocation7 + $0x10] sm:$0xff]   ;;  %p3670_p11 = scmp.ne.s32.totalorder %s5895_s29, %s3669_s14  ;;  %s3751_s15 = smov [#allocation8]  }
  0x7d   : > { %544 = vmatpush1.bf16.msra.mxu0 %v3269_v15  ;;  %737 = vmatpush1.bf16.msra.mxu1 %v3270_v16  ;;  %v3298_v41 = vld [vmem:[#allocation7 + $0x80] sm:$0xff]   ;;  %v3301_v44 = vld [vmem:[#allocation7 + $0xc8] sm:$0xff]   ;;  %v3305_v51 = vld [vmem:[#allocation7 + $0xd0] sm:$0xff]   ;;  %s3673_s23 = sshll.u32 %s3751_s15, 4  ;;  %s3674_s23 = int_to_ptr.vmem [resolvable:$false] %s3673_s23 }
  0x7e   : > { %545 = vmatprep.subr.bf16.mxu0 %v3271_v17  ;;  %738 = vmatprep.subr.bf16.mxu1 %v3273_v18  ;;  %v3302_v46 = vld [vmem:[#allocation7 + $0x88] sm:$0xff]   ;;  %v279_v49 = vld [vmem:[%s3962_s6 + $0x20] sm:$0xff]  ;;  %v3306_v52 = vld [vmem:[#allocation7 + $0x90] sm:$0xff]   ;;  %p3671_p1 = pnand %p3670_p11, %p6368_p0  ;;  %s3675_s7 = scalar_lea.vmem %s3674_s23, 8192 }
  0x7f   : > { %v280_v50 = vld [vmem:[%s3962_s6 + $0x28] sm:$0xff]  ;;  %v3307_v53 = vld [vmem:[#allocation7 + $0x58] sm:$0xff]   ;;  %v3311_v58 = vld [vmem:[#allocation7 + $0x60] sm:$0xff]   ;;  %p3676_p5 = scmp.lt.s32.totalorder %s5895_s29, %s3674_s23  ;;  %p3677_p9 = scmp.lt.s32.totalorder %s3675_s7, %s3669_s14 }
  0x80   : > { %v3308_v54 = vld [vmem:[#allocation7 + $0x18] sm:$0xff]   ;;  %v309_v56 = vpack.c.bf16 %v280_v50, %v279_v49  ;;  %v3312_v59 = vld [vmem:[#allocation7 + $0x20] sm:$0xff]   ;;  %v281_v60 = vld [vmem:[%s3962_s6 + $0x30] sm:$0xff]  ;;  %v357_v50 = vlaneseq  ;;  %p3672_p3 = pneg %p3671_p1 }
  0x81   : > { %546 = vmatpush1.bf16.msra.mxu0 %v3275_v19  ;;  %739 = vmatpush1.bf16.msra.mxu1 %v3276_v20  ;;  %v3309_v55 = vld [vmem:[#allocation7 + $0xd8] sm:$0xff]   ;;  %v3313_v62 = vld [vmem:[#allocation7 + $0xe0] sm:$0xff]   ;;  %v3315_v1 = vld [vmem:[#allocation7 + $0x68] sm:$0xff]   ;;  %p3678_p12 = por %p3677_p9, %p3676_p5 }
  0x82   : > { %547 = vmatprep.subr.bf16.mxu0 %v3277_v21  ;;  %740 = vmatprep.subr.bf16.mxu1 %v3279_v22  ;;  %v3310_v57 = vld [vmem:[#allocation7 + $0x98] sm:$0xff]   ;;  %v3314_v63 = vld [vmem:[#allocation7 + $0xa0] sm:$0xff]   ;;  %v3316_v2 = vld [vmem:[#allocation7 + $0x28] sm:$0xff]  }
  0x83   : > { %v282_v61 = vld [vmem:[%s3962_s6 + $0x38] sm:$0xff]  ;;  %v3317_v3 = vld [vmem:[#allocation7 + $0xe8] sm:$0xff]   ;;  %v283_v6 = vld [vmem:[%s3962_s6 + $0x40] sm:$0xff]  ;;  %p3679_p2 = pnand %p3678_p12, %p3672_p3 }
  0x84   : > { %v310_v4 = vpack.c.bf16 %v282_v61, %v281_v60  ;;  %v3318_v5 = vld [vmem:[#allocation7 + $0xa8] sm:$0xff]   ;;  %v285_v9 = vld [vmem:[%s3962_s6 + $0x50] sm:$0xff]  ;;  %v286_v10 = vld [vmem:[%s3962_s6 + $0x58] sm:$0xff] }
  0x85   : > { %548 = vmatpush1.bf16.msra.mxu0 %v3281_v23  ;;  %741 = vmatpush1.bf16.msra.mxu1 %v3282_v24  ;;  %v284_v7 = vld [vmem:[%s3962_s6 + $0x48] sm:$0xff]  ;;  %v312_v11 = vpack.c.bf16 %v286_v10, %v285_v9  ;;  %v287_v12 = vld [vmem:[%s3962_s6 + $0x60] sm:$0xff]  ;;  %v289_v15 = vld [vmem:[%s3962_s6 + $0x70] sm:$0xff] }
  0x86   : > { %549 = vmatprep.subr.bf16.mxu0 %v3283_v25  ;;  %742 = vmatprep.subr.bf16.mxu1 %v3285_v26  ;;  %v311_v8 = vpack.c.bf16 %v284_v7, %v283_v6  ;;  %v288_v13 = vld [vmem:[%s3962_s6 + $0x68] sm:$0xff]  ;;  %v290_v16 = vld [vmem:[%s3962_s6 + $0x78] sm:$0xff]  ;;  %v291_v18 = vld [vmem:[%s3962_s6 + $0x80] sm:$0xff] }
  0x87   : > { %v313_v14 = vpack.c.bf16 %v288_v13, %v287_v12  ;;  %v314_v17 = vpack.c.bf16 %v290_v16, %v289_v15  ;;  %v292_v19 = vld [vmem:[%s3962_s6 + $0x88] sm:$0xff]  ;;  %v293_v21 = vld [vmem:[%s3962_s6 + $0x90] sm:$0xff]  ;;  %v294_v22 = vld [vmem:[%s3962_s6 + $0x98] sm:$0xff] }
  0x88   : > { %v315_v20 = vpack.c.bf16 %v292_v19, %v291_v18  ;;  %v316_v23 = vpack.c.bf16 %v294_v22, %v293_v21  ;;  %v295_v24 = vld [vmem:[%s3962_s6 + $0xa0] sm:$0xff]  ;;  %v296_v25 = vld [vmem:[%s3962_s6 + $0xa8] sm:$0xff]  ;;  %v301_v33 = vld [vmem:[%s3962_s6 + $0xd0] sm:$0xff] }
  0x89   : > { %550 = vmatpush1.bf16.msra.mxu0 %v3287_v27  ;;  %743 = vmatpush1.bf16.msra.mxu1 %v3288_v28  ;;  %v317_v26 = vpack.c.bf16 %v296_v25, %v295_v24  ;;  %v297_v27 = vld [vmem:[%s3962_s6 + $0xb0] sm:$0xff]  ;;  %v298_v28 = vld [vmem:[%s3962_s6 + $0xb8] sm:$0xff] }
  0x8a   : > { %551 = vmatprep.subr.bf16.mxu0 %v3289_v29  ;;  %744 = vmatprep.subr.bf16.mxu1 %v3291_v30  ;;  %v318_v29 = vpack.c.bf16 %v298_v28, %v297_v27  ;;  %v299_v30 = vld [vmem:[%s3962_s6 + $0xc0] sm:$0xff]  ;;  %v302_v34 = vld [vmem:[%s3962_s6 + $0xd8] sm:$0xff]  ;;  %v3319_v39 = vld [vmem:[#allocation7 + $0x70] sm:$0xff]  }
  0x8b   : > { %v3320_v40 = vld [vmem:[#allocation7 + $0x30] sm:$0xff]   ;;  %v3326_v49 = vld [vmem:[#allocation7 + $0xb8] sm:$0xff]  }
  0x8d   : > { %552 = vmatpush1.bf16.msra.mxu0 %v3293_v31  ;;  %745 = vmatpush1.bf16.msra.mxu1 %v3294_v32  ;;  %v300_v31 = vld [vmem:[%s3962_s6 + $0xc8] sm:$0xff] }
  0x8e   : > { %2947 = vmatprep.subr.bf16.mxu0 %v3295_v36  ;;  %3059 = vmatprep.subr.bf16.mxu1 %v3297_v38  ;;  %v319_v32 = vpack.c.bf16 %v300_v31, %v299_v30  ;;  %v303_v36 = vld [vmem:[%s3962_s6 + $0xe0] sm:$0xff] }
  0x90   : > { %570 = vmatmul.mubr.bf16.vlgmr.msra.gmra.mrb[0].mxu0 %v307_v35  ;;  %763 = vmatmul.mubr.bf16.vlgmr.msra.gmra.mrb[0].mxu1 %v307_v35  ;;  %v320_v35 = vpack.c.bf16 %v302_v34, %v301_v33 }
  0x91   : > { %579 = vmatprep.mubr.bf16.mxu0 %v3750_v0  ;;  %772 = vmatprep.mubr.bf16.mxu1 %v3750_v0 }
  0x92   : > { %2948 = vmatpush3.bf16.msra.mxu0 %v3296_v37  ;;  %3060 = vmatpush3.bf16.msra.mxu1 %v3298_v41  ;;  %v304_v37 = vld [vmem:[%s3962_s6 + $0xe8] sm:$0xff]  ;;  %v3321_v41 = vld [vmem:[#allocation7 + $0xf0] sm:$0xff]  }
  0x93   : > { %2949 = vmatprep.subr.bf16.mxu0 %v3299_v42  ;;  %3061 = vmatprep.subr.bf16.mxu1 %v3301_v44  ;;  %v321_v38 = vpack.c.bf16 %v304_v37, %v303_v36  ;;  %v3322_v42 = vld [vmem:[#allocation7 + $0xb0] sm:$0xff]   ;;  %v306_v44 = vld [vmem:[%s3962_s6 + $0xf8] sm:$0xff] }
  0x96   : > { %2950 = vmatpush3.bf16.msra.mxu0 %v3300_v43  ;;  %3062 = vmatpush3.bf16.msra.mxu1 %v3302_v46  ;;  %v305_v43 = vld [vmem:[%s3962_s6 + $0xf0] sm:$0xff]  ;;  %v3323_v46 = vld [vmem:[#allocation7 + $0x78] sm:$0xff]  }
  0x97   : > { %2951 = vmatprep.subr.bf16.mxu0 %v3303_v47  ;;  %3063 = vmatprep.subr.bf16.mxu1 %v3305_v51  ;;  %v3324_v47 = vld [vmem:[#allocation7 + $0x38] sm:$0xff]   ;;  %v358_v51 = vshrl.u32 %v357_v50, 7 }
  0x98   : > { %580 = vmatmul.mubr.bf16.gmra.mrb[4].mxu0 %v308_v45  ;;  %773 = vmatmul.mubr.bf16.gmra.mrb[4].mxu1 %v308_v45  ;;  %v322_v45 = vpack.c.bf16 %v306_v44, %v305_v43 }
  0x99   : > { %589 = vmatprep.mubr.bf16.mxu0 %v3750_v0  ;;  %782 = vmatprep.mubr.bf16.mxu1 %v3750_v0 }
  0x9a   : > { %2952 = vmatpush3.bf16.msra.mxu0 %v3304_v48  ;;  %3064 = vmatpush3.bf16.msra.mxu1 %v3306_v52  ;;  %v3325_v48 = vld [vmem:[#allocation7 + $0xf8] sm:$0xff]   ;;  %v359_v52 = vsub.s32 0, %v358_v51 }
  0x9b   : > { %2953 = vmatprep.subr.bf16.mxu0 %v3307_v53  ;;  %3065 = vmatprep.subr.bf16.mxu1 %v3309_v55  ;;  %v355_v53 = vld [vmem:[%s5943_s2] sm:$0xf]  ;;  %v371_v55 = vsub.s32 3, %v358_v51 }
  0x9e   : > { %2954 = vmatpush3.bf16.msra.mxu0 %v3308_v54  ;;  %3066 = vmatpush3.bf16.msra.mxu1 %v3310_v57  ;;  %v363_v54 = vsub.s32 1, %v358_v51 }
  0x9f   : > { %2955 = vmatprep.subr.bf16.mxu0 %v3311_v58  ;;  %3067 = vmatprep.subr.bf16.mxu1 %v3313_v62 }
  0xa0   : > { %590 = vmatmul.mubr.bf16.gmra.mrb[8].mxu0 %v309_v56  ;;  %783 = vmatmul.mubr.bf16.gmra.mrb[8].mxu1 %v309_v56  ;;  %v4039_v56 = vrot.slane %v355_v53, %v359_v52  ;;  %v4043_v58 = vrot.slane %v355_v53, %v363_v54 }
  0xa1   : > { %599 = vmatprep.mubr.bf16.mxu0 %v3750_v0  ;;  %792 = vmatprep.mubr.bf16.mxu1 %v3750_v0 }
  0xa2   : > { %2956 = vmatpush3.bf16.msra.mxu0 %v3312_v59  ;;  %3068 = vmatpush3.bf16.msra.mxu1 %v3314_v63  ;;  %v4045_v59 = vrot.slane %v355_v53, %v371_v55 }
  0xa3   : > { %2957 = vmatprep.subr.bf16.mxu0 %v3315_v1  ;;  %3069 = vmatprep.subr.bf16.mxu1 %v3317_v3 }
  0xa6   : > { %2958 = vmatpush3.bf16.msra.mxu0 %v3316_v2  ;;  %3070 = vmatpush3.bf16.msra.mxu1 %v3318_v5 }
  0xa7   : > { %2959 = vmatprep.subr.bf16.mxu0 %v3319_v39  ;;  %3071 = vmatprep.subr.bf16.mxu1 %v3321_v41 }
  0xa8   : > { %600 = vmatmul.mubr.bf16.gmra.mrb[12].mxu0 %v310_v4  ;;  %793 = vmatmul.mubr.bf16.gmra.mrb[12].mxu1 %v310_v4 }
  0xa9   : > { %609 = vmatprep.mubr.bf16.mxu0 %v3750_v0  ;;  %802 = vmatprep.mubr.bf16.mxu1 %v3750_v0 }
  0xaa   : > { %2960 = vmatpush3.bf16.msra.mxu0 %v3320_v40  ;;  %3072 = vmatpush3.bf16.msra.mxu1 %v3322_v42 }
  0xab   : > { %2961 = vmatprep.subr.bf16.mxu0 %v3323_v46  ;;  %3073 = vmatprep.subr.bf16.mxu1 %v3325_v48 }
  0xae   : > { %2962 = vmatpush3.bf16.msra.mxu0 %v3324_v47  ;;  %3074 = vmatpush3.bf16.msra.mxu1 %v3326_v49 }
  0xb0   : > { %610 = vmatmul.mubr.bf16.gmra.mrb[16].mxu0 %v311_v8  ;;  %803 = vmatmul.mubr.bf16.gmra.mrb[16].mxu1 %v311_v8 }
  0xb1   : > { %619 = vmatprep.mubr.bf16.mxu0 %v3750_v0  ;;  %812 = vmatprep.mubr.bf16.mxu1 %v3750_v0 }
  0xb8   : > { %620 = vmatmul.mubr.bf16.gmra.mrb[20].mxu0 %v312_v11  ;;  %813 = vmatmul.mubr.bf16.gmra.mrb[20].mxu1 %v312_v11 }
  0xb9   : > { %629 = vmatprep.mubr.bf16.mxu0 %v3750_v0  ;;  %822 = vmatprep.mubr.bf16.mxu1 %v3750_v0 }
  0xc0   : > { %630 = vmatmul.mubr.bf16.gmra.mrb[24].mxu0 %v313_v14  ;;  %823 = vmatmul.mubr.bf16.gmra.mrb[24].mxu1 %v313_v14 }
  0xc1   : > { %639 = vmatprep.mubr.bf16.mxu0 %v3750_v0  ;;  %832 = vmatprep.mubr.bf16.mxu1 %v3750_v0 }
  0xc8   : > { %640 = vmatmul.mubr.bf16.gmra.mrb[28].mxu0 %v314_v17  ;;  %833 = vmatmul.mubr.bf16.gmra.mrb[28].mxu1 %v314_v17 }
  0xc9   : > { %649 = vmatprep.mubr.bf16.mxu0 %v3750_v0  ;;  %842 = vmatprep.mubr.bf16.mxu1 %v3750_v0 }
  0xd0   : > { %650 = vmatmul.mubr.bf16.gmra.mrb[32].mxu0 %v315_v20  ;;  %843 = vmatmul.mubr.bf16.gmra.mrb[32].mxu1 %v315_v20 }
  0xd1   : > { %659 = vmatprep.mubr.bf16.mxu0 %v3750_v0  ;;  %852 = vmatprep.mubr.bf16.mxu1 %v3750_v0 }
  0xd8   : > { %660 = vmatmul.mubr.bf16.gmra.mrb[36].mxu0 %v316_v23  ;;  %853 = vmatmul.mubr.bf16.gmra.mrb[36].mxu1 %v316_v23 }
  0xd9   : > { %669 = vmatprep.mubr.bf16.mxu0 %v3750_v0  ;;  %862 = vmatprep.mubr.bf16.mxu1 %v3750_v0 }
  0xe0   : > { %670 = vmatmul.mubr.bf16.gmra.mrb[40].mxu0 %v317_v26  ;;  %863 = vmatmul.mubr.bf16.gmra.mrb[40].mxu1 %v317_v26 }
  0xe1   : > { %679 = vmatprep.mubr.bf16.mxu0 %v3750_v0  ;;  %872 = vmatprep.mubr.bf16.mxu1 %v3750_v0 }
  0xe8   : > { %680 = vmatmul.mubr.bf16.gmra.mrb[44].mxu0 %v318_v29  ;;  %873 = vmatmul.mubr.bf16.gmra.mrb[44].mxu1 %v318_v29 }
  0xe9   : > { %689 = vmatprep.mubr.bf16.mxu0 %v3750_v0  ;;  %882 = vmatprep.mubr.bf16.mxu1 %v3750_v0 }
  0xf0   : > { %690 = vmatmul.mubr.bf16.gmra.mrb[48].mxu0 %v319_v32  ;;  %883 = vmatmul.mubr.bf16.gmra.mrb[48].mxu1 %v319_v32 }
  0xf1   : > { %699 = vmatprep.mubr.bf16.mxu0 %v3750_v0  ;;  %892 = vmatprep.mubr.bf16.mxu1 %v3750_v0 }
  0xf8   : > { %700 = vmatmul.mubr.bf16.gmra.mrb[52].mxu0 %v320_v35  ;;  %893 = vmatmul.mubr.bf16.gmra.mrb[52].mxu1 %v320_v35 }
  0xf9   : > { %709 = vmatprep.mubr.bf16.mxu0 %v3750_v0  ;;  %902 = vmatprep.mubr.bf16.mxu1 %v3750_v0 }
 0x100   : > { %710 = vmatmul.mubr.bf16.gmra.mrb[56].mxu0 %v321_v38  ;;  %903 = vmatmul.mubr.bf16.gmra.mrb[56].mxu1 %v321_v38 }
 0x101   : > { %719 = vmatprep.mubr.bf16.mxu0 %v3750_v0  ;;  %912 = vmatprep.mubr.bf16.mxu1 %v3750_v0  ;;  %v367_v0 = vsub.s32 2, %v358_v51 }
 0x103   : > { %v4041_v57 = vrot.slane %v355_v53, %v367_v0 }
 0x108   : > { %720 = vmatmul.mubr.bf16.gmra.mrb[60].mxu0 %v322_v45  ;;  %913 = vmatmul.mubr.bf16.gmra.mrb[60].mxu1 %v322_v45 }
 0x163   : > { %v571_v60 = vpop.f32.mrb[0].mxu0  ;;  %v764_v61 = vpop.f32.mrb[0].mxu1 }
 0x164   : > { %v572_v62 = vadd.f32 %v571_v60, %v4039_v56  ;;  %v765_v63 = vadd.f32 %v764_v61, %v4041_v57  ;;  %v573_v1 = vpop.f32.mrb[1].mxu0  ;;  %v766_v2 = vpop.f32.mrb[1].mxu1 }
 0x165   : > { %v4050_v3 = vadd.f32 %v573_v1, %v4043_v58  ;;  %v4053_v4 = vadd.f32 %v766_v2, %v4045_v59  ;;  %v575_v5 = vpop.f32.mrb[2].mxu0  ;;  %v768_v6 = vpop.f32.mrb[2].mxu1 }
 0x166   : > { %v4055_v7 = vmul.f32 0.5, %v572_v62  ;;  %v1051_v8 = vmul.f32 %v572_v62, %v572_v62  ;;  %v4057_v9 = vmul.f32 0.5, %v765_v63  ;;  %v1053_v10 = vmul.f32 %v765_v63, %v765_v63  ;;  %v577_v11 = vpop.f32.mrb[3].mxu0  ;;  %v770_v12 = vpop.f32.mrb[3].mxu1 }
 0x167   : > { %v1052_v13 = vmul.f32 %v4050_v3, %v4050_v3  ;;  %v1054_v14 = vmul.f32 %v4053_v4, %v4053_v4  ;;  %v576_v15 = vadd.f32 %v575_v5, %v4039_v56  ;;  %v769_v16 = vadd.f32 %v768_v6, %v4041_v57 }
 0x168   : > { %v1179_v17 = vmul.f32 %v1051_v8, %v572_v62  ;;  %v1181_v18 = vmul.f32 %v1053_v10, %v765_v63  ;;  %v4066_v19 = vadd.f32 %v577_v11, %v4043_v58  ;;  %v4069_v20 = vadd.f32 %v770_v12, %v4045_v59 }
 0x169   : > { %v1180_v21 = vmul.f32 %v1052_v13, %v4050_v3  ;;  %v1182_v22 = vmul.f32 %v1054_v14, %v4053_v4  ;;  %v4073_v23 = vmul.f32 0.5, %v576_v15  ;;  %v1055_v24 = vmul.f32 %v576_v15, %v576_v15 }
 0x16a   : > { %v1307_v25 = vmul.f32 0.044715, %v1179_v17  ;;  %v1309_v26 = vmul.f32 0.044715, %v1181_v18  ;;  %v4075_v27 = vmul.f32 0.5, %v769_v16  ;;  %v1057_v28 = vmul.f32 %v769_v16, %v769_v16 }
 0x16b   : > { %v1308_v29 = vmul.f32 0.044715, %v1180_v21  ;;  %v1310_v30 = vmul.f32 0.044715, %v1182_v22  ;;  %v1183_v31 = vmul.f32 %v1055_v24, %v576_v15  ;;  %v1056_v32 = vmul.f32 %v4066_v19, %v4066_v19  ;;  %v581_v33 = vpop.f32.mrb[4].mxu0  ;;  %v774_v34 = vpop.f32.mrb[4].mxu1 }
 0x16c   : > { %v1435_v35 = vadd.f32 %v1307_v25, %v572_v62  ;;  %v1437_v36 = vadd.f32 %v1309_v26, %v765_v63  ;;  %v1185_v37 = vmul.f32 %v1057_v28, %v769_v16  ;;  %v1058_v38 = vmul.f32 %v4069_v20, %v4069_v20  ;;  %v583_v39 = vpop.f32.mrb[5].mxu0  ;;  %v776_v40 = vpop.f32.mrb[5].mxu1 }
 0x16d   : > { %v1436_v41 = vadd.f32 %v1308_v29, %v4050_v3  ;;  %v1438_v42 = vadd.f32 %v1310_v30, %v4053_v4  ;;  %v1311_v43 = vmul.f32 0.044715, %v1183_v31  ;;  %v1184_v44 = vmul.f32 %v1056_v32, %v4066_v19  ;;  %v585_v45 = vpop.f32.mrb[6].mxu0  ;;  %v778_v46 = vpop.f32.mrb[6].mxu1 }
 0x16e   : > { %v1563_v47 = vmul.f32 0.7978846, %v1435_v35  ;;  %v1565_v48 = vmul.f32 0.7978846, %v1437_v36  ;;  %v1313_v49 = vmul.f32 0.044715, %v1185_v37  ;;  %v1186_v50 = vmul.f32 %v1058_v38, %v4069_v20 }
 0x16f   : > { %v1564_v51 = vmul.f32 0.7978846, %v1436_v41  ;;  %v1566_v52 = vmul.f32 0.7978846, %v1438_v42  ;;  %v1439_v0 = vadd.f32 %v1311_v43, %v576_v15  ;;  %v1312_v53 = vmul.f32 0.044715, %v1184_v44 }
 0x170   : > { %3327 = vtanh.f32 %v1563_v47  ;;  %v1441_v54 = vadd.f32 %v1313_v49, %v769_v16  ;;  %v1314_v55 = vmul.f32 0.044715, %v1186_v50  ;;  %v4086_v60 = vadd.f32 %v581_v33, %v4039_v56  ;;  %v587_v61 = vpop.f32.mrb[7].mxu0  ;;  %v780_v62 = vpop.f32.mrb[7].mxu1 }
 0x171   : > { %3329 = vtanh.f32 %v1565_v48  ;;  %v1567_v63 = vmul.f32 0.7978846, %v1439_v0  ;;  %v1440_v1 = vadd.f32 %v1312_v53, %v4066_v19  ;;  %v4090_v2 = vadd.f32 %v774_v34, %v4041_v57 }
 0x172   : > { %3331 = vtanh.f32 %v1564_v51  ;;  %v1569_v5 = vmul.f32 0.7978846, %v1441_v54  ;;  %v1442_v6 = vadd.f32 %v1314_v55, %v4069_v20  ;;  %v1059_v8 = vmul.f32 %v4086_v60, %v4086_v60 }
 0x173   : > { %6020 = vst [vmem:[#allocation12_spill] sm:$0xff] %v4090_v2  ;;  %3333 = vtanh.f32 %v1566_v52  ;;  %v1568_v10 = vmul.f32 0.7978846, %v1440_v1  ;;  %v1061_v11 = vmul.f32 %v4090_v2, %v4090_v2  ;;  %v4098_v12 = vadd.f32 %v583_v39, %v4043_v58  ;;  %v4100_v13 = vpop.f32.mrb[8].mxu0  ;;  %v4102_v14 = vpop.f32.mrb[8].mxu1 }
 0x174   : > { %3335 = vtanh.f32 %v1567_v63  ;;  %v1570_v15 = vmul.f32 0.7978846, %v1442_v6  ;;  %v1187_v16 = vmul.f32 %v1059_v8, %v4086_v60  ;;  %v4106_v17 = vadd.f32 %v776_v40, %v4045_v59  ;;  %v4108_v18 = vpop.f32.mrb[9].mxu0  ;;  %v4110_v21 = vpop.f32.mrb[9].mxu1 }
 0x175   : > { %3337 = vtanh.f32 %v1569_v5  ;;  %v1189_v22 = vmul.f32 %v1061_v11, %v4090_v2  ;;  %v1060_v24 = vmul.f32 %v4098_v12, %v4098_v12  ;;  %v4116_v25 = vadd.f32 %v585_v45, %v4039_v56  ;;  %v4118_v26 = vpop.f32.mrb[10].mxu0  ;;  %v4120_v28 = vpop.f32.mrb[10].mxu1 }
 0x176   : > { %3339 = vtanh.f32 %v1568_v10  ;;  %v1315_v29 = vmul.f32 0.044715, %v1187_v16  ;;  %v1062_v30 = vmul.f32 %v4106_v17, %v4106_v17  ;;  %v4125_v31 = vadd.f32 %v778_v46, %v4041_v57  ;;  %v4127_v32 = vpop.f32.mrb[11].mxu0  ;;  %v4129_v33 = vpop.f32.mrb[11].mxu1 }
 0x177   : > { %6021 = vst [vmem:[#allocation13_spill] sm:$0xff] %v4116_v25  ;;  %3341 = vtanh.f32 %v1570_v15  ;;  %v1317_v34 = vmul.f32 0.044715, %v1189_v22  ;;  %v1188_v35 = vmul.f32 %v1060_v24, %v4098_v12  ;;  %v1063_v36 = vmul.f32 %v4116_v25, %v4116_v25 }
 0x178   : > { %6022 = vst [vmem:[#allocation14_spill] sm:$0xff] %v4125_v31  ;;  %v1443_v37 = vadd.f32 %v1315_v29, %v4086_v60  ;;  %v1190_v38 = vmul.f32 %v1062_v30, %v4106_v17  ;;  %v1065_v39 = vmul.f32 %v4125_v31, %v4125_v31  ;;  %v4139_v40 = vadd.f32 %v587_v61, %v4043_v58 }
 0x179   : > { %v1445_v41 = vadd.f32 %v1317_v34, %v4090_v2  ;;  %v1316_v42 = vmul.f32 0.044715, %v1188_v35  ;;  %v1191_v43 = vmul.f32 %v1063_v36, %v4116_v25  ;;  %v4144_v44 = vadd.f32 %v780_v62, %v4045_v59 }
 0x17a   : > { %v3328_v45 = vpop.eup %3327  ;;  %v1571_v46 = vmul.f32 0.7978846, %v1443_v37  ;;  %v1318_v47 = vmul.f32 0.044715, %v1190_v38  ;;  %v1193_v48 = vmul.f32 %v1065_v39, %v4125_v31  ;;  %v1064_v49 = vmul.f32 %v4139_v40, %v4139_v40 }
 0x17b   : > { %v3330_v50 = vpop.eup %3329  ;;  %v1819_v51 = vadd.f32 1.0, %v3328_v45  ;;  %v1573_v52 = vmul.f32 0.7978846, %v1445_v41  ;;  %v1444_v0 = vadd.f32 %v1316_v42, %v4098_v12  ;;  %v1319_v53 = vmul.f32 0.044715, %v1191_v43  ;;  %v4150_v54 = vpop.f32.mrb[12].mxu0 }
 0x17c   : > { %v4152_v55 = vpop.eup %3331  ;;  %v1821_v61 = vadd.f32 1.0, %v3330_v50  ;;  %3343 = vtanh.f32 %v1571_v46  ;;  %v1446_v62 = vadd.f32 %v1318_v47, %v4106_v17  ;;  %v1321_v63 = vmul.f32 0.044715, %v1193_v48  ;;  %v4155_v1 = vpop.f32.mrb[12].mxu1 }
 0x17d   : > { %v4157_v5 = vpop.f32.mrb[13].mxu0  ;;  %v4159_v6 = vpop.eup %3333  ;;  %v4162_v8 = vmul.f32 %v1819_v51, %v4055_v7  ;;  %3345 = vtanh.f32 %v1573_v52  ;;  %v1572_v10 = vmul.f32 0.7978846, %v1444_v0  ;;  %v1447_v11 = vadd.f32 %v1319_v53, %v4116_v25 }
 0x17e   : > { %v4165_v15 = vpop.f32.mrb[13].mxu1  ;;  %v4167_v16 = vpop.f32.mrb[14].mxu0  ;;  %v4170_v24 = vmul.f32 %v1821_v61, %v4057_v9  ;;  %v1574_v29 = vmul.f32 0.7978846, %v1446_v62  ;;  %v1449_v30 = vadd.f32 %v1321_v63, %v4125_v31  ;;  %v1192_v34 = vmul.f32 %v1064_v49, %v4139_v40 }
 0x17f   : > { %v3336_v22 = vpop.eup %3335  ;;  %v4174_v35 = vpop.f32.mrb[14].mxu1  ;;  %3347 = vtanh.f32 %v1572_v10  ;;  %v1575_v38 = vmul.f32 0.7978846, %v1447_v11  ;;  %v1066_v39 = vmul.f32 %v4144_v44, %v4144_v44  ;;  %v4192_v49 = vadd.f32 %v4100_v13, %v4039_v56 }
 0x180   : > { %v4176_v7 = vpop.f32.mrb[15].mxu0  ;;  %v3338_v36 = vpop.eup %3337  ;;  %v1823_v37 = vadd.f32 1.0, %v3336_v22  ;;  %3349 = vtanh.f32 %v1574_v29  ;;  %v1577_v43 = vmul.f32 0.7978846, %v1449_v30  ;;  %v1320_v45 = vmul.f32 0.044715, %v1192_v34 }
 0x181   : > { %v4180_v41 = vpop.f32.mrb[15].mxu1  ;;  %v4182_v9 = vpop.eup %3339  ;;  %v1825_v42 = vadd.f32 1.0, %v3338_v36  ;;  %3351 = vtanh.f32 %v1575_v38  ;;  %v1194_v48 = vmul.f32 %v1066_v39, %v4144_v44  ;;  %6023 = vst [vmem:[#allocation15_spill] sm:$0xff] %v4192_v49  ;;  %v4200_v52 = vadd.f32 %v4102_v14, %v4041_v57 }
 0x182   : > { %v4184_v46 = vpop.eup %3341  ;;  %v4187_v47 = vmul.f32 %v1823_v37, %v4073_v23  ;;  %3353 = vtanh.f32 %v1577_v43  ;;  %v1448_v51 = vadd.f32 %v1320_v45, %v4139_v40  ;;  %v1067_v23 = vmul.f32 %v4192_v49, %v4192_v49 }
 0x183   : > { %v4195_v50 = vmul.f32 %v1825_v42, %v4075_v27  ;;  %6024 = vst [vmem:[#allocation16_spill] sm:$0xff] %v4200_v52  ;;  %v1322_v0 = vmul.f32 0.044715, %v1194_v48  ;;  %v4206_v53 = vadd.f32 %v4108_v18, %v4043_v58  ;;  %v4210_v13 = vadd.f32 %v4110_v21, %v4045_v59  ;;  %v4212_v27 = vpop.f32.mrb[16].mxu0  ;;  %v4214_v61 = vpop.f32.mrb[16].mxu1 }
 0x184   : > { %v1576_v62 = vmul.f32 0.7978846, %v1448_v51  ;;  %v1069_v14 = vmul.f32 %v4200_v52, %v4200_v52  ;;  %v4220_v63 = vadd.f32 %v4118_v26, %v4039_v56  ;;  %v4224_v18 = vadd.f32 %v4120_v28, %v4041_v57  ;;  %v4226_v10 = vpop.f32.mrb[17].mxu0  ;;  %v4228_v21 = vpop.f32.mrb[17].mxu1 }
 0x185   : > { %6025 = vst [vmem:[#allocation17_spill] sm:$0xff] %v4206_v53  ;;  %6026 = vst [vmem:[#allocation18_spill] sm:$0xff] %v4210_v13  ;;  %v1450_v11 = vadd.f32 %v1322_v0, %v4144_v44  ;;  %v1195_v22 = vmul.f32 %v1067_v23, %v4192_v49  ;;  %v1068_v29 = vmul.f32 %v4206_v53, %v4206_v53  ;;  %v4236_v26 = vpop.f32.mrb[18].mxu0  ;;  %v4238_v34 = vpop.f32.mrb[18].mxu1 }
 0x186   : > { %6027 = vst [vmem:[#allocation19_spill] sm:$0xff] %v4220_v63  ;;  %6028 = vst [vmem:[#allocation20_spill] sm:$0xff] %v4224_v18  ;;  %v1070_v30 = vmul.f32 %v4210_v13, %v4210_v13  ;;  %v4240_v28 = vpop.eup %3343  ;;  %3355 = vtanh.f32 %v1576_v62  ;;  %v1197_v36 = vmul.f32 %v1069_v14, %v4200_v52  ;;  %v1071_v37 = vmul.f32 %v4220_v63, %v4220_v63  ;;  %v4247_v39 = vpop.f32.mrb[19].mxu0 }
 0x187   : > { %6029 = vst [vmem:[#allocation21_spill] sm:$0xff] %v4240_v28  ;;  %v1073_v38 = vmul.f32 %v4224_v18, %v4224_v18  ;;  %v4249_v42 = vpop.f32.mrb[19].mxu1  ;;  %v4251_v43 = vpop.eup %3345  ;;  %v1578_v45 = vmul.f32 0.7978846, %v1450_v11  ;;  %v1323_v48 = vmul.f32 0.044715, %v1195_v22  ;;  %v1196_v51 = vmul.f32 %v1068_v29, %v4206_v53 }
 0x188   : > { %6030 = vst [vmem:[#allocation22_spill] sm:$0xff] %v4251_v43  ;;  %v1198_v0 = vmul.f32 %v1070_v30, %v4210_v13  ;;  %v1325_v23 = vmul.f32 0.044715, %v1197_v36  ;;  %v1199_v62 = vmul.f32 %v1071_v37, %v4220_v63  ;;  %v4259_v31 = vadd.f32 %v4127_v32, %v4043_v58 }
 0x189   : > { %v1201_v14 = vmul.f32 %v1073_v38, %v4224_v18  ;;  %v4261_v2 = vpop.eup %3347  ;;  %3357 = vtanh.f32 %v1578_v45  ;;  %v1451_v43 = vadd.f32 %v1323_v48, %v4192_v49  ;;  %v1324_v11 = vmul.f32 0.044715, %v1196_v51 }
 0x18a   : > { %6031 = vst [vmem:[#allocation23_spill] sm:$0xff] %v4259_v31  ;;  %v1326_v22 = vmul.f32 0.044715, %v1198_v0  ;;  %v4264_v28 = vpop.eup %3349  ;;  %v1453_v29 = vadd.f32 %v1325_v23, %v4200_v52  ;;  %v1327_v30 = vmul.f32 0.044715, %v1199_v62  ;;  %v1072_v37 = vmul.f32 %v4259_v31, %v4259_v31 }
 0x18b   : > { %v1329_v36 = vmul.f32 0.044715, %v1201_v14  ;;  %v4269_v38 = vpop.eup %3351  ;;  %v1579_v32 = vmul.f32 0.7978846, %v1451_v43  ;;  %v1452_v25 = vadd.f32 %v1324_v11, %v4206_v53  ;;  %v4275_v48 = vadd.f32 %v4129_v33, %v4045_v59  ;;  %v4277_v51 = vpop.f32.mrb[20].mxu0 }
 0x18c   : > { %6032 = vst [vmem:[#allocation24_spill] sm:$0xff] %v4269_v38  ;;  %v1454_v45 = vadd.f32 %v1326_v22, %v4210_v13  ;;  %v4279_v0 = vpop.f32.mrb[20].mxu1  ;;  %v4281_v23 = vpop.eup %3353  ;;  %v1581_v62 = vmul.f32 0.7978846, %v1453_v29  ;;  %v1455_v14 = vadd.f32 %v1327_v30, %v4220_v63  ;;  %v1200_v43 = vmul.f32 %v1072_v37, %v4259_v31 }
 0x18d   : > { %6033 = vst [vmem:[#allocation25_spill] sm:$0xff] %v4275_v48  ;;  %6034 = vst [vmem:[#allocation26_spill] sm:$0xff] %v4281_v23  ;;  %v1457_v52 = vadd.f32 %v1329_v36, %v4224_v18  ;;  %v4286_v11 = vpop.f32.mrb[21].mxu0  ;;  %v4288_v22 = vpop.f32.mrb[21].mxu1  ;;  %3359 = vtanh.f32 %v1579_v32  ;;  %v1580_v33 = vmul.f32 0.7978846, %v1452_v25  ;;  %v1074_v13 = vmul.f32 %v4275_v48, %v4275_v48 }
 0x18e   : > { %v1582_v49 = vmul.f32 0.7978846, %v1454_v45  ;;  %v4292_v53 = vpop.f32.mrb[22].mxu0  ;;  %v4294_v23 = vpop.f32.mrb[22].mxu1  ;;  %3361 = vtanh.f32 %v1581_v62  ;;  %v1583_v29 = vmul.f32 0.7978846, %v1455_v14  ;;  %v4299_v18 = vadd.f32 %v4150_v54, %v4039_v56 }
 0x18f   : > { %v1585_v30 = vmul.f32 0.7978846, %v1457_v52  ;;  %v1328_v36 = vmul.f32 0.044715, %v1200_v43  ;;  %3363 = vtanh.f32 %v1580_v33  ;;  %v1202_v37 = vmul.f32 %v1074_v13, %v4275_v48  ;;  %v4305_v32 = vpop.f32.mrb[23].mxu0  ;;  %v4307_v45 = vpop.f32.mrb[23].mxu1 }
 0x190   : > { %6035 = vst [vmem:[#allocation27_spill] sm:$0xff] %v4299_v18  ;;  %v4303_v25 = vadd.f32 %v4155_v1, %v4041_v57  ;;  %6037 = vst [vmem:[#allocation29_spill] sm:$0xff] %v4305_v32  ;;  %v4309_v63 = vpop.eup %3355  ;;  %3365 = vtanh.f32 %v1582_v49  ;;  %v4314_v13 = vadd.f32 %v4157_v5, %v4043_v58  ;;  %v4318_v54 = vadd.f32 %v4165_v15, %v4045_v59 }
 0x191   : > { %6038 = vst [vmem:[#allocation30_spill] sm:$0xff] %v4307_v45  ;;  %v1456_v52 = vadd.f32 %v1328_v36, %v4259_v31  ;;  %3367 = vtanh.f32 %v1583_v29  ;;  %v1330_v1 = vmul.f32 0.044715, %v1202_v37  ;;  %v1075_v62 = vmul.f32 %v4299_v18, %v4299_v18 }
 0x192   : > { %6036 = vst [vmem:[#allocation28_spill] sm:$0xff] %v4303_v25  ;;  %6039 = vst [vmem:[#allocation31_spill] sm:$0xff] %v4314_v13  ;;  %v1077_v14 = vmul.f32 %v4303_v25, %v4303_v25  ;;  %3369 = vtanh.f32 %v1585_v30  ;;  %v1076_v43 = vmul.f32 %v4314_v13, %v4314_v13  ;;  %v1078_v5 = vmul.f32 %v4318_v54, %v4318_v54 }
 0x193   : > { %6040 = vst [vmem:[#allocation32_spill] sm:$0xff] %v4318_v54  ;;  %v1584_v49 = vmul.f32 0.7978846, %v1456_v52  ;;  %v4328_v33 = vpop.eup %3357  ;;  %v1458_v15 = vadd.f32 %v1330_v1, %v4275_v48  ;;  %v1203_v29 = vmul.f32 %v1075_v62, %v4299_v18  ;;  %v4335_v37 = vadd.f32 %v4167_v16, %v4039_v56  ;;  %v4337_v30 = vpop.f32.mrb[24].mxu0 }
 0x194   : > { %v1205_v36 = vmul.f32 %v1077_v14, %v4303_v25  ;;  %6042 = vst [vmem:[#allocation34_spill] sm:$0xff] %v4337_v30  ;;  %v4339_v52 = vpop.f32.mrb[24].mxu1  ;;  %v1204_v31 = vmul.f32 %v1076_v43, %v4314_v13  ;;  %v1206_v45 = vmul.f32 %v1078_v5, %v4318_v54  ;;  %v4345_v1 = vadd.f32 %v4174_v35, %v4041_v57  ;;  %v4347_v62 = vpop.f32.mrb[25].mxu0 }
 0x195   : > { %6041 = vst [vmem:[#allocation33_spill] sm:$0xff] %v4335_v37  ;;  %6043 = vst [vmem:[#allocation35_spill] sm:$0xff] %v4339_v52  ;;  %3371 = vtanh.f32 %v1584_v49  ;;  %v4349_v14 = vpop.f32.mrb[25].mxu1  ;;  %v1586_v48 = vmul.f32 0.7978846, %v1458_v15  ;;  %v1079_v30 = vmul.f32 %v4335_v37, %v4335_v37  ;;  %v4357_v5 = vadd.f32 %v4176_v7, %v4043_v58  ;;  %v4359_v35 = vpop.f32.mrb[26].mxu0 }
 0x196   : > { %6044 = vst [vmem:[#allocation36_spill] sm:$0xff] %v4345_v1  ;;  %6045 = vst [vmem:[#allocation37_spill] sm:$0xff] %v4347_v62  ;;  %v1331_v16 = vmul.f32 0.044715, %v1203_v29  ;;  %v1333_v32 = vmul.f32 0.044715, %v1205_v36  ;;  %v1081_v43 = vmul.f32 %v4345_v1, %v4345_v1 }
 0x197   : > { %6046 = vst [vmem:[#allocation38_spill] sm:$0xff] %v4349_v14  ;;  %v1332_v52 = vmul.f32 0.044715, %v1204_v31  ;;  %v1334_v49 = vmul.f32 0.044715, %v1206_v45  ;;  %6047 = vst [vmem:[#allocation39_spill] sm:$0xff] %v4357_v5  ;;  %v4363_v14 = vpop.eup %3359  ;;  %3373 = vtanh.f32 %v1586_v48  ;;  %v1207_v31 = vmul.f32 %v1079_v30, %v4335_v37 }
 0x198   : > { %6048 = vst [vmem:[#allocation40_spill] sm:$0xff] %v4359_v35  ;;  %v4361_v62 = vpop.f32.mrb[26].mxu1  ;;  %v1459_v15 = vadd.f32 %v1331_v16, %v4299_v18  ;;  %v1461_v29 = vadd.f32 %v1333_v32, %v4303_v25  ;;  %v4368_v45 = vpop.f32.mrb[27].mxu0  ;;  %v1080_v48 = vmul.f32 %v4357_v5, %v4357_v5  ;;  %v4383_v18 = vadd.f32 %v4180_v41, %v4045_v59 }
 0x199   : > { %6049 = vst [vmem:[#allocation41_spill] sm:$0xff] %v4361_v62  ;;  %6050 = vst [vmem:[#allocation42_spill] sm:$0xff] %v4368_v45  ;;  %v4370_v36 = vpop.f32.mrb[27].mxu1  ;;  %v4372_v38 = vpop.eup %3361  ;;  %v1460_v7 = vadd.f32 %v1332_v52, %v4314_v13  ;;  %v1462_v35 = vadd.f32 %v1334_v49, %v4318_v54  ;;  %v1209_v62 = vmul.f32 %v1081_v43, %v4345_v1  ;;  %v1335_v30 = vmul.f32 0.044715, %v1207_v31 }
 0x19a   : > { %6051 = vst [vmem:[#allocation43_spill] sm:$0xff] %v4370_v36  ;;  %v4379_v16 = vpop.eup %3363  ;;  %v1587_v32 = vmul.f32 0.7978846, %v1459_v15  ;;  %v1589_v25 = vmul.f32 0.7978846, %v1461_v29  ;;  %6052 = vst [vmem:[#allocation44_spill] sm:$0xff] %v4383_v18  ;;  %v1208_v49 = vmul.f32 %v1080_v48, %v4357_v5  ;;  %v1082_v15 = vmul.f32 %v4383_v18, %v4383_v18 }
 0x19b   : > { %v4385_v36 = vpop.eup %3365  ;;  %v1588_v45 = vmul.f32 0.7978846, %v1460_v7  ;;  %v1590_v52 = vmul.f32 0.7978846, %v1462_v35  ;;  %v1337_v13 = vmul.f32 0.044715, %v1209_v62  ;;  %v1463_v54 = vadd.f32 %v1335_v30, %v4335_v37 }
 0x19c   : > { %v4388_v43 = vpop.eup %3367  ;;  %3375 = vtanh.f32 %v1587_v32  ;;  %v4395_v29 = vadd.f32 %v4212_v27, %v4039_v56  ;;  %v4397_v41 = vpop.f32.mrb[28].mxu0  ;;  %v1336_v7 = vmul.f32 0.044715, %v1208_v49  ;;  %v4406_v48 = vadd.f32 %v4214_v61, %v4041_v57 }
 0x19d   : > { %6054 = vst [vmem:[#allocation46_spill] sm:$0xff] %v4397_v41  ;;  %v4399_v31 = vpop.f32.mrb[28].mxu1  ;;  %v4401_v35 = vpop.eup %3369  ;;  %3377 = vtanh.f32 %v1589_v25  ;;  %v1465_v62 = vadd.f32 %v1337_v13, %v4345_v1  ;;  %v1591_v27 = vmul.f32 0.7978846, %v1463_v54  ;;  %v1210_v37 = vmul.f32 %v1082_v15, %v4383_v18 }
 0x19e   : > { %6053 = vst [vmem:[#allocation45_spill] sm:$0xff] %v4395_v29  ;;  %6055 = vst [vmem:[#allocation47_spill] sm:$0xff] %v4399_v31  ;;  %v4408_v32 = vpop.f32.mrb[29].mxu0  ;;  %v4410_v30 = vpop.f32.mrb[29].mxu1  ;;  %3379 = vtanh.f32 %v1588_v45  ;;  %v1083_v31 = vmul.f32 %v4395_v29, %v4395_v29  ;;  %v1464_v49 = vadd.f32 %v1336_v7, %v4357_v5  ;;  %v1085_v1 = vmul.f32 %v4406_v48, %v4406_v48 }
 0x19f   : > { %6056 = vst [vmem:[#allocation48_spill] sm:$0xff] %v4406_v48  ;;  %6057 = vst [vmem:[#allocation49_spill] sm:$0xff] %v4410_v30  ;;  %v4415_v41 = vpop.f32.mrb[30].mxu0  ;;  %v4417_v25 = vpop.f32.mrb[30].mxu1  ;;  %3381 = vtanh.f32 %v1590_v52  ;;  %v1593_v61 = vmul.f32 0.7978846, %v1465_v62  ;;  %v4436_v7 = vadd.f32 %v4228_v21, %v4045_v59 }
 0x1a0   : > { %6058 = vst [vmem:[#allocation50_spill] sm:$0xff] %v4415_v41  ;;  %6059 = vst [vmem:[#allocation51_spill] sm:$0xff] %v4417_v25  ;;  %v4419_v13 = vpop.eup %3371  ;;  %v4424_v45 = vpop.f32.mrb[31].mxu0  ;;  %3383 = vtanh.f32 %v1591_v27  ;;  %v1338_v15 = vmul.f32 0.044715, %v1210_v37  ;;  %v1211_v30 = vmul.f32 %v1083_v31, %v4395_v29  ;;  %v4431_v25 = vadd.f32 %v4226_v10, %v4043_v58 }
 0x1a1   : > { %6060 = vst [vmem:[#allocation52_spill] sm:$0xff] %v4424_v45  ;;  %v4426_v54 = vpop.f32.mrb[31].mxu1  ;;  %3385 = vtanh.f32 %v1593_v61  ;;  %v1592_v52 = vmul.f32 0.7978846, %v1464_v49  ;;  %v1213_v62 = vmul.f32 %v1085_v1, %v4406_v48  ;;  %v4438_v41 = vpop.eup %3373  ;;  %v924_v31 = vmul.f32 0.5, %v4050_v3 }
 0x1a2   : > { %6061 = vst [vmem:[#allocation53_spill] sm:$0xff] %v4426_v54  ;;  %v1466_v54 = vadd.f32 %v1338_v15, %v4383_v18  ;;  %v1339_v27 = vmul.f32 0.044715, %v1211_v30  ;;  %v1084_v37 = vmul.f32 %v4431_v25, %v4431_v25  ;;  %v1086_v61 = vmul.f32 %v4436_v7, %v4436_v7 }
 0x1a3   : > { %3387 = vtanh.f32 %v1592_v52  ;;  %v1341_v10 = vmul.f32 0.044715, %v1213_v62  ;;  %v928_v1 = vmul.f32 0.5, %v4066_v19  ;;  %v1820_v15 = vadd.f32 1.0, %v4152_v55  ;;  %v4450_v30 = vpop.f32.mrb[32].mxu0  ;;  %v4452_v18 = vpop.f32.mrb[32].mxu1 }
 0x1a4   : > { %v1594_v49 = vmul.f32 0.7978846, %v1466_v54  ;;  %v1467_v21 = vadd.f32 %v1339_v27, %v4395_v29  ;;  %v1212_v45 = vmul.f32 %v1084_v37, %v4431_v25  ;;  %6062 = vst [vmem:[#allocation54_spill] sm:$0xff] %v4450_v30  ;;  %6063 = vst [vmem:[#allocation55_spill] sm:$0xff] %v4452_v18  ;;  %v1214_v52 = vmul.f32 %v1086_v61, %v4436_v7  ;;  %v4458_v19 = vpop.f32.mrb[33].mxu0  ;;  %v4460_v54 = vpop.f32.mrb[33].mxu1 }
 0x1a5   : > { %v1469_v3 = vadd.f32 %v1341_v10, %v4406_v48  ;;  %v1824_v62 = vadd.f32 1.0, %v4182_v9  ;;  %v926_v5 = vmul.f32 0.5, %v4053_v4  ;;  %6064 = vst [vmem:[#allocation56_spill] sm:$0xff] %v4458_v19  ;;  %6065 = vst [vmem:[#allocation57_spill] sm:$0xff] %v4460_v54  ;;  %v1948_v29 = vmul.f32 %v1820_v15, %v924_v31  ;;  %v4464_v30 = vpop.f32.mrb[34].mxu0  ;;  %v4466_v18 = vpop.f32.mrb[34].mxu1 }
 0x1a6   : > { %v4462_v27 = vpop.eup %3375  ;;  %3389 = vtanh.f32 %v1594_v49  ;;  %v1595_v55 = vmul.f32 0.7978846, %v1467_v21  ;;  %v1340_v37 = vmul.f32 0.044715, %v1212_v45  ;;  %6066 = vst [vmem:[#allocation58_spill] sm:$0xff] %v4466_v18  ;;  %v930_v4 = vmul.f32 0.5, %v4069_v20 }
 0x1a7   : > { %v4468_v10 = vpop.eup %3377  ;;  %v1597_v61 = vmul.f32 0.7978846, %v1469_v3  ;;  %v1342_v9 = vmul.f32 0.044715, %v1214_v52  ;;  %v1952_v48 = vmul.f32 %v1824_v62, %v928_v1  ;;  %v4471_v19 = vpop.f32.mrb[35].mxu0  ;;  %v1822_v45 = vadd.f32 1.0, %v4159_v6 }
 0x1a8   : > { %6067 = vst [vmem:[#allocation59_spill] sm:$0xff] %v4471_v19  ;;  %v4473_v54 = vpop.eup %3379  ;;  %3391 = vtanh.f32 %v1595_v55  ;;  %v1468_v49 = vadd.f32 %v1340_v37, %v4431_v25  ;;  %v1826_v31 = vadd.f32 1.0, %v4184_v46  ;;  %v4478_v21 = vpop.f32.mrb[35].mxu1  ;;  %v4485_v20 = vadd.f32 %v4236_v26, %v4039_v56 }
 0x1a9   : > { %6068 = vst [vmem:[#allocation60_spill] sm:$0xff] %v4478_v21  ;;  %v4480_v15 = vpop.eup %3381  ;;  %3393 = vtanh.f32 %v1597_v61  ;;  %v1470_v1 = vadd.f32 %v1342_v9, %v4436_v7  ;;  %v2076_v3 = vpack.c.bf16 %v1952_v48, %v1948_v29  ;;  %v1950_v55 = vmul.f32 %v1822_v45, %v926_v5 }
 0x1aa   : > { %6069 = vst [vmem:[#allocation61_spill] sm:$0xff] %v4485_v20  ;;  %v4487_v52 = vpop.eup %3383  ;;  %v1596_v62 = vmul.f32 0.7978846, %v1468_v49  ;;  %v1954_v37 = vmul.f32 %v1826_v31, %v930_v4  ;;  %v4491_v6 = vadd.f32 %v4238_v34, %v4041_v57  ;;  %v1087_v29 = vmul.f32 %v4485_v20, %v4485_v20 }
 0x1ab   : > { %v4493_v46 = vpop.eup %3385  ;;  %v1598_v21 = vmul.f32 0.7978846, %v1470_v1  ;;  %2434 = vmatprep.mubr.bf16.mxu0 %v2076_v3  ;;  %v2075_v26 = vpack.c.bf16 %v4187_v47, %v4162_v8  ;;  %v2077_v48 = vpack.c.bf16 %v4195_v50, %v4170_v24  ;;  %v4505_v34 = vadd.f32 %v4247_v39, %v4043_v58  ;;  %v4507_v9 = vpop.f32.mrb[36].mxu0 }
 0x1ac   : > { %6070 = vst [vmem:[#allocation62_spill] sm:$0xff] %v4491_v6  ;;  %3395 = vtanh.f32 %v1596_v62  ;;  %v2078_v5 = vpack.c.bf16 %v1954_v37, %v1950_v55  ;;  %v1089_v61 = vmul.f32 %v4491_v6, %v4491_v6  ;;  %6071 = vst [vmem:[#allocation63_spill] sm:$0xff] %v4507_v9  ;;  %v4509_v4 = vpop.f32.mrb[36].mxu1  ;;  %v1215_v8 = vmul.f32 %v1087_v29, %v4485_v20  ;;  %v4522_v50 = vpop.f32.mrb[37].mxu0 }
 0x1ad   : > { %6072 = vst [vmem:[#allocation64_spill] sm:$0xff] %v4509_v4  ;;  %v4511_v49 = vpop.eup %3387  ;;  %3397 = vtanh.f32 %v1598_v21  ;;  %2435 = vmatmul.mubr.bf16.vlgmr.msra.gmra.mrb[64].mxu0 %v2075_v26  ;;  %v4516_v24 = vadd.f32 %v4249_v42, %v4045_v59  ;;  %v4520_v47 = vadd.f32 %v4277_v51, %v4039_v56  ;;  %6074 = vst [vmem:[#allocation66_spill] sm:$0xff] %v4522_v50  ;;  %v4524_v39 = vpop.f32.mrb[37].mxu1 }
 0x1ae   : > { %6075 = vst [vmem:[#allocation67_spill] sm:$0xff] %v4524_v39  ;;  %2595 = vmatprep.mubr.bf16.mxu1 %v2078_v5  ;;  %v1217_v45 = vmul.f32 %v1089_v61, %v4491_v6  ;;  %v1088_v31 = vmul.f32 %v4505_v34, %v4505_v34  ;;  %v4531_v21 = vadd.f32 %v4279_v0, %v4041_v57  ;;  %v4537_v51 = vpop.f32.mrb[38].mxu0  ;;  %v4539_v1 = vpop.f32.mrb[38].mxu1  ;;  %v1343_v3 = vmul.f32 0.044715, %v1215_v8 }
 0x1af   : > { %6073 = vst [vmem:[#allocation65_spill] sm:$0xff] %v4520_v47  ;;  %v4535_v42 = vadd.f32 %v4286_v11, %v4043_v58  ;;  %6077 = vst [vmem:[#allocation69_spill] sm:$0xff] %v4537_v51  ;;  %2596 = vmatmul.mubr.bf16.vlgmr.msra.gmra.mrb[64].mxu1 %v2077_v48  ;;  %v1090_v62 = vmul.f32 %v4516_v24, %v4516_v24  ;;  %v1091_v55 = vmul.f32 %v4520_v47, %v4520_v47  ;;  %v4549_v37 = vpop.f32.mrb[39].mxu0  ;;  %v4551_v11 = vpop.f32.mrb[39].mxu1 }
 0x1b0   : > { %6076 = vst [vmem:[#allocation68_spill] sm:$0xff] %v4531_v21  ;;  %6078 = vst [vmem:[#allocation70_spill] sm:$0xff] %v4539_v1  ;;  %v4547_v0 = vadd.f32 %v4288_v22, %v4045_v59  ;;  %v4553_v29 = vpop.eup %3389  ;;  %v1345_v26 = vmul.f32 0.044715, %v1217_v45  ;;  %v1216_v5 = vmul.f32 %v1088_v31, %v4505_v34  ;;  %v1093_v48 = vmul.f32 %v4531_v21, %v4531_v21 }
 0x1b1   : > { %6079 = vst [vmem:[#allocation71_spill] sm:$0xff] %v4549_v37  ;;  %6080 = vst [vmem:[#allocation72_spill] sm:$0xff] %v4551_v11  ;;  %v1092_v61 = vmul.f32 %v4535_v42, %v4535_v42  ;;  %v1471_v8 = vadd.f32 %v1343_v3, %v4485_v20  ;;  %v1218_v22 = vmul.f32 %v1090_v62, %v4516_v24 }
 0x1b2   : > { %v1219_v1 = vmul.f32 %v1091_v55, %v4520_v47  ;;  %v1094_v11 = vmul.f32 %v4547_v0, %v4547_v0  ;;  %v4565_v37 = vpop.eup %3391  ;;  %v1473_v45 = vadd.f32 %v1345_v26, %v4491_v6  ;;  %v1344_v31 = vmul.f32 0.044715, %v1216_v5 }
 0x1b3   : > { %v1221_v51 = vmul.f32 %v1093_v48, %v4531_v21  ;;  %v1220_v39 = vmul.f32 %v1092_v61, %v4535_v42  ;;  %v4570_v50 = vpop.eup %3393  ;;  %v1599_v4 = vmul.f32 0.7978846, %v1471_v8  ;;  %v1346_v3 = vmul.f32 0.044715, %v1218_v22  ;;  %v4576_v6 = vpop.f32.mrb[40].mxu0 }
 0x1b4   : > { %v1347_v9 = vmul.f32 0.044715, %v1219_v1  ;;  %v1222_v62 = vmul.f32 %v1094_v11, %v4547_v0  ;;  %v1601_v55 = vmul.f32 0.7978846, %v1473_v45  ;;  %v1472_v19 = vadd.f32 %v1344_v31, %v4505_v34  ;;  %6081 = vst [vmem:[#allocation73_spill] sm:$0xff] %v4576_v6  ;;  %v4578_v61 = vpop.f32.mrb[40].mxu1 }
 0x1b5   : > { %v1349_v20 = vmul.f32 0.044715, %v1221_v51  ;;  %v1348_v18 = vmul.f32 0.044715, %v1220_v39  ;;  %3399 = vtanh.f32 %v1599_v4  ;;  %v1474_v26 = vadd.f32 %v1346_v3, %v4516_v24  ;;  %6082 = vst [vmem:[#allocation74_spill] sm:$0xff] %v4578_v61  ;;  %v4584_v51 = vpop.f32.mrb[41].mxu0 }
 0x1b6   : > { %v1475_v5 = vadd.f32 %v1347_v9, %v4520_v47  ;;  %v1350_v48 = vmul.f32 0.044715, %v1222_v62  ;;  %v4580_v8 = vpop.eup %3395  ;;  %3401 = vtanh.f32 %v1601_v55  ;;  %v1600_v1 = vmul.f32 0.7978846, %v1472_v19  ;;  %6083 = vst [vmem:[#allocation75_spill] sm:$0xff] %v4584_v51  ;;  %v4586_v4 = vpop.f32.mrb[41].mxu1 }
 0x1b7   : > { %v1477_v11 = vadd.f32 %v1349_v20, %v4531_v21  ;;  %v1476_v22 = vadd.f32 %v1348_v18, %v4535_v42  ;;  %6084 = vst [vmem:[#allocation76_spill] sm:$0xff] %v4586_v4  ;;  %v4588_v39 = vpop.eup %3397  ;;  %v1602_v9 = vmul.f32 0.7978846, %v1474_v26  ;;  %v932_v3 = vmul.f32 0.5, %v4098_v12  ;;  %v4592_v62 = vpop.f32.mrb[42].mxu0  ;;  %v6125_v47 = vld [vmem:[#allocation25_spill] sm:$0xff] }
 0x1b8   : > { %v1603_v45 = vmul.f32 0.7978846, %v1475_v5  ;;  %v1478_v31 = vadd.f32 %v1350_v48, %v4547_v0  ;;  %6085 = vst [vmem:[#allocation77_spill] sm:$0xff] %v4592_v62  ;;  %3403 = vtanh.f32 %v1600_v1  ;;  %v936_v20 = vmul.f32 0.5, %v4139_v40  ;;  %v4595_v18 = vpop.f32.mrb[42].mxu1  ;;  %v4599_v5 = vpop.f32.mrb[43].mxu0 }
 0x1b9   : > { %v1605_v19 = vmul.f32 0.7978846, %v1477_v11  ;;  %v1604_v55 = vmul.f32 0.7978846, %v1476_v22  ;;  %6086 = vst [vmem:[#allocation78_spill] sm:$0xff] %v4595_v18  ;;  %3405 = vtanh.f32 %v1602_v9  ;;  %v1828_v4 = vadd.f32 1.0, %v4261_v2 }
 0x1ba   : > { %v1606_v51 = vmul.f32 0.7978846, %v1478_v31  ;;  %v1832_v26 = vadd.f32 1.0, %v4309_v63  ;;  %6087 = vst [vmem:[#allocation79_spill] sm:$0xff] %v4599_v5  ;;  %v4601_v48 = vpop.f32.mrb[43].mxu1  ;;  %3407 = vtanh.f32 %v1603_v45  ;;  %v934_v12 = vmul.f32 0.5, %v4106_v17 }
 0x1bb   : > { %6088 = vst [vmem:[#allocation80_spill] sm:$0xff] %v4601_v48  ;;  %v938_v1 = vmul.f32 0.5, %v4144_v44  ;;  %v1830_v11 = vadd.f32 1.0, %v4264_v28  ;;  %3409 = vtanh.f32 %v1605_v19  ;;  %v1956_v40 = vmul.f32 %v1828_v4, %v932_v3  ;;  %v4615_v17 = vpop.f32.mrb[44].mxu0  ;;  %v4617_v44 = vpop.f32.mrb[44].mxu1  ;;  %v6095_v19 = vld [vmem:[#allocation13_spill] sm:$0xff] }
 0x1bc   : > { %v1960_v22 = vmul.f32 %v1832_v26, %v936_v20  ;;  %v1834_v9 = vadd.f32 1.0, %v4328_v33  ;;  %3411 = vtanh.f32 %v1604_v55  ;;  %v4609_v63 = vadd.f32 %v4292_v53, %v4039_v56  ;;  %6091 = vst [vmem:[#allocation83_spill] sm:$0xff] %v4615_v17  ;;  %6092 = vst [vmem:[#allocation84_spill] sm:$0xff] %v4617_v44  ;;  %v4620_v33 = vpop.f32.mrb[45].mxu0  ;;  %v4622_v3 = vpop.f32.mrb[45].mxu1  ;;  %v6096_v20 = vld [vmem:[#allocation21_spill] sm:$0xff] }
 0x1bd   : > { %v1958_v2 = vmul.f32 %v1830_v11, %v934_v12  ;;  %v4613_v45 = vadd.f32 %v4294_v23, %v4041_v57  ;;  %3413 = vtanh.f32 %v1606_v51  ;;  %v931_v31 = vmul.f32 0.5, %v4086_v60  ;;  %6093 = vst [vmem:[#allocation85_spill] sm:$0xff] %v4620_v33  ;;  %6094 = vst [vmem:[#allocation86_spill] sm:$0xff] %v4622_v3  ;;  %v6098_v11 = vld [vmem:[#allocation12_spill] sm:$0xff]  ;;  %v4635_v3 = vpop.f32.mrb[46].mxu0 }
 0x1be   : > { %6089 = vst [vmem:[#allocation81_spill] sm:$0xff] %v4609_v63  ;;  %v2080_v28 = vpack.c.bf16 %v1960_v22, %v1956_v40  ;;  %v1962_v4 = vmul.f32 %v1834_v9, %v938_v1  ;;  %v1095_v53 = vmul.f32 %v4609_v63, %v4609_v63  ;;  %v935_v55 = vmul.f32 0.5, %v6095_v19  ;;  %v6097_v1 = vld [vmem:[#allocation24_spill] sm:$0xff]  ;;  %v6099_v22 = vld [vmem:[#allocation14_spill] sm:$0xff]  ;;  %6100 = vst [vmem:[#allocation13_spill] sm:$0xff] %v4635_v3 }
 0x1bf   : > { %6090 = vst [vmem:[#allocation82_spill] sm:$0xff] %v4613_v45  ;;  %v1097_v23 = vmul.f32 %v4613_v45, %v4613_v45  ;;  %v1827_v26 = vadd.f32 1.0, %v6096_v20  ;;  %v4630_v12 = vpop.eup %3399  ;;  %v1831_v60 = vadd.f32 1.0, %v6097_v1  ;;  %v933_v40 = vmul.f32 0.5, %v6098_v11  ;;  %v6101_v20 = vld [vmem:[#allocation22_spill] sm:$0xff]  ;;  %v6103_v1 = vld [vmem:[#allocation29_spill] sm:$0xff] }
 0x1c0   : > { %2442 = vmatprep.mubr.bf16.mxu0 %v2080_v28  ;;  %v2082_v51 = vpack.c.bf16 %v1962_v4, %v1958_v2  ;;  %v937_v9 = vmul.f32 0.5, %v6099_v22  ;;  %v4637_v33 = vpop.eup %3401  ;;  %v1223_v44 = vmul.f32 %v1095_v53, %v4609_v63  ;;  %v1829_v48 = vadd.f32 1.0, %v6101_v20  ;;  %v6102_v2 = vld [vmem:[#allocation26_spill] sm:$0xff] }
 0x1c1   : > { %v1225_v19 = vmul.f32 %v1097_v23, %v4613_v45  ;;  %v1955_v17 = vmul.f32 %v1827_v26, %v931_v31  ;;  %v1959_v28 = vmul.f32 %v1831_v60, %v935_v55  ;;  %v1833_v4 = vadd.f32 1.0, %v6102_v2  ;;  %v6104_v22 = vld [vmem:[#allocation30_spill] sm:$0xff] }
 0x1c2   : > { %2603 = vmatprep.mubr.bf16.mxu1 %v2082_v51  ;;  %v4645_v11 = vadd.f32 %v6103_v1, %v4043_v58  ;;  %v4649_v3 = vadd.f32 %v6104_v22, %v4045_v59  ;;  %v4651_v5 = vpop.eup %3403  ;;  %v1351_v53 = vmul.f32 0.044715, %v1223_v44  ;;  %v1957_v23 = vmul.f32 %v1829_v48, %v933_v40  ;;  %v6105_v31 = vld [vmem:[#allocation34_spill] sm:$0xff] }
 0x1c3   : > { %v1353_v18 = vmul.f32 0.044715, %v1225_v19  ;;  %v4655_v26 = vadd.f32 %v6105_v31, %v4039_v56  ;;  %v4657_v55 = vpop.eup %3405  ;;  %v2079_v51 = vpack.c.bf16 %v1959_v28, %v1955_v17  ;;  %v1961_v60 = vmul.f32 %v1833_v4, %v937_v9  ;;  %v6108_v19 = vld [vmem:[#allocation35_spill] sm:$0xff]  ;;  %v6111_v31 = vld [vmem:[#allocation37_spill] sm:$0xff] }
 0x1c4   : > { %v1096_v20 = vmul.f32 %v4645_v11, %v4645_v11  ;;  %v1098_v2 = vmul.f32 %v4649_v3, %v4649_v3  ;;  %v4663_v1 = vpop.eup %3407  ;;  %v1479_v44 = vadd.f32 %v1351_v53, %v4609_v63  ;;  %v4671_v22 = vadd.f32 %v6108_v19, %v4041_v57 }
 0x1c5   : > { %6106 = vst [vmem:[#allocation21_spill] sm:$0xff] %v4655_v26  ;;  %6107 = vst [vmem:[#allocation24_spill] sm:$0xff] %v4663_v1  ;;  %v1481_v48 = vadd.f32 %v1353_v18, %v4613_v45  ;;  %v1099_v40 = vmul.f32 %v4655_v26, %v4655_v26  ;;  %v4673_v17 = vpop.eup %3409  ;;  %2443 = vmatmul.mubr.bf16.gmra.mrb[68].mxu0 %v2079_v51  ;;  %v2081_v9 = vpack.c.bf16 %v1961_v60, %v1957_v23  ;;  %v6116_v45 = vld [vmem:[#allocation17_spill] sm:$0xff] }
 0x1c6   : > { %6109 = vst [vmem:[#allocation12_spill] sm:$0xff] %v4671_v22  ;;  %6110 = vst [vmem:[#allocation14_spill] sm:$0xff] %v4673_v17  ;;  %v1224_v28 = vmul.f32 %v1096_v20, %v4645_v11  ;;  %v1226_v4 = vmul.f32 %v1098_v2, %v4649_v3  ;;  %v4679_v53 = vadd.f32 %v6111_v31, %v4043_v58  ;;  %v4681_v18 = vpop.eup %3411  ;;  %v1607_v62 = vmul.f32 0.7978846, %v1479_v44  ;;  %v4686_v17 = vpop.f32.mrb[46].mxu1  ;;  %v6113_v2 = vld [vmem:[#allocation38_spill] sm:$0xff] }
 0x1c7   : > { %v1609_v61 = vmul.f32 0.7978846, %v1481_v48  ;;  %v1227_v6 = vmul.f32 %v1099_v40, %v4655_v26  ;;  %v1101_v19 = vmul.f32 %v4671_v22, %v4671_v22  ;;  %6112 = vst [vmem:[#allocation22_spill] sm:$0xff] %v4686_v17  ;;  %v4688_v23 = vpop.eup %3413  ;;  %2604 = vmatmul.mubr.bf16.gmra.mrb[68].mxu1 %v2081_v9  ;;  %v4694_v31 = vadd.f32 %v6113_v2, %v4045_v59  ;;  %v4696_v44 = vpop.f32.mrb[47].mxu0 }
 0x1c8   : > { %v1352_v51 = vmul.f32 0.044715, %v1224_v28  ;;  %v1354_v60 = vmul.f32 0.044715, %v1226_v4  ;;  %v1100_v20 = vmul.f32 %v4679_v53, %v4679_v53  ;;  %6115 = vst [vmem:[#allocation29_spill] sm:$0xff] %v4696_v44  ;;  %3415 = vtanh.f32 %v1607_v62  ;;  %v6117_v44 = vld [vmem:[#allocation23_spill] sm:$0xff] }
 0x1c9   : > { %6114 = vst [vmem:[#allocation26_spill] sm:$0xff] %v4694_v31  ;;  %v1355_v48 = vmul.f32 0.044715, %v1227_v6  ;;  %v1229_v40 = vmul.f32 %v1101_v19, %v4671_v22  ;;  %v940_v17 = vmul.f32 0.5, %v6116_v45  ;;  %3417 = vtanh.f32 %v1609_v61  ;;  %v6118_v45 = vld [vmem:[#allocation40_spill] sm:$0xff] }
 0x1ca   : > { %v1480_v9 = vadd.f32 %v1352_v51, %v4645_v11  ;;  %v1482_v28 = vadd.f32 %v1354_v60, %v4649_v3  ;;  %v1228_v4 = vmul.f32 %v1100_v20, %v4679_v53  ;;  %v1102_v2 = vmul.f32 %v4694_v31, %v4694_v31 }
 0x1cb   : > { %v1483_v21 = vadd.f32 %v1355_v48, %v4655_v26  ;;  %v1357_v1 = vmul.f32 0.044715, %v1229_v40  ;;  %v944_v62 = vmul.f32 0.5, %v6117_v44  ;;  %v4709_v61 = vadd.f32 %v6118_v45, %v4039_v56  ;;  %v4714_v40 = vpop.f32.mrb[47].mxu1  ;;  %v4716_v26 = vpop.f32.mrb[48].mxu0 }
 0x1cc   : > { %v1608_v6 = vmul.f32 0.7978846, %v1480_v9  ;;  %v1610_v63 = vmul.f32 0.7978846, %v1482_v28  ;;  %v1356_v19 = vmul.f32 0.044715, %v1228_v4  ;;  %v1230_v20 = vmul.f32 %v1102_v2, %v4694_v31 }
 0x1cd   : > { %6119 = vst [vmem:[#allocation30_spill] sm:$0xff] %v4709_v61  ;;  %v1611_v51 = vmul.f32 0.7978846, %v1483_v21  ;;  %v1485_v60 = vadd.f32 %v1357_v1, %v4671_v22  ;;  %v1836_v48 = vadd.f32 1.0, %v4379_v16  ;;  %6120 = vst [vmem:[#allocation34_spill] sm:$0xff] %v4714_v40  ;;  %v1840_v9 = vadd.f32 1.0, %v4419_v13 }
 0x1ce   : > { %6121 = vst [vmem:[#allocation35_spill] sm:$0xff] %v4716_v26  ;;  %3419 = vtanh.f32 %v1608_v6  ;;  %v1484_v44 = vadd.f32 %v1356_v19, %v4679_v53  ;;  %v6122_v28 = vld [vmem:[#allocation18_spill] sm:$0xff]  ;;  %v4721_v45 = vpop.f32.mrb[48].mxu1  ;;  %v1358_v1 = vmul.f32 0.044715, %v1230_v20  ;;  %v4723_v2 = vpop.f32.mrb[49].mxu0 }
 0x1cf   : > { %v942_v4 = vmul.f32 0.5, %v6122_v28  ;;  %6123 = vst [vmem:[#allocation37_spill] sm:$0xff] %v4721_v45  ;;  %3421 = vtanh.f32 %v1610_v63  ;;  %v1613_v21 = vmul.f32 0.7978846, %v1485_v60  ;;  %v1964_v22 = vmul.f32 %v1836_v48, %v940_v17  ;;  %6124 = vst [vmem:[#allocation38_spill] sm:$0xff] %v4723_v2  ;;  %v4726_v6 = vpop.f32.mrb[49].mxu1 }
 0x1d0   : > { %3423 = vtanh.f32 %v1611_v51  ;;  %v1612_v16 = vmul.f32 0.7978846, %v1484_v44  ;;  %v1968_v40 = vmul.f32 %v1840_v9, %v944_v62  ;;  %v946_v26 = vmul.f32 0.5, %v6125_v47  ;;  %6126 = vst [vmem:[#allocation17_spill] sm:$0xff] %v4726_v6  ;;  %v6127_v51 = vld [vmem:[#allocation41_spill] sm:$0xff]  ;;  %v6129_v44 = vld [vmem:[#allocation15_spill] sm:$0xff] }
 0x1d1   : > { %3425 = vtanh.f32 %v1613_v21  ;;  %v1486_v13 = vadd.f32 %v1358_v1, %v4694_v31  ;;  %v1838_v19 = vadd.f32 1.0, %v4385_v36  ;;  %v1842_v28 = vadd.f32 1.0, %v4438_v41 }
 0x1d2   : > { %3427 = vtanh.f32 %v1612_v16  ;;  %v2084_v63 = vpack.c.bf16 %v1968_v40, %v1964_v22  ;;  %v1103_v17 = vmul.f32 %v4709_v61, %v4709_v61  ;;  %v4735_v60 = vadd.f32 %v6127_v51, %v4041_v57  ;;  %v4737_v62 = vpop.eup %3415  ;;  %v6130_v22 = vld [vmem:[#allocation19_spill] sm:$0xff] }
 0x1d3   : > { %v1614_v47 = vmul.f32 0.7978846, %v1486_v13  ;;  %v1966_v20 = vmul.f32 %v1838_v19, %v942_v4  ;;  %v1970_v48 = vmul.f32 %v1842_v28, %v946_v26  ;;  %v939_v9 = vmul.f32 0.5, %v6129_v44  ;;  %v4740_v21 = vpop.eup %3417  ;;  %v6131_v4 = vld [vmem:[#allocation16_spill] sm:$0xff]  ;;  %v4749_v19 = vpop.f32.mrb[50].mxu0 }
 0x1d4   : > { %6128 = vst [vmem:[#allocation23_spill] sm:$0xff] %v4735_v60  ;;  %2450 = vmatprep.mubr.bf16.mxu0 %v2084_v63  ;;  %v1231_v36 = vmul.f32 %v1103_v17, %v4709_v61  ;;  %v1105_v41 = vmul.f32 %v4735_v60, %v4735_v60  ;;  %v943_v40 = vmul.f32 0.5, %v6130_v22  ;;  %v1835_v1 = vadd.f32 1.0, %v4363_v14  ;;  %6132 = vst [vmem:[#allocation40_spill] sm:$0xff] %v4749_v19  ;;  %v6133_v17 = vld [vmem:[#allocation20_spill] sm:$0xff] }
 0x1d5   : > { %3429 = vtanh.f32 %v1614_v47  ;;  %v2086_v16 = vpack.c.bf16 %v1970_v48, %v1966_v20  ;;  %v1839_v13 = vadd.f32 1.0, %v4388_v43  ;;  %v941_v26 = vmul.f32 0.5, %v6131_v4  ;;  %v6134_v47 = vld [vmem:[#allocation42_spill] sm:$0xff] }
 0x1d6   : > { %v1359_v28 = vmul.f32 0.044715, %v1231_v36  ;;  %v1233_v63 = vmul.f32 %v1105_v41, %v4735_v60  ;;  %v1963_v51 = vmul.f32 %v1835_v1, %v939_v9  ;;  %v945_v44 = vmul.f32 0.5, %v6133_v17  ;;  %v6135_v41 = vld [vmem:[#allocation43_spill] sm:$0xff]  ;;  %v6136_v1 = vld [vmem:[#allocation46_spill] sm:$0xff] }
 0x1d7   : > { %2611 = vmatprep.mubr.bf16.mxu1 %v2086_v16  ;;  %v1967_v6 = vmul.f32 %v1839_v13, %v943_v40  ;;  %v1837_v22 = vadd.f32 1.0, %v4372_v38  ;;  %v1841_v14 = vadd.f32 1.0, %v4401_v35  ;;  %v4757_v20 = vadd.f32 %v6134_v47, %v4043_v58 }
 0x1d8   : > { %v4759_v43 = vpop.eup %3419  ;;  %v1487_v48 = vadd.f32 %v1359_v28, %v4709_v61  ;;  %v1361_v36 = vmul.f32 0.044715, %v1233_v63  ;;  %v4764_v9 = vadd.f32 %v6135_v41, %v4045_v59  ;;  %v4768_v40 = vadd.f32 %v6136_v1, %v4039_v56  ;;  %v4781_v1 = vpop.f32.mrb[50].mxu1 }
 0x1d9   : > { %v4770_v38 = vpop.eup %3421  ;;  %v2083_v35 = vpack.c.bf16 %v1967_v6, %v1963_v51  ;;  %v1965_v16 = vmul.f32 %v1837_v22, %v941_v26  ;;  %v1969_v13 = vmul.f32 %v1841_v14, %v945_v44  ;;  %v1104_v4 = vmul.f32 %v4757_v20, %v4757_v20  ;;  %6139 = vst [vmem:[#allocation41_spill] sm:$0xff] %v4781_v1  ;;  %v6141_v51 = vld [vmem:[#allocation47_spill] sm:$0xff]  ;;  %v4822_v31 = vpop.f32.mrb[51].mxu1 }
 0x1da   : > { %6137 = vst [vmem:[#allocation18_spill] sm:$0xff] %v4768_v40  ;;  %v4774_v17 = vpop.eup %3423  ;;  %v1615_v28 = vmul.f32 0.7978846, %v1487_v48  ;;  %v1489_v63 = vadd.f32 %v1361_v36, %v4735_v60  ;;  %v1106_v47 = vmul.f32 %v4764_v9, %v4764_v9  ;;  %v1107_v41 = vmul.f32 %v4768_v40, %v4768_v40  ;;  %6148 = vst [vmem:[#allocation42_spill] sm:$0xff] %v4822_v31 }
 0x1db   : > { %6138 = vst [vmem:[#allocation25_spill] sm:$0xff] %v4774_v17  ;;  %v4783_v19 = vpop.eup %3425  ;;  %2451 = vmatmul.mubr.bf16.gmra.mrb[72].mxu0 %v2083_v35  ;;  %v2085_v6 = vpack.c.bf16 %v1969_v13, %v1965_v16  ;;  %v1232_v26 = vmul.f32 %v1104_v4, %v4757_v20  ;;  %v4788_v44 = vadd.f32 %v6141_v51, %v4041_v57  ;;  %v4798_v35 = vpop.f32.mrb[51].mxu0 }
 0x1dc   : > { %6140 = vst [vmem:[#allocation15_spill] sm:$0xff] %v4783_v19  ;;  %v4792_v22 = vadd.f32 %v4408_v32, %v4043_v58  ;;  %v4794_v14 = vpop.eup %3427  ;;  %3431 = vtanh.f32 %v1615_v28  ;;  %v1617_v48 = vmul.f32 0.7978846, %v1489_v63  ;;  %v1234_v36 = vmul.f32 %v1106_v47, %v4764_v9  ;;  %6143 = vst [vmem:[#allocation16_spill] sm:$0xff] %v4798_v35  ;;  %v6144_v32 = vld [vmem:[#allocation49_spill] sm:$0xff]  ;;  %v6145_v47 = vld [vmem:[#allocation31_spill] sm:$0xff] }
 0x1dd   : > { %6142 = vst [vmem:[#allocation19_spill] sm:$0xff] %v4788_v44  ;;  %v1235_v1 = vmul.f32 %v1107_v41, %v4768_v40  ;;  %2612 = vmatmul.mubr.bf16.gmra.mrb[72].mxu1 %v2085_v6  ;;  %v1360_v16 = vmul.f32 0.044715, %v1232_v26  ;;  %v1109_v13 = vmul.f32 %v4788_v44, %v4788_v44  ;;  %v4806_v51 = vadd.f32 %v6144_v32, %v4045_v59 }
 0x1de   : > { %v1108_v4 = vmul.f32 %v4792_v22, %v4792_v22  ;;  %3433 = vtanh.f32 %v1617_v48  ;;  %v1362_v28 = vmul.f32 0.044715, %v1234_v36  ;;  %v948_v2 = vmul.f32 0.5, %v6145_v47  ;;  %v6147_v48 = vld [vmem:[#allocation39_spill] sm:$0xff] }
 0x1df   : > { %v1363_v63 = vmul.f32 0.044715, %v1235_v1  ;;  %v4809_v41 = vpop.eup %3429  ;;  %v1488_v6 = vadd.f32 %v1360_v16, %v4757_v20  ;;  %v1237_v26 = vmul.f32 %v1109_v13, %v4788_v44  ;;  %v1110_v45 = vmul.f32 %v4806_v51, %v4806_v51 }
 0x1e0   : > { %6146 = vst [vmem:[#allocation20_spill] sm:$0xff] %v4809_v41  ;;  %v1236_v35 = vmul.f32 %v1108_v4, %v4792_v22  ;;  %v1490_v19 = vadd.f32 %v1362_v28, %v4764_v9  ;;  %v952_v36 = vmul.f32 0.5, %v6147_v48  ;;  %v1844_v1 = vadd.f32 1.0, %v4473_v54  ;;  %v4828_v54 = vpop.f32.mrb[52].mxu1 }
 0x1e1   : > { %v1491_v32 = vadd.f32 %v1363_v63, %v4768_v40  ;;  %v1616_v47 = vmul.f32 0.7978846, %v1488_v6  ;;  %v1365_v60 = vmul.f32 0.044715, %v1237_v26  ;;  %v1238_v16 = vmul.f32 %v1110_v45, %v4806_v51  ;;  %v4826_v40 = vpop.f32.mrb[52].mxu0  ;;  %6150 = vst [vmem:[#allocation46_spill] sm:$0xff] %v4828_v54 }
 0x1e2   : > { %v1364_v17 = vmul.f32 0.044715, %v1236_v35  ;;  %v1618_v61 = vmul.f32 0.7978846, %v1490_v19  ;;  %v1848_v4 = vadd.f32 1.0, %v4511_v49  ;;  %v1972_v41 = vmul.f32 %v1844_v1, %v948_v2  ;;  %6149 = vst [vmem:[#allocation43_spill] sm:$0xff] %v4826_v40 }
 0x1e3   : > { %v1619_v13 = vmul.f32 0.7978846, %v1491_v32  ;;  %3435 = vtanh.f32 %v1616_v47  ;;  %v1493_v28 = vadd.f32 %v1365_v60, %v4788_v44  ;;  %v1366_v48 = vmul.f32 0.044715, %v1238_v16  ;;  %v6151_v45 = vld [vmem:[#allocation32_spill] sm:$0xff]  ;;  %v4833_v1 = vpop.f32.mrb[53].mxu0 }
 0x1e4   : > { %v1492_v63 = vadd.f32 %v1364_v17, %v4792_v22  ;;  %3437 = vtanh.f32 %v1618_v61  ;;  %v1976_v35 = vmul.f32 %v1848_v4, %v952_v36  ;;  %v950_v19 = vmul.f32 0.5, %v6151_v45  ;;  %v6152_v6 = vld [vmem:[#allocation44_spill] sm:$0xff]  ;;  %6153 = vst [vmem:[#allocation47_spill] sm:$0xff] %v4833_v1  ;;  %v6154_v61 = vld [vmem:[#allocation50_spill] sm:$0xff]  ;;  %v4843_v4 = vpop.f32.mrb[53].mxu1 }
 0x1e5   : > { %v954_v26 = vmul.f32 0.5, %v6152_v6  ;;  %3439 = vtanh.f32 %v1619_v13  ;;  %v1621_v49 = vmul.f32 0.7978846, %v1493_v28  ;;  %v1494_v32 = vadd.f32 %v1366_v48, %v4806_v51  ;;  %6156 = vst [vmem:[#allocation31_spill] sm:$0xff] %v4843_v4  ;;  %v6157_v28 = vld [vmem:[#allocation51_spill] sm:$0xff] }
 0x1e6   : > { %v1620_v2 = vmul.f32 0.7978846, %v1492_v63  ;;  %v4835_v60 = vpop.eup %3431  ;;  %v2088_v17 = vpack.c.bf16 %v1976_v35, %v1972_v41  ;;  %v1846_v47 = vadd.f32 1.0, %v4480_v15  ;;  %v1850_v16 = vadd.f32 1.0, %v4553_v29  ;;  %v6159_v48 = vld [vmem:[#allocation27_spill] sm:$0xff] }
 0x1e7   : > { %v4841_v36 = vadd.f32 %v6154_v61, %v4039_v56  ;;  %3441 = vtanh.f32 %v1621_v49  ;;  %v1622_v13 = vmul.f32 0.7978846, %v1494_v32  ;;  %v4847_v63 = vadd.f32 %v6157_v28, %v4041_v57  ;;  %v6160_v49 = vld [vmem:[#allocation33_spill] sm:$0xff] }
 0x1e8   : > { %v947_v45 = vmul.f32 0.5, %v6159_v48  ;;  %v4850_v6 = vpop.eup %3433  ;;  %3443 = vtanh.f32 %v1620_v2  ;;  %2458 = vmatprep.mubr.bf16.mxu0 %v2088_v17  ;;  %v1974_v15 = vmul.f32 %v1846_v47, %v950_v19  ;;  %v1978_v29 = vmul.f32 %v1850_v16, %v954_v26  ;;  %v6161_v2 = vld [vmem:[#allocation28_spill] sm:$0xff]  ;;  %v4861_v19 = vpop.f32.mrb[54].mxu0 }
 0x1e9   : > { %6155 = vst [vmem:[#allocation49_spill] sm:$0xff] %v4841_v36  ;;  %6158 = vst [vmem:[#allocation39_spill] sm:$0xff] %v4847_v63  ;;  %v1111_v41 = vmul.f32 %v4841_v36, %v4841_v36  ;;  %3445 = vtanh.f32 %v1622_v13  ;;  %v1113_v35 = vmul.f32 %v4847_v63, %v4847_v63  ;;  %v951_v32 = vmul.f32 0.5, %v6160_v49  ;;  %v6163_v16 = vld [vmem:[#allocation36_spill] sm:$0xff] }
 0x1ea   : > { %v1843_v61 = vadd.f32 1.0, %v4462_v27  ;;  %v2090_v28 = vpack.c.bf16 %v1978_v29, %v1974_v15  ;;  %v1847_v4 = vadd.f32 1.0, %v4487_v52  ;;  %v949_v17 = vmul.f32 0.5, %v6161_v2  ;;  %6162 = vst [vmem:[#allocation32_spill] sm:$0xff] %v4861_v19  ;;  %v6164_v15 = vld [vmem:[#allocation52_spill] sm:$0xff] }
 0x1eb   : > { %v1239_v48 = vmul.f32 %v1111_v41, %v4841_v36  ;;  %v1241_v26 = vmul.f32 %v1113_v35, %v4847_v63  ;;  %v953_v13 = vmul.f32 0.5, %v6163_v16  ;;  %v1845_v1 = vadd.f32 1.0, %v4468_v10  ;;  %v6165_v35 = vld [vmem:[#allocation53_spill] sm:$0xff] }
 0x1ec   : > { %v1971_v47 = vmul.f32 %v1843_v61, %v947_v45  ;;  %2619 = vmatprep.mubr.bf16.mxu1 %v2090_v28  ;;  %v1975_v54 = vmul.f32 %v1847_v4, %v951_v32  ;;  %v1849_v27 = vadd.f32 1.0, %v4493_v46  ;;  %v4869_v29 = vadd.f32 %v6164_v15, %v4043_v58  ;;  %v6166_v61 = vld [vmem:[#allocation54_spill] sm:$0xff]  ;;  %v6168_v15 = vld [vmem:[#allocation55_spill] sm:$0xff] }
 0x1ed   : > { %v1367_v49 = vmul.f32 0.044715, %v1239_v48  ;;  %v4871_v52 = vpop.eup %3435  ;;  %v1369_v41 = vmul.f32 0.044715, %v1241_v26  ;;  %v1973_v2 = vmul.f32 %v1845_v1, %v949_v17  ;;  %v4875_v45 = vadd.f32 %v6165_v35, %v4045_v59 }
 0x1ee   : > { %v4879_v10 = vadd.f32 %v6166_v61, %v4039_v56  ;;  %v4881_v28 = vpop.eup %3437  ;;  %v2087_v4 = vpack.c.bf16 %v1975_v54, %v1971_v47  ;;  %v1977_v32 = vmul.f32 %v1849_v27, %v953_v13  ;;  %v1112_v48 = vmul.f32 %v4869_v29, %v4869_v29  ;;  %v6169_v13 = vld [vmem:[#allocation56_spill] sm:$0xff] }
 0x1ef   : > { %v1495_v46 = vadd.f32 %v1367_v49, %v4841_v36  ;;  %v4886_v16 = vpop.eup %3439  ;;  %v1497_v1 = vadd.f32 %v1369_v41, %v4847_v63  ;;  %v1114_v17 = vmul.f32 %v4875_v45, %v4875_v45  ;;  %v4895_v35 = vadd.f32 %v6168_v15, %v4041_v57  ;;  %v4902_v41 = vpop.f32.mrb[54].mxu1  ;;  %v6173_v15 = vld [vmem:[#allocation57_spill] sm:$0xff] }
 0x1f0   : > { %6167 = vst [vmem:[#allocation44_spill] sm:$0xff] %v4886_v16  ;;  %v1115_v26 = vmul.f32 %v4879_v10, %v4879_v10  ;;  %2459 = vmatmul.mubr.bf16.gmra.mrb[76].mxu0 %v2087_v4  ;;  %v2089_v54 = vpack.c.bf16 %v1977_v32, %v1973_v2  ;;  %v1240_v47 = vmul.f32 %v1112_v48, %v4869_v29  ;;  %6170 = vst [vmem:[#allocation50_spill] sm:$0xff] %v4902_v41  ;;  %v4910_v4 = vpop.f32.mrb[55].mxu0  ;;  %v4933_v44 = vpop.f32.mrb[55].mxu1 }
 0x1f1   : > { %v1623_v49 = vmul.f32 0.7978846, %v1495_v46  ;;  %v4900_v27 = vadd.f32 %v6169_v13, %v4043_v58  ;;  %v4904_v61 = vpop.eup %3441  ;;  %v1625_v19 = vmul.f32 0.7978846, %v1497_v1  ;;  %v1242_v40 = vmul.f32 %v1114_v17, %v4875_v45  ;;  %6172 = vst [vmem:[#allocation27_spill] sm:$0xff] %v4910_v4  ;;  %6174 = vst [vmem:[#allocation33_spill] sm:$0xff] %v4933_v44 }
 0x1f2   : > { %6171 = vst [vmem:[#allocation51_spill] sm:$0xff] %v4904_v61  ;;  %v1243_v31 = vmul.f32 %v1115_v26, %v4879_v10  ;;  %v1117_v46 = vmul.f32 %v4895_v35, %v4895_v35  ;;  %v4912_v2 = vpop.eup %3443  ;;  %2620 = vmatmul.mubr.bf16.gmra.mrb[76].mxu1 %v2089_v54  ;;  %v1368_v32 = vmul.f32 0.044715, %v1240_v47  ;;  %v4918_v1 = vadd.f32 %v6173_v15, %v4045_v59 }
 0x1f3   : > { %3447 = vtanh.f32 %v1623_v49  ;;  %v1116_v48 = vmul.f32 %v4900_v27, %v4900_v27  ;;  %v4920_v17 = vpop.eup %3445  ;;  %v1370_v26 = vmul.f32 0.044715, %v1242_v40  ;;  %v956_v47 = vmul.f32 0.5, %v4431_v25 }
 0x1f4   : > { %3449 = vtanh.f32 %v1625_v19  ;;  %v1371_v13 = vmul.f32 0.044715, %v1243_v31  ;;  %v1245_v41 = vmul.f32 %v1117_v46, %v4895_v35  ;;  %v1496_v4 = vadd.f32 %v1368_v32, %v4869_v29 }
 0x1f5   : > { %v1244_v49 = vmul.f32 %v1116_v48, %v4900_v27  ;;  %v1118_v54 = vmul.f32 %v4918_v1, %v4918_v1  ;;  %v1498_v61 = vadd.f32 %v1370_v26, %v4875_v45  ;;  %v960_v19 = vmul.f32 0.5, %v4505_v34  ;;  %v4937_v26 = vpop.f32.mrb[56].mxu0 }
 0x1f6   : > { %v1499_v15 = vadd.f32 %v1371_v13, %v4879_v10  ;;  %v1373_v63 = vmul.f32 0.044715, %v1245_v41  ;;  %v1624_v40 = vmul.f32 0.7978846, %v1496_v4  ;;  %v1852_v32 = vadd.f32 1.0, %v4580_v8  ;;  %6175 = vst [vmem:[#allocation28_spill] sm:$0xff] %v4937_v26 }
 0x1f7   : > { %v1372_v31 = vmul.f32 0.044715, %v1244_v49  ;;  %v1246_v46 = vmul.f32 %v1118_v54, %v4918_v1  ;;  %v1626_v48 = vmul.f32 0.7978846, %v1498_v61  ;;  %v1856_v25 = vadd.f32 1.0, %v4651_v5  ;;  %v4940_v13 = vpop.f32.mrb[56].mxu1 }
 0x1f8   : > { %v1627_v16 = vmul.f32 0.7978846, %v1499_v15  ;;  %v1501_v36 = vadd.f32 %v1373_v63, %v4895_v35  ;;  %3451 = vtanh.f32 %v1624_v40  ;;  %v1980_v4 = vmul.f32 %v1852_v32, %v956_v47  ;;  %6176 = vst [vmem:[#allocation36_spill] sm:$0xff] %v4940_v13  ;;  %v4943_v61 = vpop.f32.mrb[57].mxu0  ;;  %v4947_v40 = vpop.f32.mrb[57].mxu1 }
 0x1f9   : > { %v1500_v41 = vadd.f32 %v1372_v31, %v4900_v27  ;;  %v1374_v34 = vmul.f32 0.044715, %v1246_v46  ;;  %3453 = vtanh.f32 %v1626_v48  ;;  %v1984_v8 = vmul.f32 %v1856_v25, %v960_v19  ;;  %6177 = vst [vmem:[#allocation52_spill] sm:$0xff] %v4943_v61  ;;  %6178 = vst [vmem:[#allocation53_spill] sm:$0xff] %v4947_v40  ;;  %v6179_v19 = vld [vmem:[#allocation58_spill] sm:$0xff]  ;;  %v5022_v26 = vpop.f32.mrb[58].mxu1 }
 0x1fa   : > { %v1629_v49 = vmul.f32 0.7978846, %v1501_v36  ;;  %v958_v54 = vmul.f32 0.5, %v4436_v7  ;;  %3455 = vtanh.f32 %v1627_v16  ;;  %v962_v15 = vmul.f32 0.5, %v4516_v24  ;;  %6193 = vst [vmem:[#allocation58_spill] sm:$0xff] %v5022_v26 }
 0x1fb   : > { %v1628_v63 = vmul.f32 0.7978846, %v1500_v41  ;;  %v1502_v5 = vadd.f32 %v1374_v34, %v4918_v1  ;;  %v2092_v31 = vpack.c.bf16 %v1984_v8, %v1980_v4  ;;  %v1854_v47 = vadd.f32 1.0, %v4588_v39  ;;  %v6180_v39 = vld [vmem:[#allocation45_spill] sm:$0xff] }
 0x1fc   : > { %3457 = vtanh.f32 %v1629_v49  ;;  %v1858_v46 = vadd.f32 1.0, %v4657_v55  ;;  %v4955_v16 = vadd.f32 %v4464_v30, %v4039_v56  ;;  %v4959_v32 = vadd.f32 %v6179_v19, %v4041_v57  ;;  %v6181_v55 = vld [vmem:[#allocation61_spill] sm:$0xff] }
 0x1fd   : > { %v4951_v36 = vpop.eup %3447  ;;  %3459 = vtanh.f32 %v1628_v63  ;;  %v1630_v7 = vmul.f32 0.7978846, %v1502_v5  ;;  %2466 = vmatprep.mubr.bf16.mxu0 %v2092_v31  ;;  %v1982_v48 = vmul.f32 %v1854_v47, %v958_v54  ;;  %v955_v41 = vmul.f32 0.5, %v6180_v39  ;;  %v6182_v5 = vld [vmem:[#allocation48_spill] sm:$0xff]  ;;  %v6183_v54 = vld [vmem:[#allocation62_spill] sm:$0xff]  ;;  %v4973_v47 = vpop.f32.mrb[58].mxu0 }
 0x1fe   : > { %v4961_v24 = vpop.eup %3449  ;;  %v1986_v25 = vmul.f32 %v1858_v46, %v962_v15  ;;  %v959_v34 = vmul.f32 0.5, %v6181_v55  ;;  %v1119_v4 = vmul.f32 %v4955_v16, %v4955_v16  ;;  %v1121_v30 = vmul.f32 %v4959_v32, %v4959_v32  ;;  %6184 = vst [vmem:[#allocation54_spill] sm:$0xff] %v4973_v47 }
 0x1ff   : > { %3461 = vtanh.f32 %v1630_v7  ;;  %v1851_v49 = vadd.f32 1.0, %v4565_v37  ;;  %v1855_v63 = vadd.f32 1.0, %v4630_v12  ;;  %v957_v31 = vmul.f32 0.5, %v6182_v5 }
 0x200   : > { %v2094_v8 = vpack.c.bf16 %v1986_v25, %v1982_v48  ;;  %v961_v15 = vmul.f32 0.5, %v6183_v54  ;;  %v1247_v46 = vmul.f32 %v1119_v4, %v4955_v16  ;;  %v1249_v7 = vmul.f32 %v1121_v30, %v4959_v32  ;;  %v6185_v48 = vld [vmem:[#allocation59_spill] sm:$0xff]  ;;  %v6186_v25 = vld [vmem:[#allocation60_spill] sm:$0xff] }
 0x201   : > { %v1979_v19 = vmul.f32 %v1851_v49, %v955_v41  ;;  %v1853_v39 = vadd.f32 1.0, %v4570_v50  ;;  %v1983_v55 = vmul.f32 %v1855_v63, %v959_v34  ;;  %v1857_v37 = vadd.f32 1.0, %v4637_v33  ;;  %v6187_v41 = vld [vmem:[#allocation63_spill] sm:$0xff] }
 0x202   : > { %2627 = vmatprep.mubr.bf16.mxu1 %v2094_v8  ;;  %v4981_v12 = vadd.f32 %v6185_v48, %v4043_v58  ;;  %v4985_v5 = vadd.f32 %v6186_v25, %v4045_v59  ;;  %v4987_v54 = vpop.eup %3451  ;;  %v1375_v4 = vmul.f32 0.044715, %v1247_v46  ;;  %v1377_v47 = vmul.f32 0.044715, %v1249_v7 }
 0x203   : > { %v1981_v30 = vmul.f32 %v1853_v39, %v957_v31  ;;  %v4991_v50 = vadd.f32 %v6187_v41, %v4039_v56  ;;  %v4993_v34 = vpop.eup %3453  ;;  %v2091_v33 = vpack.c.bf16 %v1983_v55, %v1979_v19  ;;  %v1985_v49 = vmul.f32 %v1857_v37, %v961_v15  ;;  %v6189_v39 = vld [vmem:[#allocation64_spill] sm:$0xff]  ;;  %v6192_v41 = vld [vmem:[#allocation66_spill] sm:$0xff] }
 0x204   : > { %v1120_v8 = vmul.f32 %v4981_v12, %v4981_v12  ;;  %v1122_v63 = vmul.f32 %v4985_v5, %v4985_v5  ;;  %v4999_v48 = vpop.eup %3455  ;;  %v1503_v46 = vadd.f32 %v1375_v4, %v4955_v16  ;;  %v1505_v31 = vadd.f32 %v1377_v47, %v4959_v32 }
 0x205   : > { %6188 = vst [vmem:[#allocation55_spill] sm:$0xff] %v4991_v50  ;;  %v1123_v7 = vmul.f32 %v4991_v50, %v4991_v50  ;;  %v5007_v25 = vadd.f32 %v6189_v39, %v4041_v57  ;;  %2467 = vmatmul.mubr.bf16.gmra.mrb[80].mxu0 %v2091_v33  ;;  %v2093_v19 = vpack.c.bf16 %v1985_v49, %v1981_v30  ;;  %v964_v26 = vmul.f32 0.5, %v4535_v42  ;;  %v6197_v42 = vld [vmem:[#allocation69_spill] sm:$0xff] }
 0x206   : > { %v5009_v15 = vpop.eup %3457  ;;  %v1248_v55 = vmul.f32 %v1120_v8, %v4981_v12  ;;  %v1250_v37 = vmul.f32 %v1122_v63, %v4985_v5  ;;  %v5015_v4 = vadd.f32 %v6192_v41, %v4043_v58  ;;  %v1631_v40 = vmul.f32 0.7978846, %v1503_v46  ;;  %v6194_v8 = vld [vmem:[#allocation67_spill] sm:$0xff]  ;;  %v5030_v41 = vpop.f32.mrb[59].mxu0 }
 0x207   : > { %6190 = vst [vmem:[#allocation56_spill] sm:$0xff] %v5007_v25  ;;  %6191 = vst [vmem:[#allocation57_spill] sm:$0xff] %v5009_v15  ;;  %v5017_v47 = vpop.eup %3459  ;;  %v1633_v61 = vmul.f32 0.7978846, %v1505_v31  ;;  %v1251_v13 = vmul.f32 %v1123_v7, %v4991_v50  ;;  %v1125_v39 = vmul.f32 %v5007_v25, %v5007_v25  ;;  %2628 = vmatmul.mubr.bf16.gmra.mrb[80].mxu1 %v2093_v19 }
 0x208   : > { %v1376_v30 = vmul.f32 0.044715, %v1248_v55  ;;  %v1378_v33 = vmul.f32 0.044715, %v1250_v37  ;;  %v1124_v49 = vmul.f32 %v5015_v4, %v5015_v4  ;;  %v5028_v63 = vadd.f32 %v6194_v8, %v4045_v59  ;;  %6196 = vst [vmem:[#allocation61_spill] sm:$0xff] %v5030_v41 }
 0x209   : > { %v5032_v46 = vpop.eup %3461  ;;  %3463 = vtanh.f32 %v1631_v40  ;;  %v1379_v31 = vmul.f32 0.044715, %v1251_v13  ;;  %v1253_v7 = vmul.f32 %v1125_v39, %v5007_v25  ;;  %v968_v40 = vmul.f32 0.5, %v4645_v11 }
 0x20a   : > { %6195 = vst [vmem:[#allocation45_spill] sm:$0xff] %v5028_v63  ;;  %3465 = vtanh.f32 %v1633_v61  ;;  %v1504_v19 = vadd.f32 %v1376_v30, %v4981_v12  ;;  %v1506_v55 = vadd.f32 %v1378_v33, %v4985_v5  ;;  %v1252_v37 = vmul.f32 %v1124_v49, %v5015_v4 }
 0x20b   : > { %v1507_v8 = vadd.f32 %v1379_v31, %v4991_v50  ;;  %v1381_v44 = vmul.f32 0.044715, %v1253_v7  ;;  %v1126_v41 = vmul.f32 %v5028_v63, %v5028_v63  ;;  %v5045_v61 = vadd.f32 %v6197_v42, %v4039_v56  ;;  %v5050_v7 = vpop.f32.mrb[59].mxu1  ;;  %v5052_v50 = vpop.f32.mrb[60].mxu0 }
 0x20c   : > { %v1632_v13 = vmul.f32 0.7978846, %v1504_v19  ;;  %v1634_v15 = vmul.f32 0.7978846, %v1506_v55  ;;  %v1380_v39 = vmul.f32 0.044715, %v1252_v37 }
 0x20d   : > { %6198 = vst [vmem:[#allocation48_spill] sm:$0xff] %v5045_v61  ;;  %v1635_v30 = vmul.f32 0.7978846, %v1507_v8  ;;  %v1509_v33 = vadd.f32 %v1381_v44, %v5007_v25  ;;  %v1254_v49 = vmul.f32 %v1126_v41, %v5028_v63  ;;  %v1860_v31 = vadd.f32 1.0, %v4681_v18  ;;  %6199 = vst [vmem:[#allocation62_spill] sm:$0xff] %v5050_v7  ;;  %v5057_v37 = vpop.f32.mrb[60].mxu1 }
 0x20e   : > { %6200 = vst [vmem:[#allocation59_spill] sm:$0xff] %v5052_v50  ;;  %3467 = vtanh.f32 %v1632_v13  ;;  %v1508_v11 = vadd.f32 %v1380_v39, %v5015_v4  ;;  %v1864_v19 = vadd.f32 1.0, %v4759_v43  ;;  %v966_v55 = vmul.f32 0.5, %v4547_v0  ;;  %6201 = vst [vmem:[#allocation60_spill] sm:$0xff] %v5057_v37  ;;  %v5059_v41 = vpop.f32.mrb[61].mxu0  ;;  %v5062_v13 = vpop.f32.mrb[61].mxu1 }
 0x20f   : > { %3469 = vtanh.f32 %v1634_v15  ;;  %v1637_v8 = vmul.f32 0.7978846, %v1509_v33  ;;  %v1382_v44 = vmul.f32 0.044715, %v1254_v49  ;;  %v1988_v42 = vmul.f32 %v1860_v31, %v964_v26  ;;  %6202 = vst [vmem:[#allocation63_spill] sm:$0xff] %v5059_v41  ;;  %6203 = vst [vmem:[#allocation64_spill] sm:$0xff] %v5062_v13 }
 0x210   : > { %3471 = vtanh.f32 %v1635_v30  ;;  %v1636_v18 = vmul.f32 0.7978846, %v1508_v11  ;;  %v1992_v7 = vmul.f32 %v1864_v19, %v968_v40  ;;  %v970_v50 = vmul.f32 0.5, %v4649_v3  ;;  %v6204_v30 = vld [vmem:[#allocation70_spill] sm:$0xff]  ;;  %v6206_v11 = vld [vmem:[#allocation65_spill] sm:$0xff] }
 0x211   : > { %3473 = vtanh.f32 %v1637_v8  ;;  %v1510_v43 = vadd.f32 %v1382_v44, %v5028_v63  ;;  %v1862_v0 = vadd.f32 1.0, %v4688_v23  ;;  %v1866_v39 = vadd.f32 1.0, %v4770_v38  ;;  %v6212_v37 = vld [vmem:[#allocation14_spill] sm:$0xff] }
 0x212   : > { %3475 = vtanh.f32 %v1636_v18  ;;  %v2096_v15 = vpack.c.bf16 %v1992_v7, %v1988_v42  ;;  %v1127_v26 = vmul.f32 %v5045_v61, %v5045_v61  ;;  %v5071_v33 = vadd.f32 %v6204_v30, %v4041_v57  ;;  %v6207_v7 = vld [vmem:[#allocation81_spill] sm:$0xff]  ;;  %v6208_v42 = vld [vmem:[#allocation24_spill] sm:$0xff] }
 0x213   : > { %v5073_v40 = vpop.eup %3463  ;;  %v1638_v3 = vmul.f32 0.7978846, %v1510_v43  ;;  %v1990_v49 = vmul.f32 %v1862_v0, %v966_v55  ;;  %v1994_v31 = vmul.f32 %v1866_v39, %v970_v50  ;;  %v963_v19 = vmul.f32 0.5, %v6206_v11  ;;  %v6209_v55 = vld [vmem:[#allocation68_spill] sm:$0xff]  ;;  %v5085_v0 = vpop.f32.mrb[62].mxu0 }
 0x214   : > { %6205 = vst [vmem:[#allocation66_spill] sm:$0xff] %v5071_v33  ;;  %v5076_v8 = vpop.eup %3465  ;;  %2474 = vmatprep.mubr.bf16.mxu0 %v2096_v15  ;;  %v1255_v23 = vmul.f32 %v1127_v26, %v5045_v61  ;;  %v1129_v38 = vmul.f32 %v5071_v33, %v5071_v33  ;;  %v967_v44 = vmul.f32 0.5, %v6207_v7  ;;  %v1859_v18 = vadd.f32 1.0, %v6208_v42  ;;  %6210 = vst [vmem:[#allocation67_spill] sm:$0xff] %v5085_v0  ;;  %v6211_v26 = vld [vmem:[#allocation82_spill] sm:$0xff] }
 0x215   : > { %3477 = vtanh.f32 %v1638_v3  ;;  %v2098_v30 = vpack.c.bf16 %v1994_v31, %v1990_v49  ;;  %v1863_v43 = vadd.f32 1.0, %v4737_v62  ;;  %v965_v50 = vmul.f32 0.5, %v6209_v55  ;;  %v6213_v3 = vld [vmem:[#allocation71_spill] sm:$0xff] }
 0x216   : > { %v1383_v39 = vmul.f32 0.044715, %v1255_v23  ;;  %v1257_v15 = vmul.f32 %v1129_v38, %v5071_v33  ;;  %v1987_v11 = vmul.f32 %v1859_v18, %v963_v19  ;;  %v969_v13 = vmul.f32 0.5, %v6211_v26  ;;  %v6214_v38 = vld [vmem:[#allocation72_spill] sm:$0xff]  ;;  %v6215_v18 = vld [vmem:[#allocation73_spill] sm:$0xff] }
 0x217   : > { %2635 = vmatprep.mubr.bf16.mxu1 %v2098_v30  ;;  %v1991_v41 = vmul.f32 %v1863_v43, %v967_v44  ;;  %v1861_v7 = vadd.f32 1.0, %v6212_v37  ;;  %v1865_v42 = vadd.f32 1.0, %v4740_v21  ;;  %v5093_v49 = vadd.f32 %v6213_v3, %v4043_v58 }
 0x218   : > { %v5095_v62 = vpop.eup %3467  ;;  %v1511_v31 = vadd.f32 %v1383_v39, %v5045_v61  ;;  %v1385_v23 = vmul.f32 0.044715, %v1257_v15  ;;  %v5100_v19 = vadd.f32 %v6214_v38, %v4045_v59  ;;  %v5104_v44 = vadd.f32 %v6215_v18, %v4039_v56  ;;  %v5117_v18 = vpop.f32.mrb[62].mxu1 }
 0x219   : > { %v5106_v37 = vpop.eup %3469  ;;  %v2095_v21 = vpack.c.bf16 %v1991_v41, %v1987_v11  ;;  %v1989_v30 = vmul.f32 %v1861_v7, %v965_v50  ;;  %v1993_v43 = vmul.f32 %v1865_v42, %v969_v13  ;;  %v1128_v55 = vmul.f32 %v5093_v49, %v5093_v49  ;;  %6218 = vst [vmem:[#allocation65_spill] sm:$0xff] %v5117_v18  ;;  %v6220_v50 = vld [vmem:[#allocation74_spill] sm:$0xff]  ;;  %v6222_v7 = vld [vmem:[#allocation75_spill] sm:$0xff]  ;;  %v5158_v63 = vpop.f32.mrb[63].mxu1 }
 0x21a   : > { %6216 = vst [vmem:[#allocation69_spill] sm:$0xff] %v5104_v44  ;;  %v5110_v26 = vpop.eup %3471  ;;  %v1639_v39 = vmul.f32 0.7978846, %v1511_v31  ;;  %v1513_v15 = vadd.f32 %v1385_v23, %v5071_v33  ;;  %v1130_v3 = vmul.f32 %v5100_v19, %v5100_v19  ;;  %v1131_v38 = vmul.f32 %v5104_v44, %v5104_v44  ;;  %6227 = vst [vmem:[#allocation71_spill] sm:$0xff] %v5158_v63 }
 0x21b   : > { %6217 = vst [vmem:[#allocation70_spill] sm:$0xff] %v5110_v26  ;;  %v5119_v0 = vpop.eup %3473  ;;  %2475 = vmatmul.mubr.bf16.gmra.mrb[84].mxu0 %v2095_v21  ;;  %v2097_v41 = vpack.c.bf16 %v1993_v43, %v1989_v30  ;;  %v1256_v13 = vmul.f32 %v1128_v55, %v5093_v49  ;;  %v5124_v11 = vadd.f32 %v6220_v50, %v4041_v57  ;;  %v5134_v21 = vpop.f32.mrb[63].mxu0  ;;  %v6224_v50 = vld [vmem:[#allocation76_spill] sm:$0xff] }
 0x21c   : > { %6219 = vst [vmem:[#allocation81_spill] sm:$0xff] %v5119_v0  ;;  %v5128_v42 = vadd.f32 %v6222_v7, %v4043_v58  ;;  %v5130_v31 = vpop.eup %3475  ;;  %3479 = vtanh.f32 %v1639_v39  ;;  %v1641_v23 = vmul.f32 0.7978846, %v1513_v15  ;;  %v1258_v18 = vmul.f32 %v1130_v3, %v5100_v19  ;;  %6223 = vst [vmem:[#allocation68_spill] sm:$0xff] %v5134_v21 }
 0x21d   : > { %6221 = vst [vmem:[#allocation24_spill] sm:$0xff] %v5124_v11  ;;  %v1259_v0 = vmul.f32 %v1131_v38, %v5104_v44  ;;  %2636 = vmatmul.mubr.bf16.gmra.mrb[84].mxu1 %v2097_v41  ;;  %v1384_v30 = vmul.f32 0.044715, %v1256_v13  ;;  %v1133_v43 = vmul.f32 %v5124_v11, %v5124_v11  ;;  %v5142_v7 = vadd.f32 %v6224_v50, %v4045_v59 }
 0x21e   : > { %v1132_v55 = vmul.f32 %v5128_v42, %v5128_v42  ;;  %3481 = vtanh.f32 %v1641_v23  ;;  %v1386_v39 = vmul.f32 0.044715, %v1258_v18  ;;  %v972_v3 = vmul.f32 0.5, %v4679_v53 }
 0x21f   : > { %6225 = vst [vmem:[#allocation82_spill] sm:$0xff] %v5142_v7  ;;  %v1387_v15 = vmul.f32 0.044715, %v1259_v0  ;;  %v5145_v38 = vpop.eup %3477  ;;  %v1512_v41 = vadd.f32 %v1384_v30, %v5093_v49  ;;  %v1261_v13 = vmul.f32 %v1133_v43, %v5124_v11  ;;  %v1134_v33 = vmul.f32 %v5142_v7, %v5142_v7 }
 0x220   : > { %6226 = vst [vmem:[#allocation14_spill] sm:$0xff] %v5145_v38  ;;  %v1260_v21 = vmul.f32 %v1132_v55, %v5128_v42  ;;  %v1514_v25 = vadd.f32 %v1386_v39, %v5100_v19  ;;  %v976_v18 = vmul.f32 0.5, %v4757_v20  ;;  %v1868_v0 = vadd.f32 1.0, %v4794_v14 }
 0x221   : > { %v1515_v50 = vadd.f32 %v1387_v15, %v5104_v44  ;;  %v1640_v53 = vmul.f32 0.7978846, %v1512_v41  ;;  %v1389_v23 = vmul.f32 0.044715, %v1261_v13  ;;  %v1262_v30 = vmul.f32 %v1134_v33, %v5142_v7  ;;  %v6228_v41 = vld [vmem:[#allocation26_spill] sm:$0xff] }
 0x222   : > { %v1388_v26 = vmul.f32 0.044715, %v1260_v21  ;;  %v1642_v61 = vmul.f32 0.7978846, %v1514_v25  ;;  %v1872_v55 = vadd.f32 1.0, %v4871_v52  ;;  %v1996_v38 = vmul.f32 %v1868_v0, %v972_v3  ;;  %v6229_v0 = vld [vmem:[#allocation20_spill] sm:$0xff] }
 0x223   : > { %v1643_v43 = vmul.f32 0.7978846, %v1515_v50  ;;  %3483 = vtanh.f32 %v1640_v53  ;;  %v1517_v39 = vadd.f32 %v1389_v23, %v5124_v11  ;;  %v1390_v20 = vmul.f32 0.044715, %v1262_v30 }
 0x224   : > { %v1516_v15 = vadd.f32 %v1388_v26, %v5128_v42  ;;  %3485 = vtanh.f32 %v1642_v61  ;;  %v2000_v14 = vmul.f32 %v1872_v55, %v976_v18  ;;  %v974_v13 = vmul.f32 0.5, %v6228_v41  ;;  %v6230_v26 = vld [vmem:[#allocation77_spill] sm:$0xff] }
 0x225   : > { %v978_v21 = vmul.f32 0.5, %v4764_v9  ;;  %3487 = vtanh.f32 %v1643_v43  ;;  %v1645_v25 = vmul.f32 0.7978846, %v1517_v39  ;;  %v1518_v52 = vadd.f32 %v1390_v20, %v5142_v7  ;;  %v6232_v9 = vld [vmem:[#allocation78_spill] sm:$0xff]  ;;  %v6234_v43 = vld [vmem:[#allocation21_spill] sm:$0xff] }
 0x226   : > { %v1644_v33 = vmul.f32 0.7978846, %v1516_v15  ;;  %v5165_v3 = vpop.eup %3479  ;;  %v2100_v50 = vpack.c.bf16 %v2000_v14, %v1996_v38  ;;  %v1870_v53 = vadd.f32 1.0, %v6229_v0  ;;  %v1874_v23 = vadd.f32 1.0, %v4881_v28  ;;  %v6235_v14 = vld [vmem:[#allocation30_spill] sm:$0xff] }
 0x227   : > { %v5171_v61 = vadd.f32 %v6230_v26, %v4039_v56  ;;  %3489 = vtanh.f32 %v1645_v25  ;;  %v1646_v18 = vmul.f32 0.7978846, %v1518_v52  ;;  %v5175_v30 = vadd.f32 %v6232_v9, %v4041_v57  ;;  %v6236_v25 = vld [vmem:[#allocation25_spill] sm:$0xff] }
 0x228   : > { %v971_v55 = vmul.f32 0.5, %v6234_v43  ;;  %v5178_v39 = vpop.eup %3481  ;;  %3491 = vtanh.f32 %v1644_v33  ;;  %2482 = vmatprep.mubr.bf16.mxu0 %v2100_v50  ;;  %v1998_v38 = vmul.f32 %v1870_v53, %v974_v13  ;;  %v2002_v15 = vmul.f32 %v1874_v23, %v978_v21  ;;  %v6237_v33 = vld [vmem:[#allocation12_spill] sm:$0xff]  ;;  %v6238_v53 = vld [vmem:[#allocation23_spill] sm:$0xff] }
 0x229   : > { %6231 = vst [vmem:[#allocation72_spill] sm:$0xff] %v5171_v61  ;;  %6233 = vst [vmem:[#allocation73_spill] sm:$0xff] %v5175_v30  ;;  %v1135_v28 = vmul.f32 %v5171_v61, %v5171_v61  ;;  %3493 = vtanh.f32 %v1646_v18  ;;  %v1137_v20 = vmul.f32 %v5175_v30, %v5175_v30  ;;  %v975_v41 = vmul.f32 0.5, %v6235_v14  ;;  %v6239_v18 = vld [vmem:[#allocation15_spill] sm:$0xff] }
 0x22a   : > { %v1867_v52 = vadd.f32 1.0, %v6236_v25  ;;  %v2102_v0 = vpack.c.bf16 %v2002_v15, %v1998_v38  ;;  %v1871_v9 = vadd.f32 1.0, %v4835_v60  ;;  %v973_v50 = vmul.f32 0.5, %v6237_v33  ;;  %v6240_v38 = vld [vmem:[#allocation79_spill] sm:$0xff] }
 0x22b   : > { %v1263_v26 = vmul.f32 %v1135_v28, %v5171_v61  ;;  %v1265_v13 = vmul.f32 %v1137_v20, %v5175_v30  ;;  %v977_v23 = vmul.f32 0.5, %v6238_v53  ;;  %v1869_v43 = vadd.f32 1.0, %v6239_v18  ;;  %v6241_v20 = vld [vmem:[#allocation80_spill] sm:$0xff] }
 0x22c   : > { %v1995_v21 = vmul.f32 %v1867_v52, %v971_v55  ;;  %2643 = vmatprep.mubr.bf16.mxu1 %v2102_v0  ;;  %v1999_v11 = vmul.f32 %v1871_v9, %v975_v41  ;;  %v1873_v14 = vadd.f32 1.0, %v4850_v6  ;;  %v5195_v15 = vadd.f32 %v6240_v38, %v4043_v58  ;;  %v6242_v52 = vld [vmem:[#allocation83_spill] sm:$0xff] }
 0x22d   : > { %v1391_v63 = vmul.f32 0.044715, %v1263_v26  ;;  %v5197_v28 = vpop.eup %3483  ;;  %v1393_v60 = vmul.f32 0.044715, %v1265_v13  ;;  %v1997_v25 = vmul.f32 %v1869_v43, %v973_v50  ;;  %v5201_v55 = vadd.f32 %v6241_v20, %v4045_v59  ;;  %v6244_v43 = vld [vmem:[#allocation84_spill] sm:$0xff] }
 0x22e   : > { %v5205_v33 = vadd.f32 %v6242_v52, %v4039_v56  ;;  %v5207_v0 = vpop.eup %3485  ;;  %v2099_v41 = vpack.c.bf16 %v1999_v11, %v1995_v21  ;;  %v2001_v26 = vmul.f32 %v1873_v14, %v977_v23  ;;  %v1136_v9 = vmul.f32 %v5195_v15, %v5195_v15  ;;  %v6246_v23 = vld [vmem:[#allocation85_spill] sm:$0xff] }
 0x22f   : > { %v1519_v6 = vadd.f32 %v1391_v63, %v5171_v61  ;;  %v5212_v53 = vpop.eup %3487  ;;  %v1521_v50 = vadd.f32 %v1393_v60, %v5175_v30  ;;  %v1138_v13 = vmul.f32 %v5201_v55, %v5201_v55  ;;  %v5221_v38 = vadd.f32 %v6244_v43, %v4041_v57 }
 0x230   : > { %6243 = vst [vmem:[#allocation74_spill] sm:$0xff] %v5212_v53  ;;  %v1139_v18 = vmul.f32 %v5205_v33, %v5205_v33  ;;  %2483 = vmatmul.mubr.bf16.gmra.mrb[88].mxu0 %v2099_v41  ;;  %v2101_v11 = vpack.c.bf16 %v2001_v26, %v1997_v25  ;;  %v1264_v21 = vmul.f32 %v1136_v9, %v5195_v15  ;;  %v6248_v41 = vld [vmem:[#allocation86_spill] sm:$0xff]  ;;  %v1880_v7 = vadd.f32 1.0, %v4987_v54 }
 0x231   : > { %6245 = vst [vmem:[#allocation75_spill] sm:$0xff] %v5221_v38  ;;  %v1647_v63 = vmul.f32 0.7978846, %v1519_v6  ;;  %v5226_v14 = vadd.f32 %v6246_v23, %v4043_v58  ;;  %v5228_v60 = vpop.eup %3489  ;;  %v1649_v20 = vmul.f32 0.7978846, %v1521_v50  ;;  %v1266_v52 = vmul.f32 %v1138_v13, %v5201_v55 }
 0x232   : > { %6247 = vst [vmem:[#allocation76_spill] sm:$0xff] %v5228_v60  ;;  %v1267_v30 = vmul.f32 %v1139_v18, %v5205_v33  ;;  %v1141_v43 = vmul.f32 %v5221_v38, %v5221_v38  ;;  %v5234_v53 = vpop.eup %3491  ;;  %2644 = vmatmul.mubr.bf16.gmra.mrb[88].mxu1 %v2101_v11  ;;  %v1392_v25 = vmul.f32 0.044715, %v1264_v21  ;;  %v5240_v26 = vadd.f32 %v6248_v41, %v4045_v59 }
 0x233   : > { %3495 = vtanh.f32 %v1647_v63  ;;  %v1140_v6 = vmul.f32 %v5226_v14, %v5226_v14  ;;  %v5242_v9 = vpop.eup %3493  ;;  %v1394_v50 = vmul.f32 0.044715, %v1266_v52  ;;  %v980_v21 = vmul.f32 0.5, %v4792_v22 }
 0x234   : > { %6249 = vst [vmem:[#allocation26_spill] sm:$0xff] %v5242_v9  ;;  %3497 = vtanh.f32 %v1649_v20  ;;  %v1395_v13 = vmul.f32 0.044715, %v1267_v30  ;;  %v1269_v18 = vmul.f32 %v1141_v43, %v5221_v38  ;;  %v1520_v23 = vadd.f32 %v1392_v25, %v5195_v15 }
 0x235   : > { %v1268_v63 = vmul.f32 %v1140_v6, %v5226_v14  ;;  %v1142_v11 = vmul.f32 %v5240_v26, %v5240_v26  ;;  %v1522_v60 = vadd.f32 %v1394_v50, %v5201_v55  ;;  %v984_v20 = vmul.f32 0.5, %v4869_v29 }
 0x236   : > { %v1523_v41 = vadd.f32 %v1395_v13, %v5205_v33  ;;  %v1397_v61 = vmul.f32 0.044715, %v1269_v18  ;;  %v1648_v52 = vmul.f32 0.7978846, %v1520_v23  ;;  %v1876_v25 = vadd.f32 1.0, %v4912_v2 }
 0x237   : > { %v1396_v30 = vmul.f32 0.044715, %v1268_v63  ;;  %v1270_v43 = vmul.f32 %v1142_v11, %v5240_v26  ;;  %v1650_v44 = vmul.f32 0.7978846, %v1522_v60  ;;  %v2008_v29 = vmul.f32 %v1880_v7, %v984_v20  ;;  %v6250_v7 = vld [vmem:[#allocation13_spill] sm:$0xff] }
 0x238   : > { %v1651_v6 = vmul.f32 0.7978846, %v1523_v41  ;;  %v1525_v9 = vadd.f32 %v1397_v61, %v5221_v38  ;;  %3499 = vtanh.f32 %v1648_v52  ;;  %v2004_v13 = vmul.f32 %v1876_v25, %v980_v21 }
 0x239   : > { %v1524_v22 = vadd.f32 %v1396_v30, %v5226_v14  ;;  %v1398_v50 = vmul.f32 0.044715, %v1270_v43  ;;  %3501 = vtanh.f32 %v1650_v44  ;;  %v982_v23 = vmul.f32 0.5, %v4806_v51  ;;  %v6251_v51 = vld [vmem:[#allocation22_spill] sm:$0xff] }
 0x23a   : > { %v1653_v18 = vmul.f32 0.7978846, %v1525_v9  ;;  %3503 = vtanh.f32 %v1651_v6  ;;  %v986_v60 = vmul.f32 0.5, %v4875_v45  ;;  %v2104_v61 = vpack.c.bf16 %v2008_v29, %v2004_v13  ;;  %v6256_v29 = vld [vmem:[#allocation19_spill] sm:$0xff] }
 0x23b   : > { %v1652_v63 = vmul.f32 0.7978846, %v1524_v22  ;;  %v1526_v2 = vadd.f32 %v1398_v50, %v5240_v26  ;;  %v1878_v54 = vadd.f32 1.0, %v4920_v17  ;;  %v1882_v11 = vadd.f32 1.0, %v4993_v34  ;;  %v6253_v17 = vld [vmem:[#allocation18_spill] sm:$0xff]  ;;  %v6254_v34 = vld [vmem:[#allocation49_spill] sm:$0xff] }
 0x23c   : > { %3505 = vtanh.f32 %v1653_v18  ;;  %v5267_v9 = vadd.f32 %v6250_v7, %v4039_v56  ;;  %v5271_v21 = vadd.f32 %v6251_v51, %v4041_v57  ;;  %2490 = vmatprep.mubr.bf16.mxu0 %v2104_v61  ;;  %v979_v30 = vmul.f32 0.5, %v6253_v17  ;;  %v6255_v22 = vld [vmem:[#allocation44_spill] sm:$0xff]  ;;  %v6259_v17 = vld [vmem:[#allocation29_spill] sm:$0xff] }
 0x23d   : > { %v5263_v41 = vpop.eup %3495  ;;  %3507 = vtanh.f32 %v1652_v63  ;;  %v1654_v44 = vmul.f32 0.7978846, %v1526_v2  ;;  %v2006_v45 = vmul.f32 %v1878_v54, %v982_v23  ;;  %v2010_v52 = vmul.f32 %v1882_v11, %v986_v60  ;;  %v6257_v23 = vld [vmem:[#allocation39_spill] sm:$0xff] }
 0x23e   : > { %6252 = vst [vmem:[#allocation20_spill] sm:$0xff] %v5271_v21  ;;  %v5273_v20 = vpop.eup %3497  ;;  %v983_v43 = vmul.f32 0.5, %v6254_v34  ;;  %v1143_v25 = vmul.f32 %v5267_v9, %v5267_v9  ;;  %v1145_v6 = vmul.f32 %v5271_v21, %v5271_v21  ;;  %v1875_v50 = vadd.f32 1.0, %v6255_v22  ;;  %v6258_v11 = vld [vmem:[#allocation51_spill] sm:$0xff] }
 0x23f   : > { %3509 = vtanh.f32 %v1654_v44  ;;  %v2106_v13 = vpack.c.bf16 %v2010_v52, %v2006_v45  ;;  %v1879_v18 = vadd.f32 1.0, %v4951_v36  ;;  %v981_v63 = vmul.f32 0.5, %v6256_v29  ;;  %v6260_v36 = vld [vmem:[#allocation34_spill] sm:$0xff] }
 0x240   : > { %v985_v2 = vmul.f32 0.5, %v6257_v23  ;;  %v1271_v60 = vmul.f32 %v1143_v25, %v5267_v9  ;;  %v1273_v61 = vmul.f32 %v1145_v6, %v5271_v21  ;;  %v2003_v54 = vmul.f32 %v1875_v50, %v979_v30  ;;  %v6261_v30 = vld [vmem:[#allocation35_spill] sm:$0xff] }
 0x241   : > { %v1877_v44 = vadd.f32 1.0, %v6258_v11  ;;  %2651 = vmatprep.mubr.bf16.mxu1 %v2106_v13  ;;  %v2007_v7 = vmul.f32 %v1879_v18, %v983_v43  ;;  %v1881_v51 = vadd.f32 1.0, %v4961_v24  ;;  %v5291_v45 = vadd.f32 %v6259_v17, %v4043_v58  ;;  %v6264_v11 = vld [vmem:[#allocation37_spill] sm:$0xff]  ;;  %v6266_v17 = vld [vmem:[#allocation38_spill] sm:$0xff] }
 0x242   : > { %v5295_v52 = vadd.f32 %v6260_v36, %v4045_v59  ;;  %v5297_v34 = vpop.eup %3499  ;;  %v1399_v25 = vmul.f32 0.044715, %v1271_v60  ;;  %v1401_v22 = vmul.f32 0.044715, %v1273_v61  ;;  %v5301_v50 = vadd.f32 %v6261_v30, %v4039_v56 }
 0x243   : > { %v2005_v6 = vmul.f32 %v1877_v44, %v981_v63  ;;  %v5303_v43 = vpop.eup %3501  ;;  %v2103_v24 = vpack.c.bf16 %v2007_v7, %v2003_v54  ;;  %v2009_v13 = vmul.f32 %v1881_v51, %v985_v2  ;;  %v1144_v18 = vmul.f32 %v5291_v45, %v5291_v45 }
 0x244   : > { %6262 = vst [vmem:[#allocation77_spill] sm:$0xff] %v5301_v50  ;;  %v1146_v29 = vmul.f32 %v5295_v52, %v5295_v52  ;;  %v5309_v23 = vpop.eup %3503  ;;  %v1527_v60 = vadd.f32 %v1399_v25, %v5267_v9  ;;  %v1529_v63 = vadd.f32 %v1401_v22, %v5271_v21  ;;  %v1147_v61 = vmul.f32 %v5301_v50, %v5301_v50 }
 0x245   : > { %6263 = vst [vmem:[#allocation78_spill] sm:$0xff] %v5309_v23  ;;  %v5317_v44 = vadd.f32 %v6264_v11, %v4041_v57  ;;  %2491 = vmatmul.mubr.bf16.gmra.mrb[92].mxu0 %v2103_v24  ;;  %v2105_v54 = vpack.c.bf16 %v2009_v13, %v2005_v6  ;;  %v1272_v7 = vmul.f32 %v1144_v18, %v5291_v45  ;;  %v6267_v18 = vld [vmem:[#allocation17_spill] sm:$0xff] }
 0x246   : > { %v5319_v2 = vpop.eup %3505  ;;  %v1274_v51 = vmul.f32 %v1146_v29, %v5295_v52  ;;  %v5325_v36 = vadd.f32 %v6266_v17, %v4043_v58  ;;  %v1655_v22 = vmul.f32 0.7978846, %v1527_v60  ;;  %v1657_v30 = vmul.f32 0.7978846, %v1529_v63 }
 0x247   : > { %6265 = vst [vmem:[#allocation21_spill] sm:$0xff] %v5319_v2  ;;  %v5327_v25 = vpop.eup %3507  ;;  %v1275_v21 = vmul.f32 %v1147_v61, %v5301_v50  ;;  %v1149_v11 = vmul.f32 %v5317_v44, %v5317_v44  ;;  %2652 = vmatmul.mubr.bf16.gmra.mrb[92].mxu1 %v2105_v54  ;;  %v1400_v24 = vmul.f32 0.044715, %v1272_v7  ;;  %v5336_v29 = vadd.f32 %v6267_v18, %v4045_v59 }
 0x248   : > { %v1402_v6 = vmul.f32 0.044715, %v1274_v51  ;;  %v1148_v13 = vmul.f32 %v5325_v36, %v5325_v36  ;;  %3511 = vtanh.f32 %v1655_v22  ;;  %v988_v61 = vmul.f32 0.5, %v4900_v27  ;;  %v6268_v27 = vld [vmem:[#allocation40_spill] sm:$0xff] }
 0x249   : > { %v5338_v17 = vpop.eup %3509  ;;  %v1403_v60 = vmul.f32 0.044715, %v1275_v21  ;;  %v1277_v63 = vmul.f32 %v1149_v11, %v5317_v44  ;;  %3513 = vtanh.f32 %v1657_v30  ;;  %v1528_v54 = vadd.f32 %v1400_v24, %v5291_v45 }
 0x24a   : > { %v1530_v7 = vadd.f32 %v1402_v6, %v5295_v52  ;;  %v1276_v51 = vmul.f32 %v1148_v13, %v5325_v36  ;;  %v1150_v18 = vmul.f32 %v5336_v29, %v5336_v29  ;;  %v992_v22 = vmul.f32 0.5, %v4981_v12 }
 0x24b   : > { %v1531_v2 = vadd.f32 %v1403_v60, %v5301_v50  ;;  %v1405_v38 = vmul.f32 0.044715, %v1277_v63  ;;  %v1656_v21 = vmul.f32 0.7978846, %v1528_v54  ;;  %v5351_v30 = vadd.f32 %v6268_v27, %v4039_v56 }
 0x24c   : > { %v1658_v23 = vmul.f32 0.7978846, %v1530_v7  ;;  %v1404_v11 = vmul.f32 0.044715, %v1276_v51  ;;  %v1278_v13 = vmul.f32 %v1150_v18, %v5336_v29  ;;  %v1884_v60 = vadd.f32 1.0, %v5017_v47 }
 0x24d   : > { %v1659_v24 = vmul.f32 0.7978846, %v1531_v2  ;;  %v1533_v6 = vadd.f32 %v1405_v38, %v5317_v44  ;;  %3515 = vtanh.f32 %v1656_v21  ;;  %v1888_v50 = vadd.f32 1.0, %v5095_v62 }
 0x24e   : > { %v1532_v63 = vadd.f32 %v1404_v11, %v5325_v36  ;;  %v990_v12 = vmul.f32 0.5, %v4918_v1  ;;  %3517 = vtanh.f32 %v1658_v23  ;;  %v1406_v7 = vmul.f32 0.044715, %v1278_v13  ;;  %v6269_v23 = vld [vmem:[#allocation41_spill] sm:$0xff] }
 0x24f   : > { %v1661_v54 = vmul.f32 0.7978846, %v1533_v6  ;;  %v2012_v51 = vmul.f32 %v1884_v60, %v988_v61  ;;  %3519 = vtanh.f32 %v1659_v24  ;;  %v2016_v2 = vmul.f32 %v1888_v50, %v992_v22 }
 0x250   : > { %v1660_v27 = vmul.f32 0.7978846, %v1532_v63  ;;  %v994_v38 = vmul.f32 0.5, %v4985_v5  ;;  %v1534_v18 = vadd.f32 %v1406_v7, %v5336_v29  ;;  %v1886_v47 = vadd.f32 1.0, %v5032_v46 }
 0x251   : > { %3521 = vtanh.f32 %v1661_v54  ;;  %v1890_v21 = vadd.f32 1.0, %v5106_v37  ;;  %v2108_v62 = vpack.c.bf16 %v2016_v2, %v2012_v51  ;;  %v1151_v1 = vmul.f32 %v5351_v30, %v5351_v30 }
 0x252   : > { %3523 = vtanh.f32 %v1660_v27  ;;  %v5367_v61 = vadd.f32 %v6269_v23, %v4041_v57  ;;  %v5369_v11 = vpop.eup %3511  ;;  %v1662_v50 = vmul.f32 0.7978846, %v1534_v18  ;;  %v2014_v5 = vmul.f32 %v1886_v47, %v990_v12 }
 0x253   : > { %v2018_v22 = vmul.f32 %v1890_v21, %v994_v38  ;;  %v987_v24 = vmul.f32 0.5, %v4879_v10  ;;  %v5372_v6 = vpop.eup %3513  ;;  %2498 = vmatprep.mubr.bf16.mxu0 %v2108_v62  ;;  %v1279_v46 = vmul.f32 %v1151_v1, %v5351_v30  ;;  %v991_v13 = vmul.f32 0.5, %v4955_v16  ;;  %v6271_v38 = vld [vmem:[#allocation57_spill] sm:$0xff]  ;;  %v6273_v62 = vld [vmem:[#allocation42_spill] sm:$0xff] }
 0x254   : > { %6270 = vst [vmem:[#allocation30_spill] sm:$0xff] %v5367_v61  ;;  %v1153_v37 = vmul.f32 %v5367_v61, %v5367_v61  ;;  %v1883_v60 = vadd.f32 1.0, %v4999_v48  ;;  %3525 = vtanh.f32 %v1662_v50  ;;  %v1887_v54 = vadd.f32 1.0, %v5073_v40  ;;  %v6272_v48 = vld [vmem:[#allocation16_spill] sm:$0xff] }
 0x255   : > { %v2110_v63 = vpack.c.bf16 %v2018_v22, %v2014_v5  ;;  %v989_v12 = vmul.f32 0.5, %v4895_v35  ;;  %v1407_v7 = vmul.f32 0.044715, %v1279_v46  ;;  %v993_v27 = vmul.f32 0.5, %v4959_v32  ;;  %v6274_v32 = vld [vmem:[#allocation43_spill] sm:$0xff] }
 0x256   : > { %v1281_v10 = vmul.f32 %v1153_v37, %v5367_v61  ;;  %v2011_v51 = vmul.f32 %v1883_v60, %v987_v24  ;;  %v2015_v2 = vmul.f32 %v1887_v54, %v991_v13  ;;  %v1885_v18 = vadd.f32 1.0, %v6271_v38 }
 0x257   : > { %2659 = vmatprep.mubr.bf16.mxu1 %v2110_v63  ;;  %v1889_v16 = vadd.f32 1.0, %v5076_v8  ;;  %v5387_v47 = vadd.f32 %v6272_v48, %v4043_v58  ;;  %v5389_v21 = vpop.eup %3515  ;;  %v1535_v35 = vadd.f32 %v1407_v7, %v5351_v30  ;;  %v5394_v1 = vadd.f32 %v6273_v62, %v4045_v59 }
 0x258   : > { %v1409_v40 = vmul.f32 0.044715, %v1281_v10  ;;  %v5398_v23 = vadd.f32 %v6274_v32, %v4039_v56  ;;  %v5400_v50 = vpop.eup %3517  ;;  %v2107_v8 = vpack.c.bf16 %v2015_v2, %v2011_v51  ;;  %v2013_v5 = vmul.f32 %v1885_v18, %v989_v12  ;;  %v6277_v10 = vld [vmem:[#allocation46_spill] sm:$0xff]  ;;  %v6280_v32 = vld [vmem:[#allocation31_spill] sm:$0xff] }
 0x259   : > { %v2017_v22 = vmul.f32 %v1889_v16, %v993_v27  ;;  %v1152_v24 = vmul.f32 %v5387_v47, %v5387_v47  ;;  %v5404_v46 = vpop.eup %3519  ;;  %v1663_v37 = vmul.f32 0.7978846, %v1535_v35  ;;  %v1154_v60 = vmul.f32 %v5394_v1, %v5394_v1  ;;  %v6279_v27 = vld [vmem:[#allocation47_spill] sm:$0xff] }
 0x25a   : > { %6275 = vst [vmem:[#allocation25_spill] sm:$0xff] %v5398_v23  ;;  %v1537_v13 = vadd.f32 %v1409_v40, %v5367_v61  ;;  %v1155_v63 = vmul.f32 %v5398_v23, %v5398_v23  ;;  %2499 = vmatmul.mubr.bf16.gmra.mrb[96].mxu0 %v2107_v8  ;;  %v5416_v51 = vadd.f32 %v6277_v10, %v4041_v57 }
 0x25b   : > { %v5411_v54 = vpop.eup %3521  ;;  %v2109_v7 = vpack.c.bf16 %v2017_v22, %v2013_v5  ;;  %v1280_v12 = vmul.f32 %v1152_v24, %v5387_v47  ;;  %v5420_v2 = vadd.f32 %v6279_v27, %v4043_v58  ;;  %3527 = vtanh.f32 %v1663_v37 }
 0x25c   : > { %6276 = vst [vmem:[#allocation12_spill] sm:$0xff] %v5411_v54  ;;  %6278 = vst [vmem:[#allocation23_spill] sm:$0xff] %v5416_v51  ;;  %v5422_v38 = vpop.eup %3523  ;;  %v1665_v18 = vmul.f32 0.7978846, %v1537_v13  ;;  %v1282_v16 = vmul.f32 %v1154_v60, %v5394_v1  ;;  %v1283_v48 = vmul.f32 %v1155_v63, %v5398_v23  ;;  %v1157_v40 = vmul.f32 %v5416_v51, %v5416_v51 }
 0x25d   : > { %2660 = vmatmul.mubr.bf16.gmra.mrb[96].mxu1 %v2109_v7  ;;  %v1408_v35 = vmul.f32 0.044715, %v1280_v12  ;;  %v1156_v62 = vmul.f32 %v5420_v2, %v5420_v2  ;;  %v5432_v8 = vadd.f32 %v6280_v32, %v4045_v59  ;;  %v996_v24 = vmul.f32 0.5, %v5015_v4 }
 0x25e   : > { %3529 = vtanh.f32 %v1665_v18  ;;  %v1410_v5 = vmul.f32 0.044715, %v1282_v16  ;;  %v1411_v22 = vmul.f32 0.044715, %v1283_v48  ;;  %v5435_v37 = vpop.eup %3525  ;;  %v1285_v60 = vmul.f32 %v1157_v40, %v5416_v51 }
 0x25f   : > { %6281 = vst [vmem:[#allocation15_spill] sm:$0xff] %v5432_v8  ;;  %v1536_v13 = vadd.f32 %v1408_v35, %v5387_v47  ;;  %v1284_v63 = vmul.f32 %v1156_v62, %v5420_v2  ;;  %v1158_v7 = vmul.f32 %v5432_v8, %v5432_v8  ;;  %v1000_v27 = vmul.f32 0.5, %v5093_v49 }
 0x260   : > { %v1538_v12 = vadd.f32 %v1410_v5, %v5394_v1  ;;  %v1539_v10 = vadd.f32 %v1411_v22, %v5398_v23  ;;  %v1892_v18 = vadd.f32 1.0, %v5130_v31  ;;  %v1413_v16 = vmul.f32 0.044715, %v1285_v60  ;;  %v6282_v23 = vld [vmem:[#allocation45_spill] sm:$0xff] }
 0x261   : > { %v1664_v4 = vmul.f32 0.7978846, %v1536_v13  ;;  %v1412_v48 = vmul.f32 0.044715, %v1284_v63  ;;  %v1286_v35 = vmul.f32 %v1158_v7, %v5432_v8  ;;  %v1896_v62 = vadd.f32 1.0, %v5197_v28 }
 0x262   : > { %v1666_v32 = vmul.f32 0.7978846, %v1538_v12  ;;  %v1667_v40 = vmul.f32 0.7978846, %v1539_v10  ;;  %v2020_v54 = vmul.f32 %v1892_v18, %v996_v24  ;;  %v1541_v61 = vadd.f32 %v1413_v16, %v5416_v51  ;;  %v6283_v24 = vld [vmem:[#allocation14_spill] sm:$0xff] }
 0x263   : > { %3531 = vtanh.f32 %v1664_v4  ;;  %v1540_v5 = vadd.f32 %v1412_v48, %v5420_v2  ;;  %v1414_v22 = vmul.f32 0.044715, %v1286_v35  ;;  %v2024_v49 = vmul.f32 %v1896_v62, %v1000_v27  ;;  %v6284_v4 = vld [vmem:[#allocation32_spill] sm:$0xff] }
 0x264   : > { %3533 = vtanh.f32 %v1666_v32  ;;  %v998_v31 = vmul.f32 0.5, %v6282_v23  ;;  %v1002_v13 = vmul.f32 0.5, %v5100_v19  ;;  %v1669_v60 = vmul.f32 0.7978846, %v1541_v61  ;;  %v6286_v19 = vld [vmem:[#allocation50_spill] sm:$0xff]  ;;  %v6288_v61 = vld [vmem:[#allocation55_spill] sm:$0xff] }
 0x265   : > { %3535 = vtanh.f32 %v1667_v40  ;;  %v1668_v63 = vmul.f32 0.7978846, %v1540_v5  ;;  %v1542_v7 = vadd.f32 %v1414_v22, %v5432_v8  ;;  %v5453_v12 = vpop.eup %3527  ;;  %v2112_v28 = vpack.c.bf16 %v2024_v49, %v2020_v54  ;;  %v6289_v62 = vld [vmem:[#allocation48_spill] sm:$0xff]  ;;  %v6290_v22 = vld [vmem:[#allocation70_spill] sm:$0xff] }
 0x266   : > { %v1894_v10 = vadd.f32 1.0, %v6283_v24  ;;  %v1898_v18 = vadd.f32 1.0, %v5207_v0  ;;  %v5459_v16 = vadd.f32 %v6284_v4, %v4039_v56  ;;  %3537 = vtanh.f32 %v1669_v60  ;;  %v6293_v4 = vld [vmem:[#allocation81_spill] sm:$0xff] }
 0x267   : > { %v1670_v23 = vmul.f32 0.7978846, %v1542_v7  ;;  %v5463_v27 = vadd.f32 %v6286_v19, %v4041_v57  ;;  %v995_v48 = vmul.f32 0.5, %v6288_v61  ;;  %3539 = vtanh.f32 %v1668_v63  ;;  %2506 = vmatprep.mubr.bf16.mxu0 %v2112_v28  ;;  %v6291_v63 = vld [vmem:[#allocation56_spill] sm:$0xff] }
 0x268   : > { %6285 = vst [vmem:[#allocation79_spill] sm:$0xff] %v5459_v16  ;;  %v5466_v35 = vpop.eup %3529  ;;  %v2022_v54 = vmul.f32 %v1894_v10, %v998_v31  ;;  %v2026_v32 = vmul.f32 %v1898_v18, %v1002_v13  ;;  %v1159_v0 = vmul.f32 %v5459_v16, %v5459_v16  ;;  %v999_v5 = vmul.f32 0.5, %v6289_v62  ;;  %v6292_v10 = vld [vmem:[#allocation66_spill] sm:$0xff] }
 0x269   : > { %6287 = vst [vmem:[#allocation80_spill] sm:$0xff] %v5463_v27  ;;  %3541 = vtanh.f32 %v1670_v23  ;;  %v1161_v40 = vmul.f32 %v5463_v27, %v5463_v27  ;;  %v1891_v49 = vadd.f32 1.0, %v6290_v22  ;;  %v1895_v24 = vadd.f32 1.0, %v5165_v3 }
 0x26a   : > { %v2114_v60 = vpack.c.bf16 %v2026_v32, %v2022_v54  ;;  %v1287_v7 = vmul.f32 %v1159_v0, %v5459_v16  ;;  %v997_v28 = vmul.f32 0.5, %v6291_v63  ;;  %v1001_v18 = vmul.f32 0.5, %v6292_v10  ;;  %v6294_v54 = vld [vmem:[#allocation27_spill] sm:$0xff] }
 0x26b   : > { %v1289_v31 = vmul.f32 %v1161_v40, %v5463_v27  ;;  %v2019_v13 = vmul.f32 %v1891_v49, %v995_v48  ;;  %v1893_v23 = vadd.f32 1.0, %v6293_v4  ;;  %v2023_v61 = vmul.f32 %v1895_v24, %v999_v5  ;;  %v6295_v40 = vld [vmem:[#allocation33_spill] sm:$0xff]  ;;  %v6296_v49 = vld [vmem:[#allocation28_spill] sm:$0xff] }
 0x26c   : > { %2667 = vmatprep.mubr.bf16.mxu1 %v2114_v60  ;;  %v1415_v19 = vmul.f32 0.044715, %v1287_v7  ;;  %v1897_v62 = vadd.f32 1.0, %v5178_v39  ;;  %v5483_v32 = vadd.f32 %v6294_v54, %v4043_v58  ;;  %v5489_v48 = vadd.f32 %v6295_v40, %v4045_v59 }
 0x26d   : > { %v5485_v0 = vpop.eup %3531  ;;  %v1417_v3 = vmul.f32 0.044715, %v1289_v31  ;;  %v2021_v22 = vmul.f32 %v1893_v23, %v997_v28  ;;  %v5493_v63 = vadd.f32 %v6296_v49, %v4039_v56  ;;  %v2111_v5 = vpack.c.bf16 %v2023_v61, %v2019_v13  ;;  %v6299_v23 = vld [vmem:[#allocation36_spill] sm:$0xff] }
 0x26e   : > { %v5495_v60 = vpop.eup %3533  ;;  %v1543_v39 = vadd.f32 %v1415_v19, %v5459_v16  ;;  %v2025_v7 = vmul.f32 %v1897_v62, %v1001_v18  ;;  %v1160_v24 = vmul.f32 %v5483_v32, %v5483_v32  ;;  %v1162_v31 = vmul.f32 %v5489_v48, %v5489_v48  ;;  %v6301_v61 = vld [vmem:[#allocation52_spill] sm:$0xff] }
 0x26f   : > { %6297 = vst [vmem:[#allocation83_spill] sm:$0xff] %v5493_v63  ;;  %v5500_v10 = vpop.eup %3535  ;;  %v1545_v28 = vadd.f32 %v1417_v3, %v5463_v27  ;;  %v1163_v4 = vmul.f32 %v5493_v63, %v5493_v63  ;;  %v5509_v54 = vadd.f32 %v6299_v23, %v4041_v57  ;;  %2507 = vmatmul.mubr.bf16.gmra.mrb[100].mxu0 %v2111_v5  ;;  %v6303_v5 = vld [vmem:[#allocation53_spill] sm:$0xff]  ;;  %v1904_v8 = vadd.f32 1.0, %v5297_v34 }
 0x270   : > { %6298 = vst [vmem:[#allocation84_spill] sm:$0xff] %v5500_v10  ;;  %v1671_v19 = vmul.f32 0.7978846, %v1543_v39  ;;  %v2113_v13 = vpack.c.bf16 %v2025_v7, %v2021_v22  ;;  %v1288_v18 = vmul.f32 %v1160_v24, %v5483_v32  ;;  %v5514_v62 = vadd.f32 %v6301_v61, %v4043_v58  ;;  %v5516_v3 = vpop.eup %3537 }
 0x271   : > { %6300 = vst [vmem:[#allocation85_spill] sm:$0xff] %v5509_v54  ;;  %6302 = vst [vmem:[#allocation86_spill] sm:$0xff] %v5516_v3  ;;  %v1673_v40 = vmul.f32 0.7978846, %v1545_v28  ;;  %v1290_v49 = vmul.f32 %v1162_v31, %v5489_v48  ;;  %v1291_v27 = vmul.f32 %v1163_v4, %v5493_v63  ;;  %v1165_v23 = vmul.f32 %v5509_v54, %v5509_v54  ;;  %v5522_v51 = vpop.eup %3539 }
 0x272   : > { %3543 = vtanh.f32 %v1671_v19  ;;  %2668 = vmatmul.mubr.bf16.gmra.mrb[100].mxu1 %v2113_v13  ;;  %v1416_v22 = vmul.f32 0.044715, %v1288_v18  ;;  %v1164_v39 = vmul.f32 %v5514_v62, %v5514_v62  ;;  %v5528_v7 = vadd.f32 %v6303_v5, %v4045_v59 }
 0x273   : > { %v5530_v24 = vpop.eup %3541  ;;  %3545 = vtanh.f32 %v1673_v40  ;;  %v1418_v28 = vmul.f32 0.044715, %v1290_v49  ;;  %v1419_v31 = vmul.f32 0.044715, %v1291_v27  ;;  %v1293_v4 = vmul.f32 %v1165_v23, %v5509_v54 }
 0x274   : > { %6304 = vst [vmem:[#allocation13_spill] sm:$0xff] %v5530_v24  ;;  %v1544_v61 = vadd.f32 %v1416_v22, %v5483_v32  ;;  %v1292_v19 = vmul.f32 %v1164_v39, %v5514_v62  ;;  %v1166_v13 = vmul.f32 %v5528_v7, %v5528_v7  ;;  %v1004_v18 = vmul.f32 0.5, %v5128_v42 }
 0x275   : > { %v1546_v3 = vadd.f32 %v1418_v28, %v5489_v48  ;;  %v1547_v5 = vadd.f32 %v1419_v31, %v5493_v63  ;;  %v1421_v10 = vmul.f32 0.044715, %v1293_v4  ;;  %v1008_v40 = vmul.f32 0.5, %v5195_v15 }
 0x276   : > { %v1672_v49 = vmul.f32 0.7978846, %v1544_v61  ;;  %v1420_v27 = vmul.f32 0.044715, %v1292_v19  ;;  %v1294_v23 = vmul.f32 %v1166_v13, %v5528_v7  ;;  %v1900_v22 = vadd.f32 1.0, %v5234_v53  ;;  %v6305_v61 = vld [vmem:[#allocation82_spill] sm:$0xff] }
 0x277   : > { %v1674_v16 = vmul.f32 0.7978846, %v1546_v3  ;;  %v1675_v39 = vmul.f32 0.7978846, %v1547_v5  ;;  %v1549_v24 = vadd.f32 %v1421_v10, %v5509_v54  ;;  %v2032_v15 = vmul.f32 %v1904_v8, %v1008_v40  ;;  %v6306_v5 = vld [vmem:[#allocation26_spill] sm:$0xff] }
 0x278   : > { %3547 = vtanh.f32 %v1672_v49  ;;  %v1548_v42 = vadd.f32 %v1420_v27, %v5514_v62  ;;  %v1422_v28 = vmul.f32 0.044715, %v1294_v23  ;;  %v2028_v31 = vmul.f32 %v1900_v22, %v1004_v18  ;;  %v6307_v8 = vld [vmem:[#allocation54_spill] sm:$0xff] }
 0x279   : > { %3549 = vtanh.f32 %v1674_v16  ;;  %v1677_v4 = vmul.f32 0.7978846, %v1549_v24  ;;  %v1006_v19 = vmul.f32 0.5, %v6305_v61  ;;  %v1010_v3 = vmul.f32 0.5, %v5201_v55  ;;  %v6309_v18 = vld [vmem:[#allocation58_spill] sm:$0xff] }
 0x27a   : > { %3551 = vtanh.f32 %v1675_v39  ;;  %v1676_v13 = vmul.f32 0.7978846, %v1548_v42  ;;  %v1550_v53 = vadd.f32 %v1422_v28, %v5528_v7  ;;  %v2116_v10 = vpack.c.bf16 %v2032_v15, %v2028_v31  ;;  %v6311_v39 = vld [vmem:[#allocation69_spill] sm:$0xff]  ;;  %v6313_v15 = vld [vmem:[#allocation74_spill] sm:$0xff] }
 0x27b   : > { %3553 = vtanh.f32 %v1677_v4  ;;  %v1902_v34 = vadd.f32 1.0, %v6306_v5  ;;  %v1906_v49 = vadd.f32 1.0, %v5303_v43  ;;  %v5555_v24 = vadd.f32 %v6307_v8, %v4039_v56  ;;  %v6312_v43 = vld [vmem:[#allocation72_spill] sm:$0xff] }
 0x27c   : > { %v5551_v27 = vpop.eup %3543  ;;  %3555 = vtanh.f32 %v1676_v13  ;;  %v1678_v16 = vmul.f32 0.7978846, %v1550_v53  ;;  %v5559_v40 = vadd.f32 %v6309_v18, %v4041_v57  ;;  %2514 = vmatprep.mubr.bf16.mxu0 %v2116_v10  ;;  %v1003_v42 = vmul.f32 0.5, %v6311_v39  ;;  %v6314_v5 = vld [vmem:[#allocation24_spill] sm:$0xff] }
 0x27d   : > { %6308 = vst [vmem:[#allocation22_spill] sm:$0xff] %v5555_v24  ;;  %v5561_v23 = vpop.eup %3545  ;;  %v2030_v55 = vmul.f32 %v1902_v34, %v1006_v19  ;;  %v2034_v22 = vmul.f32 %v1906_v49, %v1010_v3  ;;  %v1007_v28 = vmul.f32 0.5, %v6312_v43  ;;  %v1167_v31 = vmul.f32 %v5555_v24, %v5555_v24  ;;  %v6315_v19 = vld [vmem:[#allocation73_spill] sm:$0xff]  ;;  %v6316_v8 = vld [vmem:[#allocation76_spill] sm:$0xff] }
 0x27e   : > { %6310 = vst [vmem:[#allocation18_spill] sm:$0xff] %v5559_v40  ;;  %3557 = vtanh.f32 %v1678_v16  ;;  %v1169_v4 = vmul.f32 %v5559_v40, %v5559_v40  ;;  %v1899_v61 = vadd.f32 1.0, %v6313_v15  ;;  %v1903_v53 = vadd.f32 1.0, %v5263_v41  ;;  %v6317_v15 = vld [vmem:[#allocation61_spill] sm:$0xff]  ;;  %v6318_v41 = vld [vmem:[#allocation62_spill] sm:$0xff] }
 0x27f   : > { %v2118_v13 = vpack.c.bf16 %v2034_v22, %v2030_v55  ;;  %v1005_v10 = vmul.f32 0.5, %v6314_v5  ;;  %v1009_v3 = vmul.f32 0.5, %v6315_v19  ;;  %v1295_v34 = vmul.f32 %v1167_v31, %v5555_v24 }
 0x280   : > { %v1297_v49 = vmul.f32 %v1169_v4, %v5559_v40  ;;  %v2027_v16 = vmul.f32 %v1899_v61, %v1003_v42  ;;  %v1901_v18 = vadd.f32 1.0, %v6316_v8  ;;  %v2031_v39 = vmul.f32 %v1903_v53, %v1007_v28  ;;  %v6319_v42 = vld [vmem:[#allocation59_spill] sm:$0xff] }
 0x281   : > { %2675 = vmatprep.mubr.bf16.mxu1 %v2118_v13  ;;  %v1905_v43 = vadd.f32 1.0, %v5273_v20  ;;  %v5579_v55 = vadd.f32 %v6317_v15, %v4043_v58  ;;  %v5583_v22 = vadd.f32 %v6318_v41, %v4045_v59  ;;  %v1423_v31 = vmul.f32 0.044715, %v1295_v34  ;;  %v5597_v15 = vpop.f32.mrb[64].mxu0 }
 0x282   : > { %v5585_v5 = vpop.eup %3547  ;;  %v1425_v19 = vmul.f32 0.044715, %v1297_v49  ;;  %v2029_v4 = vmul.f32 %v1901_v18, %v1005_v10  ;;  %v5589_v61 = vadd.f32 %v6319_v42, %v4039_v56  ;;  %v2115_v20 = vpack.c.bf16 %v2031_v39, %v2027_v16  ;;  %6321 = vst [vmem:[#allocation44_spill] sm:$0xff] %v5597_v15  ;;  %v6323_v16 = vld [vmem:[#allocation60_spill] sm:$0xff]  ;;  %v5609_v18 = vpop.f32.mrb[65].mxu0 }
 0x283   : > { %v5591_v28 = vpop.eup %3549  ;;  %v2033_v13 = vmul.f32 %v1905_v43, %v1009_v3  ;;  %v1168_v53 = vmul.f32 %v5579_v55, %v5579_v55  ;;  %v1170_v8 = vmul.f32 %v5583_v22, %v5583_v22  ;;  %v1551_v10 = vadd.f32 %v1423_v31, %v5555_v24  ;;  %6324 = vst [vmem:[#allocation39_spill] sm:$0xff] %v5609_v18  ;;  %v6326_v31 = vld [vmem:[#allocation63_spill] sm:$0xff]  ;;  %v5621_v54 = vpop.f32.mrb[66].mxu0 }
 0x284   : > { %6320 = vst [vmem:[#allocation49_spill] sm:$0xff] %v5589_v61  ;;  %v5599_v41 = vpop.eup %3551  ;;  %v1553_v34 = vadd.f32 %v1425_v19, %v5559_v40  ;;  %v1171_v49 = vmul.f32 %v5589_v61, %v5589_v61  ;;  %v5607_v3 = vadd.f32 %v6323_v16, %v4041_v57  ;;  %2515 = vmatmul.mubr.bf16.gmra.mrb[104].mxu0 %v2115_v20  ;;  %v5619_v40 = vpop.f32.mrb[64].mxu1  ;;  %6328 = vst [vmem:[#allocation34_spill] sm:$0xff] %v5621_v54  ;;  %v6331_v54 = vld [vmem:[#allocation64_spill] sm:$0xff] }
 0x285   : > { %6322 = vst [vmem:[#allocation19_spill] sm:$0xff] %v5599_v41  ;;  %v5611_v39 = vpop.eup %3553  ;;  %v2117_v43 = vpack.c.bf16 %v2033_v13, %v2029_v4  ;;  %v1296_v42 = vmul.f32 %v1168_v53, %v5579_v55  ;;  %v1298_v15 = vmul.f32 %v1170_v8, %v5583_v22  ;;  %v5617_v19 = vadd.f32 %v6326_v31, %v4043_v58  ;;  %v5628_v20 = vpop.f32.mrb[65].mxu1 }
 0x286   : > { %6325 = vst [vmem:[#allocation51_spill] sm:$0xff] %v5611_v39  ;;  %6327 = vst [vmem:[#allocation29_spill] sm:$0xff] %v5619_v40  ;;  %v5623_v16 = vpop.eup %3555  ;;  %v1679_v41 = vmul.f32 0.7978846, %v1551_v10  ;;  %v1681_v18 = vmul.f32 0.7978846, %v1553_v34  ;;  %v1299_v39 = vmul.f32 %v1171_v49, %v5589_v61  ;;  %v1173_v4 = vmul.f32 %v5607_v3, %v5607_v3 }
 0x287   : > { %6329 = vst [vmem:[#allocation35_spill] sm:$0xff] %v5628_v20  ;;  %v5630_v13 = vpop.f32.mrb[67].mxu0  ;;  %2676 = vmatmul.mubr.bf16.gmra.mrb[104].mxu1 %v2117_v43  ;;  %v1424_v53 = vmul.f32 0.044715, %v1296_v42  ;;  %v1426_v8 = vmul.f32 0.044715, %v1298_v15  ;;  %v1172_v31 = vmul.f32 %v5617_v19, %v5617_v19  ;;  %v5636_v40 = vadd.f32 %v6331_v54, %v4045_v59 }
 0x288   : > { %6330 = vst [vmem:[#allocation37_spill] sm:$0xff] %v5630_v13  ;;  %v5638_v10 = vpop.f32.mrb[66].mxu1  ;;  %v5640_v34 = vpop.eup %3557  ;;  %3559 = vtanh.f32 %v1679_v41  ;;  %v1427_v49 = vmul.f32 0.044715, %v1299_v39  ;;  %v1301_v20 = vmul.f32 %v1173_v4, %v5607_v3  ;;  %v1012_v13 = vmul.f32 0.5, %v5226_v14 }
 0x289   : > { %6332 = vst [vmem:[#allocation38_spill] sm:$0xff] %v5638_v10  ;;  %v5644_v43 = vpop.f32.mrb[67].mxu1  ;;  %3561 = vtanh.f32 %v1681_v18  ;;  %v1552_v15 = vadd.f32 %v1424_v53, %v5579_v55  ;;  %v1554_v42 = vadd.f32 %v1426_v8, %v5583_v22  ;;  %v1300_v54 = vmul.f32 %v1172_v31, %v5617_v19 }
 0x28a   : > { %6333 = vst [vmem:[#allocation17_spill] sm:$0xff] %v5644_v43  ;;  %v1555_v24 = vadd.f32 %v1427_v49, %v5589_v61  ;;  %v1429_v10 = vmul.f32 0.044715, %v1301_v20  ;;  %v1174_v41 = vmul.f32 %v5636_v40, %v5636_v40  ;;  %v1016_v39 = vmul.f32 0.5, %v5291_v45  ;;  %v6334_v43 = vld [vmem:[#allocation67_spill] sm:$0xff] }
 0x28b   : > { %v1680_v4 = vmul.f32 0.7978846, %v1552_v15  ;;  %v1682_v63 = vmul.f32 0.7978846, %v1554_v42  ;;  %v1428_v14 = vmul.f32 0.044715, %v1300_v54  ;;  %v5655_v18 = vadd.f32 %v6334_v43, %v4039_v56 }
 0x28c   : > { %v1683_v53 = vmul.f32 0.7978846, %v1555_v24  ;;  %v1557_v8 = vadd.f32 %v1429_v10, %v5607_v3  ;;  %v1302_v31 = vmul.f32 %v1174_v41, %v5636_v40  ;;  %v1908_v49 = vadd.f32 1.0, %v5327_v25 }
 0x28d   : > { %3563 = vtanh.f32 %v1680_v4  ;;  %v1556_v20 = vadd.f32 %v1428_v14, %v5617_v19  ;;  %v1912_v61 = vadd.f32 1.0, %v5389_v21  ;;  %v1014_v45 = vmul.f32 0.5, %v5240_v26 }
 0x28e   : > { %3565 = vtanh.f32 %v1682_v63  ;;  %v1685_v15 = vmul.f32 0.7978846, %v1557_v8  ;;  %v1430_v42 = vmul.f32 0.044715, %v1302_v31  ;;  %v2036_v54 = vmul.f32 %v1908_v49, %v1012_v13  ;;  %v6335_v63 = vld [vmem:[#allocation65_spill] sm:$0xff]  ;;  %v6336_v31 = vld [vmem:[#allocation78_spill] sm:$0xff] }
 0x28f   : > { %3567 = vtanh.f32 %v1683_v53  ;;  %v1684_v56 = vmul.f32 0.7978846, %v1556_v20  ;;  %v2040_v24 = vmul.f32 %v1912_v61, %v1016_v39  ;;  %v1018_v10 = vmul.f32 0.5, %v5295_v52 }
 0x290   : > { %3569 = vtanh.f32 %v1685_v15  ;;  %v1558_v43 = vadd.f32 %v1430_v42, %v5636_v40  ;;  %v1910_v25 = vadd.f32 1.0, %v5338_v17  ;;  %v1914_v41 = vadd.f32 1.0, %v5400_v50 }
 0x291   : > { %3571 = vtanh.f32 %v1684_v56  ;;  %v2120_v21 = vpack.c.bf16 %v2040_v24, %v2036_v54  ;;  %v1175_v26 = vmul.f32 %v5655_v18, %v5655_v18  ;;  %v5671_v13 = vadd.f32 %v6335_v63, %v4041_v57  ;;  %v6338_v56 = vld [vmem:[#allocation20_spill] sm:$0xff] }
 0x292   : > { %v5673_v4 = vpop.eup %3559  ;;  %v1686_v61 = vmul.f32 0.7978846, %v1558_v43  ;;  %v2038_v52 = vmul.f32 %v1910_v25, %v1014_v45  ;;  %v2042_v39 = vmul.f32 %v1914_v41, %v1018_v10  ;;  %v1011_v14 = vmul.f32 0.5, %v5205_v33  ;;  %v6337_v45 = vld [vmem:[#allocation75_spill] sm:$0xff]  ;;  %v6339_v43 = vld [vmem:[#allocation21_spill] sm:$0xff]  ;;  %v6340_v41 = vld [vmem:[#allocation68_spill] sm:$0xff] }
 0x293   : > { %v5676_v53 = vpop.eup %3561  ;;  %2522 = vmatprep.mubr.bf16.mxu0 %v2120_v21  ;;  %v1303_v17 = vmul.f32 %v1175_v26, %v5655_v18  ;;  %v1177_v50 = vmul.f32 %v5671_v13, %v5671_v13  ;;  %v1015_v8 = vmul.f32 0.5, %v5267_v9  ;;  %v1907_v57 = vadd.f32 1.0, %v6336_v31 }
 0x294   : > { %3573 = vtanh.f32 %v1686_v61  ;;  %v2122_v49 = vpack.c.bf16 %v2042_v39, %v2038_v52  ;;  %v1911_v20 = vadd.f32 1.0, %v5369_v11  ;;  %v1013_v15 = vmul.f32 0.5, %v6337_v45  ;;  %v6341_v61 = vld [vmem:[#allocation71_spill] sm:$0xff] }
 0x295   : > { %v1431_v42 = vmul.f32 0.044715, %v1303_v17  ;;  %v1305_v33 = vmul.f32 %v1177_v50, %v5671_v13  ;;  %v2035_v54 = vmul.f32 %v1907_v57, %v1011_v14  ;;  %v1017_v24 = vmul.f32 0.5, %v6338_v56 }
 0x296   : > { %2683 = vmatprep.mubr.bf16.mxu1 %v2122_v49  ;;  %v2039_v10 = vmul.f32 %v1911_v20, %v1015_v8  ;;  %v1909_v25 = vadd.f32 1.0, %v6339_v43  ;;  %v1913_v9 = vadd.f32 1.0, %v5372_v6  ;;  %v5691_v21 = vadd.f32 %v6340_v41, %v4043_v58 }
 0x297   : > { %v5693_v26 = vpop.eup %3563  ;;  %v1559_v11 = vadd.f32 %v1431_v42, %v5655_v18  ;;  %v1433_v63 = vmul.f32 0.044715, %v1305_v33  ;;  %v5698_v52 = vadd.f32 %v6341_v61, %v4045_v59  ;;  %v1020_v39 = vmul.f32 0.5, %v5325_v36 }
 0x298   : > { %v5701_v14 = vpop.eup %3565  ;;  %v2119_v17 = vpack.c.bf16 %v2039_v10, %v2035_v54  ;;  %v2037_v50 = vmul.f32 %v1909_v25, %v1013_v15  ;;  %v2041_v6 = vmul.f32 %v1913_v9, %v1017_v24  ;;  %v1176_v58 = vmul.f32 %v5691_v21, %v5691_v21  ;;  %v5720_v10 = vpop.f32.mrb[68].mxu0 }
 0x299   : > { %v5705_v8 = vpop.eup %3567  ;;  %v1687_v31 = vmul.f32 0.7978846, %v1559_v11  ;;  %v1561_v57 = vadd.f32 %v1433_v63, %v5671_v13  ;;  %v1178_v49 = vmul.f32 %v5698_v52, %v5698_v52  ;;  %v1024_v59 = vmul.f32 0.5, %v5387_v47  ;;  %v5723_v41 = vpop.f32.mrb[69].mxu0 }
 0x29a   : > { %v5711_v20 = vpop.eup %3569  ;;  %2523 = vmatmul.mubr.bf16.gmra.mrb[108].mxu0 %v2119_v17  ;;  %v2121_v36 = vpack.c.bf16 %v2041_v6, %v2037_v50  ;;  %v1304_v45 = vmul.f32 %v1176_v58, %v5691_v21  ;;  %v1916_v15 = vadd.f32 1.0, %v5422_v38  ;;  %v1920_v42 = vadd.f32 1.0, %v5485_v0  ;;  %v5727_v63 = vpop.f32.mrb[68].mxu1  ;;  %v6342_v50 = vld [vmem:[#allocation77_spill] sm:$0xff] }
 0x29b   : > { %v5716_v33 = vpop.eup %3571  ;;  %3575 = vtanh.f32 %v1687_v31  ;;  %v1689_v54 = vmul.f32 0.7978846, %v1561_v57  ;;  %v1306_v56 = vmul.f32 %v1178_v49, %v5698_v52  ;;  %v1022_v24 = vmul.f32 0.5, %v5336_v29  ;;  %v5729_v61 = vpop.f32.mrb[70].mxu0 }
 0x29c   : > { %2684 = vmatmul.mubr.bf16.gmra.mrb[108].mxu1 %v2121_v36  ;;  %v1432_v47 = vmul.f32 0.044715, %v1304_v45  ;;  %v2044_v43 = vmul.f32 %v1916_v15, %v1020_v39  ;;  %v2048_v25 = vmul.f32 %v1920_v42, %v1024_v59  ;;  %v1026_v9 = vmul.f32 0.5, %v5394_v1  ;;  %v5736_v58 = vpop.f32.mrb[69].mxu1  ;;  %v5738_v31 = vpop.f32.mrb[71].mxu0  ;;  %v6343_v42 = vld [vmem:[#allocation30_spill] sm:$0xff] }
 0x29d   : > { %3577 = vtanh.f32 %v1689_v54  ;;  %v1434_v38 = vmul.f32 0.044715, %v1306_v56  ;;  %v1918_v0 = vadd.f32 1.0, %v5435_v37  ;;  %v1922_v11 = vadd.f32 1.0, %v5495_v60  ;;  %v5742_v59 = vpop.f32.mrb[70].mxu1 }
 0x29e   : > { %v5731_v29 = vpop.eup %3573  ;;  %v1560_v17 = vadd.f32 %v1432_v47, %v5691_v21  ;;  %v2124_v39 = vpack.c.bf16 %v2048_v25, %v2044_v43  ;;  %v1019_v6 = vmul.f32 0.5, %v6342_v50  ;;  %v1023_v1 = vmul.f32 0.5, %v5351_v30  ;;  %v5747_v54 = vpop.f32.mrb[71].mxu1  ;;  %v6344_v25 = vld [vmem:[#allocation12_spill] sm:$0xff]  ;;  %v6345_v50 = vld [vmem:[#allocation15_spill] sm:$0xff] }
 0x29f   : > { %v1562_v37 = vadd.f32 %v1434_v38, %v5698_v52  ;;  %v2046_v60 = vmul.f32 %v1918_v0, %v1022_v24  ;;  %v2050_v57 = vmul.f32 %v1922_v11, %v1026_v9  ;;  %v1915_v49 = vadd.f32 1.0, %v5404_v46 }
 0x2a0   : > { %v1688_v36 = vmul.f32 0.7978846, %v1560_v17  ;;  %2530 = vmatprep.mubr.bf16.mxu0 %v2124_v39  ;;  %v1919_v45 = vadd.f32 1.0, %v5453_v12  ;;  %v1021_v15 = vmul.f32 0.5, %v5317_v44  ;;  %v1025_v30 = vmul.f32 0.5, %v6343_v42 }
 0x2a1   : > { %v1690_v56 = vmul.f32 0.7978846, %v1562_v37  ;;  %v2126_v47 = vpack.c.bf16 %v2050_v57, %v2046_v60  ;;  %v2043_v43 = vmul.f32 %v1915_v49, %v1019_v6  ;;  %v1917_v24 = vadd.f32 1.0, %v6344_v25  ;;  %v6346_v60 = vld [vmem:[#allocation13_spill] sm:$0xff]  ;;  %v6350_v25 = vld [vmem:[#allocation23_spill] sm:$0xff] }
 0x2a2   : > { %3579 = vtanh.f32 %v1688_v36  ;;  %v2047_v9 = vmul.f32 %v1919_v45, %v1023_v1  ;;  %v1921_v46 = vadd.f32 1.0, %v5466_v35  ;;  %v1028_v38 = vmul.f32 0.5, %v5420_v2  ;;  %v6347_v36 = vld [vmem:[#allocation25_spill] sm:$0xff]  ;;  %v6348_v45 = vld [vmem:[#allocation79_spill] sm:$0xff] }
 0x2a3   : > { %3581 = vtanh.f32 %v1690_v56  ;;  %2691 = vmatprep.mubr.bf16.mxu1 %v2126_v47  ;;  %v2045_v12 = vmul.f32 %v1917_v24, %v1021_v15  ;;  %v1032_v44 = vmul.f32 0.5, %v5483_v32  ;;  %v1924_v0 = vadd.f32 1.0, %v5522_v51  ;;  %v6349_v56 = vld [vmem:[#allocation84_spill] sm:$0xff] }
 0x2a4   : > { %v2123_v11 = vpack.c.bf16 %v2047_v9, %v2043_v43  ;;  %v2049_v17 = vmul.f32 %v1921_v46, %v1025_v30  ;;  %v1928_v39 = vadd.f32 1.0, %v5585_v5  ;;  %v1030_v6 = vmul.f32 0.5, %v6345_v50  ;;  %v6352_v46 = vld [vmem:[#allocation86_spill] sm:$0xff] }
 0x2a5   : > { %v5756_v37 = vpop.eup %3575  ;;  %v2052_v1 = vmul.f32 %v1924_v0, %v1028_v38  ;;  %v1034_v35 = vmul.f32 0.5, %v5489_v48  ;;  %v1926_v2 = vadd.f32 1.0, %v6346_v60  ;;  %v1930_v57 = vadd.f32 1.0, %v5591_v28  ;;  %v6351_v28 = vld [vmem:[#allocation80_spill] sm:$0xff] }
 0x2a6   : > { %2531 = vmatmul.mubr.bf16.gmra.mrb[112].mxu0 %v2123_v11  ;;  %v2125_v49 = vpack.c.bf16 %v2049_v17, %v2045_v12  ;;  %v2056_v32 = vmul.f32 %v1928_v39, %v1032_v44  ;;  %v1027_v51 = vmul.f32 0.5, %v6347_v36  ;;  %v1031_v15 = vmul.f32 0.5, %v6348_v45  ;;  %v6354_v45 = vld [vmem:[#allocation22_spill] sm:$0xff] }
 0x2a7   : > { %v5763_v42 = vpop.eup %3577  ;;  %v2054_v5 = vmul.f32 %v1926_v2, %v1030_v6  ;;  %v2058_v30 = vmul.f32 %v1930_v57, %v1034_v35  ;;  %v1923_v47 = vadd.f32 1.0, %v6349_v56  ;;  %v1927_v43 = vadd.f32 1.0, %v5551_v27 }
 0x2a8   : > { %2692 = vmatmul.mubr.bf16.gmra.mrb[112].mxu1 %v2125_v49  ;;  %v2128_v48 = vpack.c.bf16 %v2056_v32, %v2052_v1  ;;  %v1029_v24 = vmul.f32 0.5, %v6350_v25  ;;  %v1033_v9 = vmul.f32 0.5, %v6351_v28  ;;  %v1925_v38 = vadd.f32 1.0, %v6352_v46 }
 0x2a9   : > { %v2130_v12 = vpack.c.bf16 %v2058_v30, %v2054_v5  ;;  %v2051_v44 = vmul.f32 %v1923_v47, %v1027_v51  ;;  %v2055_v0 = vmul.f32 %v1927_v43, %v1031_v15  ;;  %v1929_v11 = vadd.f32 1.0, %v5561_v23  ;;  %v6353_v51 = vld [vmem:[#allocation83_spill] sm:$0xff] }
 0x2aa   : > { %2538 = vmatprep.mubr.bf16.mxu0 %v2128_v48  ;;  %v2053_v17 = vmul.f32 %v1925_v38, %v1029_v24  ;;  %v1036_v39 = vmul.f32 0.5, %v5514_v62  ;;  %v1040_v50 = vmul.f32 0.5, %v5579_v55  ;;  %v1932_v27 = vadd.f32 1.0, %v5623_v16  ;;  %v6355_v30 = vld [vmem:[#allocation19_spill] sm:$0xff] }
 0x2ab   : > { %2699 = vmatprep.mubr.bf16.mxu1 %v2130_v12  ;;  %v2127_v6 = vpack.c.bf16 %v2055_v0, %v2051_v44  ;;  %v2057_v1 = vmul.f32 %v1929_v11, %v1033_v9  ;;  %v1936_v35 = vadd.f32 1.0, %v5693_v26  ;;  %v1038_v60 = vmul.f32 0.5, %v5528_v7 }
 0x2ac   : > { %v3580_v2 = vpop.eup %3579  ;;  %v2060_v57 = vmul.f32 %v1932_v27, %v1036_v39  ;;  %v1042_v49 = vmul.f32 0.5, %v5583_v22  ;;  %v1934_v23 = vadd.f32 1.0, %v5640_v34  ;;  %v1938_v32 = vadd.f32 1.0, %v5701_v14  ;;  %v6356_v22 = vld [vmem:[#allocation85_spill] sm:$0xff]  ;;  %v6357_v34 = vld [vmem:[#allocation18_spill] sm:$0xff]  ;;  %v6358_v14 = vld [vmem:[#allocation51_spill] sm:$0xff] }
 0x2ad   : > { %v3582_v62 = vpop.eup %3581  ;;  %v2129_v36 = vpack.c.bf16 %v2057_v1, %v2053_v17  ;;  %v2064_v55 = vmul.f32 %v1936_v35, %v1040_v50  ;;  %v1035_v16 = vmul.f32 0.5, %v6353_v51  ;;  %v1039_v15 = vmul.f32 0.5, %v6354_v45 }
 0x2ae   : > { %2539 = vmatmul.mubr.bf16.gmra.mrb[116].mxu0 %v2127_v6  ;;  %v2062_v5 = vmul.f32 %v1934_v23, %v1038_v60  ;;  %v2066_v26 = vmul.f32 %v1938_v32, %v1042_v49  ;;  %v1931_v7 = vadd.f32 1.0, %v6355_v30  ;;  %v1935_v56 = vadd.f32 1.0, %v5673_v4  ;;  %v2975_v38 = vpop.f32.mrb[72].mxu0 }
 0x2af   : > { %v2132_v47 = vpack.c.bf16 %v2064_v55, %v2060_v57  ;;  %v1037_v43 = vmul.f32 0.5, %v6356_v22  ;;  %v1041_v48 = vmul.f32 0.5, %v6357_v34  ;;  %v1933_v25 = vadd.f32 1.0, %v6358_v14  ;;  %v2976_v11 = vpop.f32.mrb[73].mxu0  ;;  %v6364_v34 = vld [vmem:[#allocation34_spill] sm:$0xff] }
 0x2b0   : > { %2700 = vmatmul.mubr.bf16.gmra.mrb[116].mxu1 %v2129_v36  ;;  %v2134_v24 = vpack.c.bf16 %v2066_v26, %v2062_v5  ;;  %v2059_v28 = vmul.f32 %v1931_v7, %v1035_v16  ;;  %v2063_v9 = vmul.f32 %v1935_v56, %v1039_v15  ;;  %v1937_v46 = vadd.f32 1.0, %v5676_v53  ;;  %v3087_v6 = vpop.f32.mrb[72].mxu1  ;;  %v2978_v1 = vpop.f32.mrb[74].mxu0  ;;  %v6360_v7 = vld [vmem:[#allocation44_spill] sm:$0xff]  ;;  %v6361_v56 = vld [vmem:[#allocation39_spill] sm:$0xff]  ;;  %v6366_v14 = vld [vmem:[#allocation38_spill] sm:$0xff] }
 0x2b1   : > { %2546 = vmatprep.mubr.bf16.mxu0 %v2132_v47  ;;  %v2061_v12 = vmul.f32 %v1933_v25, %v1037_v43  ;;  %v1044_v44 = vmul.f32 0.5, %v5617_v19  ;;  %v1048_v4 = vmul.f32 0.5, %v5691_v21  ;;  %v1940_v0 = vadd.f32 1.0, %v5716_v33  ;;  %v3088_v19 = vpop.f32.mrb[73].mxu1  ;;  %v2979_v49 = vpop.f32.mrb[75].mxu0  ;;  %v6359_v33 = vld [vmem:[#allocation49_spill] sm:$0xff] }
 0x2b2   : > { %2707 = vmatprep.mubr.bf16.mxu1 %v2134_v24  ;;  %v2131_v17 = vpack.c.bf16 %v2063_v9, %v2059_v28  ;;  %v2065_v39 = vmul.f32 %v1937_v46, %v1041_v48  ;;  %v1944_v50 = vadd.f32 1.0, %v3580_v2  ;;  %v1046_v27 = vmul.f32 0.5, %v5636_v40  ;;  %v3090_v55 = vpop.f32.mrb[74].mxu1  ;;  %v6362_v47 = vld [vmem:[#allocation29_spill] sm:$0xff] }
 0x2b3   : > { %v2068_v35 = vmul.f32 %v1940_v0, %v1044_v44  ;;  %v1050_v53 = vmul.f32 0.5, %v5698_v52  ;;  %v1942_v60 = vadd.f32 1.0, %v5731_v29  ;;  %v1946_v57 = vadd.f32 1.0, %v3582_v62  ;;  %v3091_v45 = vpop.f32.mrb[75].mxu1  ;;  %v6365_v48 = vld [vmem:[#allocation37_spill] sm:$0xff] }
 0x2b4   : > { %v2133_v21 = vpack.c.bf16 %v2065_v39, %v2061_v12  ;;  %v2072_v23 = vmul.f32 %v1944_v50, %v1048_v4  ;;  %v1043_v32 = vmul.f32 0.5, %v6359_v33  ;;  %v1047_v36 = vmul.f32 0.5, %v5655_v18  ;;  %v6367_v25 = vld [vmem:[#allocation17_spill] sm:$0xff] }
 0x2b5   : > { %v2070_v2 = vmul.f32 %v1942_v60, %v1046_v27  ;;  %v2074_v51 = vmul.f32 %v1946_v57, %v1050_v53  ;;  %v1939_v40 = vadd.f32 1.0, %v5705_v8  ;;  %v1943_v16 = vadd.f32 1.0, %v5756_v37  ;;  %v5804_v8 = vld [vmem:[%s5945_s4] ss:$0 sm:$0xff] }
 0x2b6   : > { %2547 = vmatmul.mubr.bf16.gmra.mrb[120].mxu0 %v2131_v17  ;;  %v2136_v52 = vpack.c.bf16 %v2072_v23, %v2068_v35  ;;  %v1045_v29 = vmul.f32 0.5, %v5607_v3  ;;  %v1049_v62 = vmul.f32 0.5, %v5671_v13  ;;  %v1941_v15 = vadd.f32 1.0, %v5711_v20  ;;  %v6363_v13 = vld [vmem:[#allocation35_spill] sm:$0xff] }
 0x2b7   : > { %v2138_v5 = vpack.c.bf16 %v2074_v51, %v2070_v2  ;;  %v2067_v26 = vmul.f32 %v1939_v40, %v1043_v32  ;;  %v2071_v30 = vmul.f32 %v1943_v16, %v1047_v36  ;;  %v1945_v18 = vadd.f32 1.0, %v5763_v42 }
 0x2b8   : > { %2708 = vmatmul.mubr.bf16.gmra.mrb[120].mxu1 %v2133_v21  ;;  %2554 = vmatprep.mubr.bf16.mxu0 %v2136_v52  ;;  %v2069_v37 = vmul.f32 %v1941_v15, %v1045_v29  ;;  %v2965_v3 = vadd.f32 %v6361_v56, %v6360_v7  ;;  %v3077_v22 = vadd.f32 %v6363_v13, %v6362_v47 }
 0x2b9   : > { %2715 = vmatprep.mubr.bf16.mxu1 %v2138_v5  ;;  %v2135_v20 = vpack.c.bf16 %v2071_v30, %v2067_v26  ;;  %v2073_v43 = vmul.f32 %v1945_v18, %v1049_v62  ;;  %v2968_v42 = vadd.f32 %v6365_v48, %v6364_v34  ;;  %v3080_v24 = vadd.f32 %v6367_v25, %v6366_v14 }
 0x2ba   : > { %v2437_v28 = vadd.f32 %v2965_v3, %v5804_v8  ;;  %v2971_v9 = vadd.f32 %v5723_v41, %v5720_v10  ;;  %v3083_v46 = vadd.f32 %v5736_v58, %v5727_v63  ;;  %v2974_v12 = vadd.f32 %v5738_v31, %v5729_v61 }
 0x2bb   : > { %v2137_v44 = vpack.c.bf16 %v2073_v43, %v2069_v37  ;;  %v2440_v4 = vadd.f32 %v2968_v42, %v5804_v8  ;;  %v3086_v0 = vadd.f32 %v5747_v54, %v5742_v59  ;;  %v2977_v17 = vadd.f32 %v2976_v11, %v2975_v38 }
 0x2bc   : > { %v2598_v39 = vadd.f32 %v3077_v22, %v2437_v28  ;;  %v2445_v50 = vadd.f32 %v2971_v9, %v5804_v8  ;;  %v2448_v27 = vadd.f32 %v2974_v12, %v5804_v8  ;;  %v3089_v10 = vadd.f32 %v3088_v19, %v3087_v6 }
 0x2bd   : > { %v2601_v41 = vadd.f32 %v3080_v24, %v2440_v4  ;;  %v2453_v35 = vadd.f32 %v2977_v17, %v5804_v8  ;;  %v2980_v63 = vadd.f32 %v2979_v49, %v2978_v1  ;;  %v3092_v58 = vadd.f32 %v3091_v45, %v3090_v55 }
 0x2be   : > { %2555 = vmatmul.mubr.bf16.gmra.mrb[124].mxu0 %v2135_v20  ;;  %2724 = vst [vmem:[%s5829_s12] sm:$0xff] %v2598_v39  ;;  %v2606_v61 = vadd.f32 %v3083_v46, %v2445_v50  ;;  %v2609_v31 = vadd.f32 %v3086_v0, %v2448_v27 }
 0x2bf   : > { %2725 = vst [vmem:[%s5829_s12 + $0x8] sm:$0xff] %v2601_v41  ;;  %v2614_v59 = vadd.f32 %v3089_v10, %v2453_v35  ;;  %v2456_v54 = vadd.f32 %v2980_v63, %v5804_v8 }
 0x2c0   : > { %2716 = vmatmul.mubr.bf16.gmra.mrb[124].mxu1 %v2137_v44  ;;  %2726 = vst [vmem:[%s5829_s12 + $0x10] sm:$0xff] %v2606_v61  ;;  %2727 = vst [vmem:[%s5829_s12 + $0x18] sm:$0xff] %v2609_v31 }
 0x2c1   : > { %2728 = vst [vmem:[%s5829_s12 + $0x20] sm:$0xff] %v2614_v59  ;;  %v2617_v38 = vadd.f32 %v3092_v58, %v2456_v54 }
 0x2c3   : > { %2729 = vst [vmem:[%s5829_s12 + $0x28] sm:$0xff] %v2617_v38  ;;  %v2981_v11 = vpop.f32.mrb[76].mxu0 }
 0x2c4   : > { %v2982_v6 = vpop.f32.mrb[77].mxu0 }
 0x2c5   : > { %v3093_v1 = vpop.f32.mrb[76].mxu1  ;;  %v2983_v53 = vadd.f32 %v2982_v6, %v2981_v11  ;;  %v2984_v60 = vpop.f32.mrb[78].mxu0 }
 0x2c6   : > { %v3094_v57 = vpop.f32.mrb[77].mxu1  ;;  %v2985_v19 = vpop.f32.mrb[79].mxu0 }
 0x2c7   : > { %v2461_v49 = vadd.f32 %v2983_v53, %v5804_v8  ;;  %v3095_v21 = vadd.f32 %v3094_v57, %v3093_v1  ;;  %v3096_v23 = vpop.f32.mrb[78].mxu1  ;;  %v2986_v33 = vadd.f32 %v2985_v19, %v2984_v60 }
 0x2c8   : > { %v3097_v32 = vpop.f32.mrb[79].mxu1 }
 0x2c9   : > { %v2622_v36 = vadd.f32 %v3095_v21, %v2461_v49  ;;  %v2464_v55 = vadd.f32 %v2986_v33, %v5804_v8  ;;  %v3098_v2 = vadd.f32 %v3097_v32, %v3096_v23 }
 0x2cb   : > { %2730 = vst [vmem:[%s5829_s12 + $0x30] sm:$0xff] %v2622_v36  ;;  %v2625_v51 = vadd.f32 %v3098_v2, %v2464_v55 }
 0x2cd   : > { %2731 = vst [vmem:[%s5829_s12 + $0x38] sm:$0xff] %v2625_v51 }
 0x2d8   : > { %v2987_v40 = vpop.f32.mrb[80].mxu0 }
 0x2d9   : > { %v2988_v16 = vpop.f32.mrb[81].mxu0 }
 0x2da   : > { %v3099_v45 = vpop.f32.mrb[80].mxu1  ;;  %v2989_v52 = vadd.f32 %v2988_v16, %v2987_v40  ;;  %v2990_v29 = vpop.f32.mrb[82].mxu0 }
 0x2db   : > { %v3100_v62 = vpop.f32.mrb[81].mxu1  ;;  %v2991_v15 = vpop.f32.mrb[83].mxu0 }
 0x2dc   : > { %v2469_v5 = vadd.f32 %v2989_v52, %v5804_v8  ;;  %v3101_v26 = vadd.f32 %v3100_v62, %v3099_v45  ;;  %v3102_v30 = vpop.f32.mrb[82].mxu1  ;;  %v2992_v18 = vadd.f32 %v2991_v15, %v2990_v29 }
 0x2dd   : > { %v3103_v37 = vpop.f32.mrb[83].mxu1 }
 0x2de   : > { %v2630_v7 = vadd.f32 %v3101_v26, %v2469_v5  ;;  %v2472_v56 = vadd.f32 %v2992_v18, %v5804_v8  ;;  %v3104_v3 = vadd.f32 %v3103_v37, %v3102_v30 }
 0x2e0   : > { %2732 = vst [vmem:[%s5829_s12 + $0x40] sm:$0xff] %v2630_v7  ;;  %v2633_v47 = vadd.f32 %v3104_v3, %v2472_v56 }
 0x2e2   : > { %2733 = vst [vmem:[%s5829_s12 + $0x48] sm:$0xff] %v2633_v47 }
 0x2ee   : > { %v2993_v13 = vpop.f32.mrb[84].mxu0 }
 0x2ef   : > { %v2994_v22 = vpop.f32.mrb[85].mxu0 }
 0x2f0   : > { %v3105_v20 = vpop.f32.mrb[84].mxu1  ;;  %v2995_v43 = vadd.f32 %v2994_v22, %v2993_v13  ;;  %v2996_v34 = vpop.f32.mrb[86].mxu0 }
 0x2f1   : > { %v3106_v48 = vpop.f32.mrb[85].mxu1  ;;  %v2997_v42 = vpop.f32.mrb[87].mxu0 }
 0x2f2   : > { %v2477_v14 = vadd.f32 %v2995_v43, %v5804_v8  ;;  %v3107_v25 = vadd.f32 %v3106_v48, %v3105_v20  ;;  %v3108_v24 = vpop.f32.mrb[86].mxu1  ;;  %v2998_v28 = vadd.f32 %v2997_v42, %v2996_v34 }
 0x2f3   : > { %v3109_v9 = vpop.f32.mrb[87].mxu1 }
 0x2f4   : > { %v2638_v46 = vadd.f32 %v3107_v25, %v2477_v14  ;;  %v2480_v12 = vadd.f32 %v2998_v28, %v5804_v8  ;;  %v3110_v44 = vadd.f32 %v3109_v9, %v3108_v24 }
 0x2f6   : > { %2734 = vst [vmem:[%s5829_s12 + $0x50] sm:$0xff] %v2638_v46  ;;  %v2641_v4 = vadd.f32 %v3110_v44, %v2480_v12 }
 0x2f8   : > { %2735 = vst [vmem:[%s5829_s12 + $0x58] sm:$0xff] %v2641_v4 }
 0x303   : > { %v2999_v0 = vpop.f32.mrb[88].mxu0 }
 0x304   : > { %v3000_v17 = vpop.f32.mrb[89].mxu0 }
 0x305   : > { %v3111_v39 = vpop.f32.mrb[88].mxu1  ;;  %v3001_v50 = vadd.f32 %v3000_v17, %v2999_v0  ;;  %v3002_v27 = vpop.f32.mrb[90].mxu0 }
 0x306   : > { %v3112_v10 = vpop.f32.mrb[89].mxu1  ;;  %v3003_v41 = vpop.f32.mrb[91].mxu0 }
 0x307   : > { %v2485_v35 = vadd.f32 %v3001_v50, %v5804_v8  ;;  %v3113_v63 = vadd.f32 %v3112_v10, %v3111_v39  ;;  %v3114_v58 = vpop.f32.mrb[90].mxu1  ;;  %v3004_v61 = vadd.f32 %v3003_v41, %v3002_v27 }
 0x308   : > { %v3115_v31 = vpop.f32.mrb[91].mxu1 }
 0x309   : > { %v2646_v59 = vadd.f32 %v3113_v63, %v2485_v35  ;;  %v2488_v54 = vadd.f32 %v3004_v61, %v5804_v8  ;;  %v3116_v38 = vadd.f32 %v3115_v31, %v3114_v58 }
 0x30b   : > { %2736 = vst [vmem:[%s5829_s12 + $0x60] sm:$0xff] %v2646_v59  ;;  %v2649_v11 = vadd.f32 %v3116_v38, %v2488_v54 }
 0x30d   : > { %2737 = vst [vmem:[%s5829_s12 + $0x68] sm:$0xff] %v2649_v11 }
 0x318   : > { %v3005_v6 = vpop.f32.mrb[92].mxu0 }
 0x319   : > { %v3006_v1 = vpop.f32.mrb[93].mxu0 }
 0x31a   : > { %v3117_v53 = vpop.f32.mrb[92].mxu1  ;;  %v3007_v60 = vadd.f32 %v3006_v1, %v3005_v6  ;;  %v3008_v57 = vpop.f32.mrb[94].mxu0 }
 0x31b   : > { %v3118_v19 = vpop.f32.mrb[93].mxu1  ;;  %v3009_v49 = vpop.f32.mrb[95].mxu0 }
 0x31c   : > { %v2493_v21 = vadd.f32 %v3007_v60, %v5804_v8  ;;  %v3119_v23 = vadd.f32 %v3118_v19, %v3117_v53  ;;  %v3120_v33 = vpop.f32.mrb[94].mxu1  ;;  %v3010_v32 = vadd.f32 %v3009_v49, %v3008_v57 }
 0x31d   : > { %v3121_v36 = vpop.f32.mrb[95].mxu1 }
 0x31e   : > { %v2654_v55 = vadd.f32 %v3119_v23, %v2493_v21  ;;  %v2496_v2 = vadd.f32 %v3010_v32, %v5804_v8  ;;  %v3122_v51 = vadd.f32 %v3121_v36, %v3120_v33 }
 0x320   : > { %2738 = vst [vmem:[%s5829_s12 + $0x70] sm:$0xff] %v2654_v55  ;;  %v2657_v40 = vadd.f32 %v3122_v51, %v2496_v2 }
 0x322   : > { %2739 = vst [vmem:[%s5829_s12 + $0x78] sm:$0xff] %v2657_v40 }
 0x32d   : > { %v3011_v16 = vpop.f32.mrb[96].mxu0 }
 0x32e   : > { %v3012_v45 = vpop.f32.mrb[97].mxu0 }
 0x32f   : > { %v3013_v29 = vadd.f32 %v3012_v45, %v3011_v16  ;;  %v3014_v62 = vpop.f32.mrb[98].mxu0 }
 0x330   : > { %v3123_v52 = vpop.f32.mrb[96].mxu1  ;;  %v3015_v5 = vpop.f32.mrb[99].mxu0 }
 0x331   : > { %v3124_v15 = vpop.f32.mrb[97].mxu1  ;;  %v2501_v26 = vadd.f32 %v3013_v29, %v5804_v8  ;;  %v3016_v37 = vadd.f32 %v3015_v5, %v3014_v62 }
 0x332   : > { %v3125_v30 = vadd.f32 %v3124_v15, %v3123_v52  ;;  %v3126_v18 = vpop.f32.mrb[98].mxu1 }
 0x333   : > { %v3127_v7 = vpop.f32.mrb[99].mxu1  ;;  %v2504_v3 = vadd.f32 %v3016_v37, %v5804_v8 }
 0x334   : > { %v2662_v56 = vadd.f32 %v3125_v30, %v2501_v26  ;;  %v3128_v47 = vadd.f32 %v3127_v7, %v3126_v18 }
 0x336   : > { %2740 = vst [vmem:[%s5829_s12 + $0x80] sm:$0xff] %v2662_v56  ;;  %v2665_v13 = vadd.f32 %v3128_v47, %v2504_v3 }
 0x338   : > { %2741 = vst [vmem:[%s5829_s12 + $0x88] sm:$0xff] %v2665_v13 }
 0x342   : > { %v3017_v22 = vpop.f32.mrb[100].mxu0 }
 0x343   : > { %v3018_v20 = vpop.f32.mrb[101].mxu0 }
 0x344   : > { %v3019_v34 = vadd.f32 %v3018_v20, %v3017_v22  ;;  %v3020_v48 = vpop.f32.mrb[102].mxu0 }
 0x345   : > { %v3129_v43 = vpop.f32.mrb[100].mxu1  ;;  %v3021_v14 = vpop.f32.mrb[103].mxu0 }
 0x346   : > { %v3130_v42 = vpop.f32.mrb[101].mxu1  ;;  %v2509_v25 = vadd.f32 %v3019_v34, %v5804_v8  ;;  %v3022_v9 = vadd.f32 %v3021_v14, %v3020_v48 }
 0x347   : > { %v3131_v24 = vadd.f32 %v3130_v42, %v3129_v43  ;;  %v3132_v28 = vpop.f32.mrb[102].mxu1 }
 0x348   : > { %v3133_v46 = vpop.f32.mrb[103].mxu1  ;;  %v2512_v44 = vadd.f32 %v3022_v9, %v5804_v8 }
 0x349   : > { %v2670_v12 = vadd.f32 %v3131_v24, %v2509_v25  ;;  %v3134_v4 = vadd.f32 %v3133_v46, %v3132_v28 }
 0x34b   : > { %2742 = vst [vmem:[%s5829_s12 + $0x90] sm:$0xff] %v2670_v12  ;;  %v2673_v0 = vadd.f32 %v3134_v4, %v2512_v44 }
 0x34d   : > { %2743 = vst [vmem:[%s5829_s12 + $0x98] sm:$0xff] %v2673_v0 }
 0x357   : > { %v3023_v17 = vpop.f32.mrb[104].mxu0 }
 0x358   : > { %v3024_v39 = vpop.f32.mrb[105].mxu0 }
 0x359   : > { %v3025_v27 = vadd.f32 %v3024_v39, %v3023_v17  ;;  %v3026_v10 = vpop.f32.mrb[106].mxu0 }
 0x35a   : > { %v3135_v50 = vpop.f32.mrb[104].mxu1  ;;  %v3027_v35 = vpop.f32.mrb[107].mxu0 }
 0x35b   : > { %v3136_v41 = vpop.f32.mrb[105].mxu1  ;;  %v2517_v63 = vadd.f32 %v3025_v27, %v5804_v8  ;;  %v3028_v31 = vadd.f32 %v3027_v35, %v3026_v10 }
 0x35c   : > { %v3137_v58 = vadd.f32 %v3136_v41, %v3135_v50  ;;  %v3138_v61 = vpop.f32.mrb[106].mxu1 }
 0x35d   : > { %v3139_v59 = vpop.f32.mrb[107].mxu1  ;;  %v2520_v38 = vadd.f32 %v3028_v31, %v5804_v8 }
 0x35e   : > { %v2678_v54 = vadd.f32 %v3137_v58, %v2517_v63  ;;  %v3140_v11 = vadd.f32 %v3139_v59, %v3138_v61 }
 0x360   : > { %2744 = vst [vmem:[%s5829_s12 + $0xa0] sm:$0xff] %v2678_v54  ;;  %v2681_v6 = vadd.f32 %v3140_v11, %v2520_v38 }
 0x362   : > { %2745 = vst [vmem:[%s5829_s12 + $0xa8] sm:$0xff] %v2681_v6 }
 0x36d   : > { %v3029_v1 = vpop.f32.mrb[108].mxu0 }
 0x36e   : > { %v3030_v53 = vpop.f32.mrb[109].mxu0 }
 0x36f   : > { %v3141_v60 = vpop.f32.mrb[108].mxu1  ;;  %v3031_v57 = vadd.f32 %v3030_v53, %v3029_v1  ;;  %v3032_v19 = vpop.f32.mrb[110].mxu0 }
 0x370   : > { %v3142_v49 = vpop.f32.mrb[109].mxu1  ;;  %v3033_v21 = vpop.f32.mrb[111].mxu0 }
 0x371   : > { %v2525_v23 = vadd.f32 %v3031_v57, %v5804_v8  ;;  %v3143_v33 = vadd.f32 %v3142_v49, %v3141_v60  ;;  %v3144_v32 = vpop.f32.mrb[110].mxu1  ;;  %v3034_v36 = vadd.f32 %v3033_v21, %v3032_v19 }
 0x372   : > { %v3145_v55 = vpop.f32.mrb[111].mxu1 }
 0x373   : > { %v2686_v2 = vadd.f32 %v3143_v33, %v2525_v23  ;;  %v2528_v51 = vadd.f32 %v3034_v36, %v5804_v8  ;;  %v3146_v40 = vadd.f32 %v3145_v55, %v3144_v32 }
 0x375   : > { %2746 = vst [vmem:[%s5829_s12 + $0xb0] sm:$0xff] %v2686_v2  ;;  %v2689_v16 = vadd.f32 %v3146_v40, %v2528_v51 }
 0x377   : > { %2747 = vst [vmem:[%s5829_s12 + $0xb8] sm:$0xff] %v2689_v16 }
 0x379   : > { %v3035_v45 = vpop.f32.mrb[112].mxu0 }
 0x37a   : > { %v3036_v52 = vpop.f32.mrb[113].mxu0 }
 0x37b   : > { %v3147_v29 = vpop.f32.mrb[112].mxu1  ;;  %v3037_v62 = vadd.f32 %v3036_v52, %v3035_v45  ;;  %v3038_v15 = vpop.f32.mrb[114].mxu0 }
 0x37c   : > { %v3148_v5 = vpop.f32.mrb[113].mxu1  ;;  %v3039_v26 = vpop.f32.mrb[115].mxu0 }
 0x37d   : > { %v2533_v30 = vadd.f32 %v3037_v62, %v5804_v8  ;;  %v3149_v18 = vadd.f32 %v3148_v5, %v3147_v29  ;;  %v3150_v37 = vpop.f32.mrb[114].mxu1  ;;  %v3040_v7 = vadd.f32 %v3039_v26, %v3038_v15 }
 0x37e   : > { %v3151_v56 = vpop.f32.mrb[115].mxu1 }
 0x37f   : > { %v2694_v3 = vadd.f32 %v3149_v18, %v2533_v30  ;;  %v2536_v47 = vadd.f32 %v3040_v7, %v5804_v8  ;;  %v3152_v13 = vadd.f32 %v3151_v56, %v3150_v37 }
 0x381   : > { %2748 = vst [vmem:[%s5829_s12 + $0xc0] sm:$0xff] %v2694_v3  ;;  %v2697_v22 = vadd.f32 %v3152_v13, %v2536_v47  ;;  %v3041_v20 = vpop.f32.mrb[116].mxu0 }
 0x382   : > { %v3042_v43 = vpop.f32.mrb[117].mxu0 }
 0x383   : > { %2749 = vst [vmem:[%s5829_s12 + $0xc8] sm:$0xff] %v2697_v22  ;;  %v3153_v34 = vpop.f32.mrb[116].mxu1  ;;  %v3043_v48 = vadd.f32 %v3042_v43, %v3041_v20  ;;  %v3044_v42 = vpop.f32.mrb[118].mxu0 }
 0x384   : > { %v3154_v14 = vpop.f32.mrb[117].mxu1  ;;  %v3045_v25 = vpop.f32.mrb[119].mxu0 }
 0x385   : > { %v2541_v24 = vadd.f32 %v3043_v48, %v5804_v8  ;;  %v3155_v28 = vadd.f32 %v3154_v14, %v3153_v34  ;;  %v3156_v9 = vpop.f32.mrb[118].mxu1  ;;  %v3046_v46 = vadd.f32 %v3045_v25, %v3044_v42 }
 0x386   : > { %v3157_v12 = vpop.f32.mrb[119].mxu1 }
 0x387   : > { %v2702_v44 = vadd.f32 %v3155_v28, %v2541_v24  ;;  %v2544_v4 = vadd.f32 %v3046_v46, %v5804_v8  ;;  %v3158_v0 = vadd.f32 %v3157_v12, %v3156_v9 }
 0x389   : > { %2750 = vst [vmem:[%s5829_s12 + $0xd0] sm:$0xff] %v2702_v44  ;;  %v2705_v17 = vadd.f32 %v3158_v0, %v2544_v4  ;;  %v3047_v39 = vpop.f32.mrb[120].mxu0 }
 0x38a   : > { %v3048_v50 = vpop.f32.mrb[121].mxu0 }
 0x38b   : > { %2751 = vst [vmem:[%s5829_s12 + $0xd8] sm:$0xff] %v2705_v17  ;;  %v3159_v27 = vpop.f32.mrb[120].mxu1  ;;  %v3049_v10 = vadd.f32 %v3048_v50, %v3047_v39  ;;  %v3050_v41 = vpop.f32.mrb[122].mxu0 }
 0x38c   : > { %v3160_v35 = vpop.f32.mrb[121].mxu1  ;;  %v3051_v63 = vpop.f32.mrb[123].mxu0 }
 0x38d   : > { %v2549_v58 = vadd.f32 %v3049_v10, %v5804_v8  ;;  %v3161_v61 = vadd.f32 %v3160_v35, %v3159_v27  ;;  %v3162_v31 = vpop.f32.mrb[122].mxu1  ;;  %v3052_v59 = vadd.f32 %v3051_v63, %v3050_v41 }
 0x38e   : > { %v3163_v54 = vpop.f32.mrb[123].mxu1 }
 0x38f   : > { %v2710_v38 = vadd.f32 %v3161_v61, %v2549_v58  ;;  %v2552_v11 = vadd.f32 %v3052_v59, %v5804_v8  ;;  %v3164_v6 = vadd.f32 %v3163_v54, %v3162_v31 }
 0x391   : > { %2752 = vst [vmem:[%s5829_s12 + $0xe0] sm:$0xff] %v2710_v38  ;;  %v2713_v1 = vadd.f32 %v3164_v6, %v2552_v11  ;;  %v3053_v53 = vpop.f32.mrb[124].mxu0 }
 0x392   : > { %v3054_v60 = vpop.f32.mrb[125].mxu0 }
 0x393   : > { %2753 = vst [vmem:[%s5829_s12 + $0xe8] sm:$0xff] %v2713_v1  ;;  %v3165_v57 = vpop.f32.mrb[124].mxu1  ;;  %v3055_v19 = vadd.f32 %v3054_v60, %v3053_v53  ;;  %v3056_v49 = vpop.f32.mrb[126].mxu0 }
 0x394   : > { %v3166_v21 = vpop.f32.mrb[125].mxu1  ;;  %v3057_v23 = vpop.f32.mrb[127].mxu0 }
 0x395   : > { %v2557_v33 = vadd.f32 %v3055_v19, %v5804_v8  ;;  %v3167_v32 = vadd.f32 %v3166_v21, %v3165_v57  ;;  %v3168_v36 = vpop.f32.mrb[126].mxu1  ;;  %v3058_v55 = vadd.f32 %v3057_v23, %v3056_v49 }
 0x396   : > { %v3169_v2 = vpop.f32.mrb[127].mxu1 }
 0x397   : > { %v2718_v51 = vadd.f32 %v3167_v32, %v2557_v33  ;;  %v2560_v40 = vadd.f32 %v3058_v55, %v5804_v8  ;;  %v3170_v16 = vadd.f32 %v3169_v2, %v3168_v36 }
 0x399   : > { %2754 = vst [vmem:[%s5829_s12 + $0xf0] sm:$0xff] %v2718_v51  ;;  %v2721_v45 = vadd.f32 %v3170_v16, %v2560_v40 }
 0x39b   : > { %2755 = vst [vmem:[%s5829_s12 + $0xf8] sm:$0xff] %v2721_v45 }
 0x39c   : > { %3682 = shalt.err (!%p3679_p2)
}
 0x39d   : > { %s3683_s6 = scalar_lea.hbm %s5893_s11, 4096  ;;  %s3687_s10 = scalar_lea.hbm %s5946_s5, 8192 }
 0x39e   : > { %p3684_p13 = scmp.ne.s32.totalorder %s5893_s11, %s3683_s6  ;;  %p3688_p4 = scmp.lt.u32.totalorder %s5893_s11, %s5946_s5 }
 0x39f   : > { %p3689_p7 = scmp.lt.u32.totalorder %s3687_s10, %s3683_s6  ;;  %p3691_p11 = scmp.lt.u32.totalorder %s3683_s6, %s5893_s11 }
 0x3a0   : > { %p3685_p6 = pnand %p3684_p13, %p6368_p0 }
 0x3a1   : > { %p3690_p8 = por %p3689_p7, %p3688_p4 }
 0x3a2   : > { %p3686_p10 = pneg %p3685_p6 }
 0x3a3   : > { %p3692_p1 = por %p3691_p11, %p3690_p8 }
 0x3a5   : > { %p3693_p3 = pnand %p3692_p1, %p3686_p10 }
 0x3a7   : > { %3696 = shalt.err (!%p3693_p3)
}
 0x3a8   : > { %s3752_s13 = smov 128   ;;  %s3753_s8 = smov 8  }
 0x3a9   : > { %3181 = dma.vmem_to_hbm [thread:$0]  (%p6368_p0), %s5895_s29, 4096, %s5893_s11, %s2757_s22, %s3752_s13, %s3752_s13, %s3753_s8  }
 0x3aa PF: > { %s2785_s9 = sand.u32 1, %s3727_s18   ;;  %p6369_p5 = scmp.ne.s32.totalorder %s6011_s25, 0 }
 0x3ab   : > { %p6370_p9 = scmp.ge.s32.totalorder %s3739_s21, 2  ;;  %s2786_s14 = scalar_lea.sflag [#allocation4], %s2785_s9 }
 0x3ad   : > { %p3195_p12 = pnand %p6370_p9, %p6369_p5 }
 0x3af   : > { %3722 = dma.done.wait (!%p3195_p12), %s2786_s14, 4096  }
 0x3b0   : > { %3724 = vsyncadd (!%p3195_p12), %s2786_s14, 4294963200  ;;  %p19_p2 = scmp.ge.s32.totalorder %s3894_s16, 4   ;;  %s6371_s18 = smov %s3731_s19 }
 0x3b1   : > { %s6372_s19 = smov %s3735_s20  ;;  %s6373_s20 = smov %s3903_s27 }
 0x3b2   : > { %s6374_s21 = smov %s3894_s16  ;;  %21 = sbr.rel (!%p19_p2) target bundleno = 6 (0x6), region = 93 }
 0x3b9   :  { %2791 = vsyncpa [#allocation3], 1 }
 0x3ba   :  { %2793 = vsyncpa [#allocation3 + $0x1], 1 }
 0x3bb   :  { %2794 = vsyncpa [#allocation6], 1 }
 0x3bc   :  { %2795 = vsyncpa [#allocation4], 1 }
 0x3bd   :  { %2797 = vsyncpa [#allocation4 + $0x1], 1 }

</bundles_post_ra>
